<compile_context>
chip_gen: v7x
topology: tpu7x:2x2x1
jax: 0.10.0
libtpu: 0.0.40
codegen_flags: <defaults>
</compile_context>

<pallas_src>
import functools

import jax
import jax.numpy as jnp
from jax import lax
from jax.experimental import pallas as pl
from jax.experimental.pallas import tpu as pltpu

BP = 8          # per-timestep batch rows, padded to one f32 sublane tile
LANE_PAD = 128  # classifier output padded to a full lane group


def _sigmoid(x):
    # sigmoid(x) == 0.5 * (tanh(0.5*x) + 1): single EUP push per gate.
    return 0.5 * (jnp.tanh(0.5 * x) + 1.0)


def fastbert_kernel(ids_ref, emb_ref, wih_ref, whh_ref, b_ref, wc_ref, bc_ref,
                    out_ref, x_s, g_s, *, seq_len, batch):
    """Fused embedding gather + hoisted input projection + unrolled LSTM + classifier.

    ids_ref: (B, S)        int32  SMEM
    emb_ref: (V, E)        f32    VMEM (row 0 zeroed -> padding_idx=0)
    wih_ref: (E, 4H)       bf16
    whh_ref: (H, 4H)       bf16
    b_ref:   (1, 4H)       f32    (= b_ih + b_hh)
    wc_ref:  (H, LANE_PAD) bf16   (cols >= C are zero)
    bc_ref:  (1, LANE_PAD) f32
    out_ref: (BP, LANE_PAD) f32   (wrapper slices [:B, :C])
    x_s:     (S*BP, E)     f32    scratch (gathered embeddings, time-major, 8 rows/step)
    g_s:     (S*BP, 4H)    f32    scratch (hoisted input-projection gates)
    """
    S, B = seq_len, batch
    H = whh_ref.shape[0]

    # ---- Fused embedding gather (rows b >= B of each step stay zero) ----
    x_s[...] = jnp.zeros_like(x_s)
    for t in range(S):
        for b in range(B):
            idx = ids_ref[b, t]
            x_s[pl.ds(t * BP + b, 1), :] = emb_ref[pl.ds(idx, 1), :]

    # ---- Hoisted input projection for ALL timesteps: one (S*BP, E)@(E, 4H)
    #      MXU matmul, bias folded in, f32 accumulation, staged in VMEM. ----
    g_s[...] = (jnp.dot(x_s[...].astype(jnp.bfloat16), wih_ref[...],
                        preferred_element_type=jnp.float32)
                + b_ref[...])

    # ---- Fully unrolled recurrence (static S); h/c carried as values
    #      ((BP, H) f32 = 2 vregs each); all gate math in f32. ----
    h = jnp.zeros((BP, H), jnp.float32)
    c = jnp.zeros((BP, H), jnp.float32)
    for t in range(S):
        g = g_s[t * BP:(t + 1) * BP, :] + jnp.dot(
            h.astype(jnp.bfloat16), whh_ref[...],
            preferred_element_type=jnp.float32)                 # (BP, 4H) f32

        # PyTorch gate order [i, f, g, o]; slices at lane multiples of H.
        i_g = _sigmoid(g[:, 0 * H:1 * H])
        f_g = _sigmoid(g[:, 1 * H:2 * H])
        g_g = jnp.tanh(g[:, 2 * H:3 * H])
        o_g = _sigmoid(g[:, 3 * H:4 * H])

        c = f_g * c + i_g * g_g
        h = o_g * jnp.tanh(c)

    # ---- Classifier on ht[-1]; lane-padded output -> unmasked store. ----
    logits = (jnp.dot(h.astype(jnp.bfloat16), wc_ref[...],
                      preferred_element_type=jnp.float32)
              + bc_ref[...])
    out_ref[...] = logits.astype(out_ref.dtype)


def fastbert_forward(input_ids, params):
    emb = params["embedding"]           # (V, E)        f32
    w_ih = params["w_ih_bf16"]          # (E, 4H)       bf16 (pre-cast at init)
    w_hh = params["w_hh_bf16"]          # (H, 4H)       bf16
    b = params["b"]                     # (1, 4H)       f32
    w_c = params["w_c_pad"]             # (H, LANE_PAD) bf16
    b_c = params["b_c_pad"]             # (1, LANE_PAD) f32

    B, S = input_ids.shape
    E = emb.shape[1]
    H = w_hh.shape[0]
    C = params["w_c"].shape[1]

    kernel = functools.partial(fastbert_kernel, seq_len=S, batch=B)

    out = pl.pallas_call(
        kernel,
        out_shape=jax.ShapeDtypeStruct((BP, LANE_PAD), jnp.float32),
        # Single invocation (no grid); ids in SMEM, everything else whole-array VMEM.
        in_specs=[
            pl.BlockSpec(memory_space=pltpu.MemorySpace.SMEM),  # input_ids (B, S)
            pl.BlockSpec(memory_space=pltpu.MemorySpace.VMEM),  # embedding table
            pl.BlockSpec(memory_space=pltpu.MemorySpace.VMEM),  # W_ih
            pl.BlockSpec(memory_space=pltpu.MemorySpace.VMEM),  # W_hh
            pl.BlockSpec(memory_space=pltpu.MemorySpace.VMEM),  # b
            pl.BlockSpec(memory_space=pltpu.MemorySpace.VMEM),  # W_c (padded)
            pl.BlockSpec(memory_space=pltpu.MemorySpace.VMEM),  # b_c (padded)
        ],
        out_specs=pl.BlockSpec(memory_space=pltpu.MemorySpace.VMEM),
        scratch_shapes=[
            pltpu.VMEM((S * BP, E), jnp.float32),       # gathered embeddings
            pltpu.VMEM((S * BP, 4 * H), jnp.float32),   # hoisted gate projections
        ],
    )(input_ids, emb, w_ih, w_hh, b, w_c, b_c)

    return out[:B, :C]


def fastbert_reference(input_ids, params):
    """Pure-JAX f32 reference mirroring PyTorch nn.LSTM semantics."""
    emb = params["embedding"]
    w_ih, w_hh, b = params["w_ih"], params["w_hh"], params["b"]
    w_c, b_c = params["w_c"], params["b_c"]

    B, S = input_ids.shape
    H = w_hh.shape[0]
    x = jnp.take(emb, input_ids, axis=0)               # (B, S, E)

    def step(carry, x_t):
        h, c = carry
        gates = x_t @ w_ih + h @ w_hh + b[0]
        i_g = jax.nn.sigmoid(gates[:, 0 * H:1 * H])
        f_g = jax.nn.sigmoid(gates[:, 1 * H:2 * H])
        g_g = jnp.tanh(gates[:, 2 * H:3 * H])
        o_g = jax.nn.sigmoid(gates[:, 3 * H:4 * H])
        c_new = f_g * c + i_g * g_g
        h_new = o_g * jnp.tanh(c_new)
        return (h_new, c_new), None

    h0 = jnp.zeros((B, H), jnp.float32)
    c0 = jnp.zeros((B, H), jnp.float32)
    (h_T, _), _ = lax.scan(step, (h0, c0), jnp.transpose(x, (1, 0, 2)))
    return h_T @ w_c + b_c[0]


def init_params(key, vocab_size=1000, num_classes=2, embed_dim=128, hidden_dim=256):
    assert num_classes <= LANE_PAD
    k_emb, k_wih, k_whh, k_bih, k_bhh, k_wc, k_bc = jax.random.split(key, 7)

    # nn.Embedding: N(0,1), padding_idx=0 row zeroed.
    emb = jax.random.normal(k_emb, (vocab_size, embed_dim), jnp.float32)
    emb = emb.at[0].set(0.0)

    # nn.LSTM: U(-1/sqrt(H), 1/sqrt(H)); torch shapes W_ih=(4H,E), W_hh=(4H,H).
    s = 1.0 / jnp.sqrt(jnp.float32(hidden_dim))
    w_ih_t = jax.random.uniform(k_wih, (4 * hidden_dim, embed_dim), jnp.float32, -s, s)
    w_hh_t = jax.random.uniform(k_whh, (4 * hidden_dim, hidden_dim), jnp.float32, -s, s)
    b_ih = jax.random.uniform(k_bih, (4 * hidden_dim,), jnp.float32, -s, s)
    b_hh = jax.random.uniform(k_bhh, (4 * hidden_dim,), jnp.float32, -s, s)

    # nn.Linear: U(-1/sqrt(H), 1/sqrt(H)); torch shape W=(C,H).
    w_c_t = jax.random.uniform(k_wc, (num_classes, hidden_dim), jnp.float32, -s, s)
    b_c = jax.random.uniform(k_bc, (num_classes,), jnp.float32, -s, s)

    w_ih = w_ih_t.T                                    # (E, 4H)
    w_hh = w_hh_t.T                                    # (H, 4H)
    w_c = w_c_t.T                                      # (H, C)

    # Kernel-side pre-cast / pre-padded copies (built once, not per forward call).
    w_c_pad = jnp.zeros((hidden_dim, LANE_PAD), jnp.float32).at[:, :num_classes].set(w_c)
    b_c_pad = jnp.zeros((1, LANE_PAD), jnp.float32).at[0, :num_classes].set(b_c)

    return {
        # f32 reference copies
        "embedding": emb,
        "w_ih": w_ih,
        "w_hh": w_hh,
        "b": (b_ih + b_hh)[None, :],                   # (1, 4H)
        "w_c": w_c,
        "b_c": b_c[None, :],
        # kernel copies (bf16 matmul operands, lane-padded classifier)
        "w_ih_bf16": w_ih.astype(jnp.bfloat16),
        "w_hh_bf16": w_hh.astype(jnp.bfloat16),
        "w_c_pad": w_c_pad.astype(jnp.bfloat16),
        "b_c_pad": b_c_pad,
    }


if __name__ == "__main__":
    VOCAB, NUM_CLASSES, EMBED, HIDDEN = 1000, 2, 128, 256
    B, S = 4, 8

    root = jax.random.PRNGKey(0)
    k_params, k_ids = jax.random.split(root)
    params = init_params(k_params, VOCAB, NUM_CLASSES, EMBED, HIDDEN)

    input_ids = jax.random.randint(k_ids, (B, S), 0, VOCAB, dtype=jnp.int32)
    input_ids = input_ids.at[:, -2:].set(0)            # a few padding tokens

    logits = fastbert_forward(input_ids, params)
    logits = jax.block_until_ready(logits)

    ref = fastbert_reference(input_ids, params)
    assert logits.shape == (B, NUM_CLASSES)
    assert jnp.allclose(logits, ref, rtol=2e-2, atol=2e-2), (logits, ref)

    print("KERNEL_OK")
</pallas_src>

<mosaic_0001>
module attributes {stable_mosaic.version = 11 : i64} {
  func.func @fastbert_kernel(%arg0: memref<4x8xi32, #tpu.memory_space<smem>>, %arg1: memref<1000x128xf32, #tpu.memory_space<vmem>>, %arg2: memref<128x1024xbf16, #tpu.memory_space<vmem>>, %arg3: memref<256x1024xbf16, #tpu.memory_space<vmem>>, %arg4: memref<1x1024xf32, #tpu.memory_space<vmem>>, %arg5: memref<256x128xbf16, #tpu.memory_space<vmem>>, %arg6: memref<1x128xf32, #tpu.memory_space<vmem>>, %arg7: memref<8x128xf32, #tpu.memory_space<vmem>>, %arg8: memref<64x128xf32, #tpu.memory_space<vmem>>, %arg9: memref<64x1024xf32, #tpu.memory_space<vmem>>) attributes {dimension_semantics = [], scalar_prefetch = 0 : i64, scratch_operands = 2 : i64, tpu.core_type = #tpu.core_type<tc>} {
    %cst = arith.constant 0.000000e+00 : f32
    %0 = vector.broadcast %cst : f32 to vector<64x128xf32>
    %c0 = arith.constant 0 : index
    %c0_0 = arith.constant 0 : index
    %1 = vector.load %arg8[%c0, %c0_0] : memref<64x128xf32, #tpu.memory_space<vmem>>, vector<64x128xf32>
    tpu.vector_store %arg8[%c0, %c0_0], %0 {strides = array<i32>} : memref<64x128xf32, #tpu.memory_space<vmem>>, vector<64x128xf32>,
    %c0_1 = arith.constant 0 : index
    %c0_2 = arith.constant 0 : index
    %2 = memref.load %arg0[%c0_1, %c0_2] : memref<4x8xi32, #tpu.memory_space<smem>>
    %3 = arith.index_cast %2 : i32 to index
    %c0_3 = arith.constant 0 : index
    %4 = vector.load %arg1[%3, %c0_3] : memref<1000x128xf32, #tpu.memory_space<vmem>>, vector<1x128xf32>
    %c0_4 = arith.constant 0 : index
    %c0_5 = arith.constant 0 : index
    %5 = vector.load %arg8[%c0_4, %c0_5] : memref<64x128xf32, #tpu.memory_space<vmem>>, vector<1x128xf32>
    tpu.vector_store %arg8[%c0_4, %c0_5], %4 {strides = array<i32>} : memref<64x128xf32, #tpu.memory_space<vmem>>, vector<1x128xf32>,
    %c1 = arith.constant 1 : index
    %c0_6 = arith.constant 0 : index
    %6 = memref.load %arg0[%c1, %c0_6] : memref<4x8xi32, #tpu.memory_space<smem>>
    %7 = arith.index_cast %6 : i32 to index
    %c0_7 = arith.constant 0 : index
    %8 = vector.load %arg1[%7, %c0_7] : memref<1000x128xf32, #tpu.memory_space<vmem>>, vector<1x128xf32>
    %c1_8 = arith.constant 1 : index
    %c0_9 = arith.constant 0 : index
    %9 = vector.load %arg8[%c1_8, %c0_9] : memref<64x128xf32, #tpu.memory_space<vmem>>, vector<1x128xf32>
    tpu.vector_store %arg8[%c1_8, %c0_9], %8 {strides = array<i32>} : memref<64x128xf32, #tpu.memory_space<vmem>>, vector<1x128xf32>,
    %c2 = arith.constant 2 : index
    %c0_10 = arith.constant 0 : index
    %10 = memref.load %arg0[%c2, %c0_10] : memref<4x8xi32, #tpu.memory_space<smem>>
    %11 = arith.index_cast %10 : i32 to index
    %c0_11 = arith.constant 0 : index
    %12 = vector.load %arg1[%11, %c0_11] : memref<1000x128xf32, #tpu.memory_space<vmem>>, vector<1x128xf32>
    %c2_12 = arith.constant 2 : index
    %c0_13 = arith.constant 0 : index
    %13 = vector.load %arg8[%c2_12, %c0_13] : memref<64x128xf32, #tpu.memory_space<vmem>>, vector<1x128xf32>
    tpu.vector_store %arg8[%c2_12, %c0_13], %12 {strides = array<i32>} : memref<64x128xf32, #tpu.memory_space<vmem>>, vector<1x128xf32>,
    %c3 = arith.constant 3 : index
    %c0_14 = arith.constant 0 : index
    %14 = memref.load %arg0[%c3, %c0_14] : memref<4x8xi32, #tpu.memory_space<smem>>
    %15 = arith.index_cast %14 : i32 to index
    %c0_15 = arith.constant 0 : index
    %16 = vector.load %arg1[%15, %c0_15] : memref<1000x128xf32, #tpu.memory_space<vmem>>, vector<1x128xf32>
    %c3_16 = arith.constant 3 : index
    %c0_17 = arith.constant 0 : index
    %17 = vector.load %arg8[%c3_16, %c0_17] : memref<64x128xf32, #tpu.memory_space<vmem>>, vector<1x128xf32>
    tpu.vector_store %arg8[%c3_16, %c0_17], %16 {strides = array<i32>} : memref<64x128xf32, #tpu.memory_space<vmem>>, vector<1x128xf32>,
    %c0_18 = arith.constant 0 : index
    %c1_19 = arith.constant 1 : index
    %18 = memref.load %arg0[%c0_18, %c1_19] : memref<4x8xi32, #tpu.memory_space<smem>>
    %19 = arith.index_cast %18 : i32 to index
    %c0_20 = arith.constant 0 : index
    %20 = vector.load %arg1[%19, %c0_20] : memref<1000x128xf32, #tpu.memory_space<vmem>>, vector<1x128xf32>
    %c8 = arith.constant 8 : index
    %c0_21 = arith.constant 0 : index
    %21 = vector.load %arg8[%c8, %c0_21] : memref<64x128xf32, #tpu.memory_space<vmem>>, vector<1x128xf32>
    tpu.vector_store %arg8[%c8, %c0_21], %20 {strides = array<i32>} : memref<64x128xf32, #tpu.memory_space<vmem>>, vector<1x128xf32>,
    %c1_22 = arith.constant 1 : index
    %c1_23 = arith.constant 1 : index
    %22 = memref.load %arg0[%c1_22, %c1_23] : memref<4x8xi32, #tpu.memory_space<smem>>
    %23 = arith.index_cast %22 : i32 to index
    %c0_24 = arith.constant 0 : index
    %24 = vector.load %arg1[%23, %c0_24] : memref<1000x128xf32, #tpu.memory_space<vmem>>, vector<1x128xf32>
    %c9 = arith.constant 9 : index
    %c0_25 = arith.constant 0 : index
    %25 = vector.load %arg8[%c9, %c0_25] : memref<64x128xf32, #tpu.memory_space<vmem>>, vector<1x128xf32>
    tpu.vector_store %arg8[%c9, %c0_25], %24 {strides = array<i32>} : memref<64x128xf32, #tpu.memory_space<vmem>>, vector<1x128xf32>,
    %c2_26 = arith.constant 2 : index
    %c1_27 = arith.constant 1 : index
    %26 = memref.load %arg0[%c2_26, %c1_27] : memref<4x8xi32, #tpu.memory_space<smem>>
    %27 = arith.index_cast %26 : i32 to index
    %c0_28 = arith.constant 0 : index
    %28 = vector.load %arg1[%27, %c0_28] : memref<1000x128xf32, #tpu.memory_space<vmem>>, vector<1x128xf32>
    %c10 = arith.constant 10 : index
    %c0_29 = arith.constant 0 : index
    %29 = vector.load %arg8[%c10, %c0_29] : memref<64x128xf32, #tpu.memory_space<vmem>>, vector<1x128xf32>
    tpu.vector_store %arg8[%c10, %c0_29], %28 {strides = array<i32>} : memref<64x128xf32, #tpu.memory_space<vmem>>, vector<1x128xf32>,
    %c3_30 = arith.constant 3 : index
    %c1_31 = arith.constant 1 : index
    %30 = memref.load %arg0[%c3_30, %c1_31] : memref<4x8xi32, #tpu.memory_space<smem>>
    %31 = arith.index_cast %30 : i32 to index
    %c0_32 = arith.constant 0 : index
    %32 = vector.load %arg1[%31, %c0_32] : memref<1000x128xf32, #tpu.memory_space<vmem>>, vector<1x128xf32>
    %c11 = arith.constant 11 : index
    %c0_33 = arith.constant 0 : index
    %33 = vector.load %arg8[%c11, %c0_33] : memref<64x128xf32, #tpu.memory_space<vmem>>, vector<1x128xf32>
    tpu.vector_store %arg8[%c11, %c0_33], %32 {strides = array<i32>} : memref<64x128xf32, #tpu.memory_space<vmem>>, vector<1x128xf32>,
    %c0_34 = arith.constant 0 : index
    %c2_35 = arith.constant 2 : index
    %34 = memref.load %arg0[%c0_34, %c2_35] : memref<4x8xi32, #tpu.memory_space<smem>>
    %35 = arith.index_cast %34 : i32 to index
    %c0_36 = arith.constant 0 : index
    %36 = vector.load %arg1[%35, %c0_36] : memref<1000x128xf32, #tpu.memory_space<vmem>>, vector<1x128xf32>
    %c16 = arith.constant 16 : index
    %c0_37 = arith.constant 0 : index
    %37 = vector.load %arg8[%c16, %c0_37] : memref<64x128xf32, #tpu.memory_space<vmem>>, vector<1x128xf32>
    tpu.vector_store %arg8[%c16, %c0_37], %36 {strides = array<i32>} : memref<64x128xf32, #tpu.memory_space<vmem>>, vector<1x128xf32>,
    %c1_38 = arith.constant 1 : index
    %c2_39 = arith.constant 2 : index
    %38 = memref.load %arg0[%c1_38, %c2_39] : memref<4x8xi32, #tpu.memory_space<smem>>
    %39 = arith.index_cast %38 : i32 to index
    %c0_40 = arith.constant 0 : index
    %40 = vector.load %arg1[%39, %c0_40] : memref<1000x128xf32, #tpu.memory_space<vmem>>, vector<1x128xf32>
    %c17 = arith.constant 17 : index
    %c0_41 = arith.constant 0 : index
    %41 = vector.load %arg8[%c17, %c0_41] : memref<64x128xf32, #tpu.memory_space<vmem>>, vector<1x128xf32>
    tpu.vector_store %arg8[%c17, %c0_41], %40 {strides = array<i32>} : memref<64x128xf32, #tpu.memory_space<vmem>>, vector<1x128xf32>,
    %c2_42 = arith.constant 2 : index
    %c2_43 = arith.constant 2 : index
    %42 = memref.load %arg0[%c2_42, %c2_43] : memref<4x8xi32, #tpu.memory_space<smem>>
    %43 = arith.index_cast %42 : i32 to index
    %c0_44 = arith.constant 0 : index
    %44 = vector.load %arg1[%43, %c0_44] : memref<1000x128xf32, #tpu.memory_space<vmem>>, vector<1x128xf32>
    %c18 = arith.constant 18 : index
    %c0_45 = arith.constant 0 : index
    %45 = vector.load %arg8[%c18, %c0_45] : memref<64x128xf32, #tpu.memory_space<vmem>>, vector<1x128xf32>
    tpu.vector_store %arg8[%c18, %c0_45], %44 {strides = array<i32>} : memref<64x128xf32, #tpu.memory_space<vmem>>, vector<1x128xf32>,
    %c3_46 = arith.constant 3 : index
    %c2_47 = arith.constant 2 : index
    %46 = memref.load %arg0[%c3_46, %c2_47] : memref<4x8xi32, #tpu.memory_space<smem>>
    %47 = arith.index_cast %46 : i32 to index
    %c0_48 = arith.constant 0 : index
    %48 = vector.load %arg1[%47, %c0_48] : memref<1000x128xf32, #tpu.memory_space<vmem>>, vector<1x128xf32>
    %c19 = arith.constant 19 : index
    %c0_49 = arith.constant 0 : index
    %49 = vector.load %arg8[%c19, %c0_49] : memref<64x128xf32, #tpu.memory_space<vmem>>, vector<1x128xf32>
    tpu.vector_store %arg8[%c19, %c0_49], %48 {strides = array<i32>} : memref<64x128xf32, #tpu.memory_space<vmem>>, vector<1x128xf32>,
    %c0_50 = arith.constant 0 : index
    %c3_51 = arith.constant 3 : index
    %50 = memref.load %arg0[%c0_50, %c3_51] : memref<4x8xi32, #tpu.memory_space<smem>>
    %51 = arith.index_cast %50 : i32 to index
    %c0_52 = arith.constant 0 : index
    %52 = vector.load %arg1[%51, %c0_52] : memref<1000x128xf32, #tpu.memory_space<vmem>>, vector<1x128xf32>
    %c24 = arith.constant 24 : index
    %c0_53 = arith.constant 0 : index
    %53 = vector.load %arg8[%c24, %c0_53] : memref<64x128xf32, #tpu.memory_space<vmem>>, vector<1x128xf32>
    tpu.vector_store %arg8[%c24, %c0_53], %52 {strides = array<i32>} : memref<64x128xf32, #tpu.memory_space<vmem>>, vector<1x128xf32>,
    %c1_54 = arith.constant 1 : index
    %c3_55 = arith.constant 3 : index
    %54 = memref.load %arg0[%c1_54, %c3_55] : memref<4x8xi32, #tpu.memory_space<smem>>
    %55 = arith.index_cast %54 : i32 to index
    %c0_56 = arith.constant 0 : index
    %56 = vector.load %arg1[%55, %c0_56] : memref<1000x128xf32, #tpu.memory_space<vmem>>, vector<1x128xf32>
    %c25 = arith.constant 25 : index
    %c0_57 = arith.constant 0 : index
    %57 = vector.load %arg8[%c25, %c0_57] : memref<64x128xf32, #tpu.memory_space<vmem>>, vector<1x128xf32>
    tpu.vector_store %arg8[%c25, %c0_57], %56 {strides = array<i32>} : memref<64x128xf32, #tpu.memory_space<vmem>>, vector<1x128xf32>,
    %c2_58 = arith.constant 2 : index
    %c3_59 = arith.constant 3 : index
    %58 = memref.load %arg0[%c2_58, %c3_59] : memref<4x8xi32, #tpu.memory_space<smem>>
    %59 = arith.index_cast %58 : i32 to index
    %c0_60 = arith.constant 0 : index
    %60 = vector.load %arg1[%59, %c0_60] : memref<1000x128xf32, #tpu.memory_space<vmem>>, vector<1x128xf32>
    %c26 = arith.constant 26 : index
    %c0_61 = arith.constant 0 : index
    %61 = vector.load %arg8[%c26, %c0_61] : memref<64x128xf32, #tpu.memory_space<vmem>>, vector<1x128xf32>
    tpu.vector_store %arg8[%c26, %c0_61], %60 {strides = array<i32>} : memref<64x128xf32, #tpu.memory_space<vmem>>, vector<1x128xf32>,
    %c3_62 = arith.constant 3 : index
    %c3_63 = arith.constant 3 : index
    %62 = memref.load %arg0[%c3_62, %c3_63] : memref<4x8xi32, #tpu.memory_space<smem>>
    %63 = arith.index_cast %62 : i32 to index
    %c0_64 = arith.constant 0 : index
    %64 = vector.load %arg1[%63, %c0_64] : memref<1000x128xf32, #tpu.memory_space<vmem>>, vector<1x128xf32>
    %c27 = arith.constant 27 : index
    %c0_65 = arith.constant 0 : index
    %65 = vector.load %arg8[%c27, %c0_65] : memref<64x128xf32, #tpu.memory_space<vmem>>, vector<1x128xf32>
    tpu.vector_store %arg8[%c27, %c0_65], %64 {strides = array<i32>} : memref<64x128xf32, #tpu.memory_space<vmem>>, vector<1x128xf32>,
    %c0_66 = arith.constant 0 : index
    %c4 = arith.constant 4 : index
    %66 = memref.load %arg0[%c0_66, %c4] : memref<4x8xi32, #tpu.memory_space<smem>>
    %67 = arith.index_cast %66 : i32 to index
    %c0_67 = arith.constant 0 : index
    %68 = vector.load %arg1[%67, %c0_67] : memref<1000x128xf32, #tpu.memory_space<vmem>>, vector<1x128xf32>
    %c32 = arith.constant 32 : index
    %c0_68 = arith.constant 0 : index
    %69 = vector.load %arg8[%c32, %c0_68] : memref<64x128xf32, #tpu.memory_space<vmem>>, vector<1x128xf32>
    tpu.vector_store %arg8[%c32, %c0_68], %68 {strides = array<i32>} : memref<64x128xf32, #tpu.memory_space<vmem>>, vector<1x128xf32>,
    %c1_69 = arith.constant 1 : index
    %c4_70 = arith.constant 4 : index
    %70 = memref.load %arg0[%c1_69, %c4_70] : memref<4x8xi32, #tpu.memory_space<smem>>
    %71 = arith.index_cast %70 : i32 to index
    %c0_71 = arith.constant 0 : index
    %72 = vector.load %arg1[%71, %c0_71] : memref<1000x128xf32, #tpu.memory_space<vmem>>, vector<1x128xf32>
    %c33 = arith.constant 33 : index
    %c0_72 = arith.constant 0 : index
    %73 = vector.load %arg8[%c33, %c0_72] : memref<64x128xf32, #tpu.memory_space<vmem>>, vector<1x128xf32>
    tpu.vector_store %arg8[%c33, %c0_72], %72 {strides = array<i32>} : memref<64x128xf32, #tpu.memory_space<vmem>>, vector<1x128xf32>,
    %c2_73 = arith.constant 2 : index
    %c4_74 = arith.constant 4 : index
    %74 = memref.load %arg0[%c2_73, %c4_74] : memref<4x8xi32, #tpu.memory_space<smem>>
    %75 = arith.index_cast %74 : i32 to index
    %c0_75 = arith.constant 0 : index
    %76 = vector.load %arg1[%75, %c0_75] : memref<1000x128xf32, #tpu.memory_space<vmem>>, vector<1x128xf32>
    %c34 = arith.constant 34 : index
    %c0_76 = arith.constant 0 : index
    %77 = vector.load %arg8[%c34, %c0_76] : memref<64x128xf32, #tpu.memory_space<vmem>>, vector<1x128xf32>
    tpu.vector_store %arg8[%c34, %c0_76], %76 {strides = array<i32>} : memref<64x128xf32, #tpu.memory_space<vmem>>, vector<1x128xf32>,
    %c3_77 = arith.constant 3 : index
    %c4_78 = arith.constant 4 : index
    %78 = memref.load %arg0[%c3_77, %c4_78] : memref<4x8xi32, #tpu.memory_space<smem>>
    %79 = arith.index_cast %78 : i32 to index
    %c0_79 = arith.constant 0 : index
    %80 = vector.load %arg1[%79, %c0_79] : memref<1000x128xf32, #tpu.memory_space<vmem>>, vector<1x128xf32>
    %c35 = arith.constant 35 : index
    %c0_80 = arith.constant 0 : index
    %81 = vector.load %arg8[%c35, %c0_80] : memref<64x128xf32, #tpu.memory_space<vmem>>, vector<1x128xf32>
    tpu.vector_store %arg8[%c35, %c0_80], %80 {strides = array<i32>} : memref<64x128xf32, #tpu.memory_space<vmem>>, vector<1x128xf32>,
    %c0_81 = arith.constant 0 : index
    %c5 = arith.constant 5 : index
    %82 = memref.load %arg0[%c0_81, %c5] : memref<4x8xi32, #tpu.memory_space<smem>>
    %83 = arith.index_cast %82 : i32 to index
    %c0_82 = arith.constant 0 : index
    %84 = vector.load %arg1[%83, %c0_82] : memref<1000x128xf32, #tpu.memory_space<vmem>>, vector<1x128xf32>
    %c40 = arith.constant 40 : index
    %c0_83 = arith.constant 0 : index
    %85 = vector.load %arg8[%c40, %c0_83] : memref<64x128xf32, #tpu.memory_space<vmem>>, vector<1x128xf32>
    tpu.vector_store %arg8[%c40, %c0_83], %84 {strides = array<i32>} : memref<64x128xf32, #tpu.memory_space<vmem>>, vector<1x128xf32>,
    %c1_84 = arith.constant 1 : index
    %c5_85 = arith.constant 5 : index
    %86 = memref.load %arg0[%c1_84, %c5_85] : memref<4x8xi32, #tpu.memory_space<smem>>
    %87 = arith.index_cast %86 : i32 to index
    %c0_86 = arith.constant 0 : index
    %88 = vector.load %arg1[%87, %c0_86] : memref<1000x128xf32, #tpu.memory_space<vmem>>, vector<1x128xf32>
    %c41 = arith.constant 41 : index
    %c0_87 = arith.constant 0 : index
    %89 = vector.load %arg8[%c41, %c0_87] : memref<64x128xf32, #tpu.memory_space<vmem>>, vector<1x128xf32>
    tpu.vector_store %arg8[%c41, %c0_87], %88 {strides = array<i32>} : memref<64x128xf32, #tpu.memory_space<vmem>>, vector<1x128xf32>,
    %c2_88 = arith.constant 2 : index
    %c5_89 = arith.constant 5 : index
    %90 = memref.load %arg0[%c2_88, %c5_89] : memref<4x8xi32, #tpu.memory_space<smem>>
    %91 = arith.index_cast %90 : i32 to index
    %c0_90 = arith.constant 0 : index
    %92 = vector.load %arg1[%91, %c0_90] : memref<1000x128xf32, #tpu.memory_space<vmem>>, vector<1x128xf32>
    %c42 = arith.constant 42 : index
    %c0_91 = arith.constant 0 : index
    %93 = vector.load %arg8[%c42, %c0_91] : memref<64x128xf32, #tpu.memory_space<vmem>>, vector<1x128xf32>
    tpu.vector_store %arg8[%c42, %c0_91], %92 {strides = array<i32>} : memref<64x128xf32, #tpu.memory_space<vmem>>, vector<1x128xf32>,
    %c3_92 = arith.constant 3 : index
    %c5_93 = arith.constant 5 : index
    %94 = memref.load %arg0[%c3_92, %c5_93] : memref<4x8xi32, #tpu.memory_space<smem>>
    %95 = arith.index_cast %94 : i32 to index
    %c0_94 = arith.constant 0 : index
    %96 = vector.load %arg1[%95, %c0_94] : memref<1000x128xf32, #tpu.memory_space<vmem>>, vector<1x128xf32>
    %c43 = arith.constant 43 : index
    %c0_95 = arith.constant 0 : index
    %97 = vector.load %arg8[%c43, %c0_95] : memref<64x128xf32, #tpu.memory_space<vmem>>, vector<1x128xf32>
    tpu.vector_store %arg8[%c43, %c0_95], %96 {strides = array<i32>} : memref<64x128xf32, #tpu.memory_space<vmem>>, vector<1x128xf32>,
    %c0_96 = arith.constant 0 : index
    %c6 = arith.constant 6 : index
    %98 = memref.load %arg0[%c0_96, %c6] : memref<4x8xi32, #tpu.memory_space<smem>>
    %99 = arith.index_cast %98 : i32 to index
    %c0_97 = arith.constant 0 : index
    %100 = vector.load %arg1[%99, %c0_97] : memref<1000x128xf32, #tpu.memory_space<vmem>>, vector<1x128xf32>
    %c48 = arith.constant 48 : index
    %c0_98 = arith.constant 0 : index
    %101 = vector.load %arg8[%c48, %c0_98] : memref<64x128xf32, #tpu.memory_space<vmem>>, vector<1x128xf32>
    tpu.vector_store %arg8[%c48, %c0_98], %100 {strides = array<i32>} : memref<64x128xf32, #tpu.memory_space<vmem>>, vector<1x128xf32>,
    %c1_99 = arith.constant 1 : index
    %c6_100 = arith.constant 6 : index
    %102 = memref.load %arg0[%c1_99, %c6_100] : memref<4x8xi32, #tpu.memory_space<smem>>
    %103 = arith.index_cast %102 : i32 to index
    %c0_101 = arith.constant 0 : index
    %104 = vector.load %arg1[%103, %c0_101] : memref<1000x128xf32, #tpu.memory_space<vmem>>, vector<1x128xf32>
    %c49 = arith.constant 49 : index
    %c0_102 = arith.constant 0 : index
    %105 = vector.load %arg8[%c49, %c0_102] : memref<64x128xf32, #tpu.memory_space<vmem>>, vector<1x128xf32>
    tpu.vector_store %arg8[%c49, %c0_102], %104 {strides = array<i32>} : memref<64x128xf32, #tpu.memory_space<vmem>>, vector<1x128xf32>,
    %c2_103 = arith.constant 2 : index
    %c6_104 = arith.constant 6 : index
    %106 = memref.load %arg0[%c2_103, %c6_104] : memref<4x8xi32, #tpu.memory_space<smem>>
    %107 = arith.index_cast %106 : i32 to index
    %c0_105 = arith.constant 0 : index
    %108 = vector.load %arg1[%107, %c0_105] : memref<1000x128xf32, #tpu.memory_space<vmem>>, vector<1x128xf32>
    %c50 = arith.constant 50 : index
    %c0_106 = arith.constant 0 : index
    %109 = vector.load %arg8[%c50, %c0_106] : memref<64x128xf32, #tpu.memory_space<vmem>>, vector<1x128xf32>
    tpu.vector_store %arg8[%c50, %c0_106], %108 {strides = array<i32>} : memref<64x128xf32, #tpu.memory_space<vmem>>, vector<1x128xf32>,
    %c3_107 = arith.constant 3 : index
    %c6_108 = arith.constant 6 : index
    %110 = memref.load %arg0[%c3_107, %c6_108] : memref<4x8xi32, #tpu.memory_space<smem>>
    %111 = arith.index_cast %110 : i32 to index
    %c0_109 = arith.constant 0 : index
    %112 = vector.load %arg1[%111, %c0_109] : memref<1000x128xf32, #tpu.memory_space<vmem>>, vector<1x128xf32>
    %c51 = arith.constant 51 : index
    %c0_110 = arith.constant 0 : index
    %113 = vector.load %arg8[%c51, %c0_110] : memref<64x128xf32, #tpu.memory_space<vmem>>, vector<1x128xf32>
    tpu.vector_store %arg8[%c51, %c0_110], %112 {strides = array<i32>} : memref<64x128xf32, #tpu.memory_space<vmem>>, vector<1x128xf32>,
    %c0_111 = arith.constant 0 : index
    %c7 = arith.constant 7 : index
    %114 = memref.load %arg0[%c0_111, %c7] : memref<4x8xi32, #tpu.memory_space<smem>>
    %115 = arith.index_cast %114 : i32 to index
    %c0_112 = arith.constant 0 : index
    %116 = vector.load %arg1[%115, %c0_112] : memref<1000x128xf32, #tpu.memory_space<vmem>>, vector<1x128xf32>
    %c56 = arith.constant 56 : index
    %c0_113 = arith.constant 0 : index
    %117 = vector.load %arg8[%c56, %c0_113] : memref<64x128xf32, #tpu.memory_space<vmem>>, vector<1x128xf32>
    tpu.vector_store %arg8[%c56, %c0_113], %116 {strides = array<i32>} : memref<64x128xf32, #tpu.memory_space<vmem>>, vector<1x128xf32>,
    %c1_114 = arith.constant 1 : index
    %c7_115 = arith.constant 7 : index
    %118 = memref.load %arg0[%c1_114, %c7_115] : memref<4x8xi32, #tpu.memory_space<smem>>
    %119 = arith.index_cast %118 : i32 to index
    %c0_116 = arith.constant 0 : index
    %120 = vector.load %arg1[%119, %c0_116] : memref<1000x128xf32, #tpu.memory_space<vmem>>, vector<1x128xf32>
    %c57 = arith.constant 57 : index
    %c0_117 = arith.constant 0 : index
    %121 = vector.load %arg8[%c57, %c0_117] : memref<64x128xf32, #tpu.memory_space<vmem>>, vector<1x128xf32>
    tpu.vector_store %arg8[%c57, %c0_117], %120 {strides = array<i32>} : memref<64x128xf32, #tpu.memory_space<vmem>>, vector<1x128xf32>,
    %c2_118 = arith.constant 2 : index
    %c7_119 = arith.constant 7 : index
    %122 = memref.load %arg0[%c2_118, %c7_119] : memref<4x8xi32, #tpu.memory_space<smem>>
    %123 = arith.index_cast %122 : i32 to index
    %c0_120 = arith.constant 0 : index
    %124 = vector.load %arg1[%123, %c0_120] : memref<1000x128xf32, #tpu.memory_space<vmem>>, vector<1x128xf32>
    %c58 = arith.constant 58 : index
    %c0_121 = arith.constant 0 : index
    %125 = vector.load %arg8[%c58, %c0_121] : memref<64x128xf32, #tpu.memory_space<vmem>>, vector<1x128xf32>
    tpu.vector_store %arg8[%c58, %c0_121], %124 {strides = array<i32>} : memref<64x128xf32, #tpu.memory_space<vmem>>, vector<1x128xf32>,
    %c3_122 = arith.constant 3 : index
    %c7_123 = arith.constant 7 : index
    %126 = memref.load %arg0[%c3_122, %c7_123] : memref<4x8xi32, #tpu.memory_space<smem>>
    %127 = arith.index_cast %126 : i32 to index
    %c0_124 = arith.constant 0 : index
    %128 = vector.load %arg1[%127, %c0_124] : memref<1000x128xf32, #tpu.memory_space<vmem>>, vector<1x128xf32>
    %c59 = arith.constant 59 : index
    %c0_125 = arith.constant 0 : index
    %129 = vector.load %arg8[%c59, %c0_125] : memref<64x128xf32, #tpu.memory_space<vmem>>, vector<1x128xf32>
    tpu.vector_store %arg8[%c59, %c0_125], %128 {strides = array<i32>} : memref<64x128xf32, #tpu.memory_space<vmem>>, vector<1x128xf32>,
    %c0_126 = arith.constant 0 : index
    %c0_127 = arith.constant 0 : index
    %130 = vector.load %arg8[%c0_126, %c0_127] : memref<64x128xf32, #tpu.memory_space<vmem>>, vector<64x128xf32>
    %131 = arith.truncf %130 : vector<64x128xf32> to vector<64x128xbf16>
    %c0_128 = arith.constant 0 : index
    %c0_129 = arith.constant 0 : index
    %132 = vector.load %arg2[%c0_128, %c0_129] : memref<128x1024xbf16, #tpu.memory_space<vmem>>, vector<128x1024xbf16>
    %cst_130 = arith.constant dense<0.000000e+00> : vector<64x1024xf32>
    %133 = tpu.matmul %131, %132, %cst_130 {dimension_numbers = #tpu.dot_dimension_numbers<[1], [0], [0], [1], [0, 0, 1, 1], [], []>} : vector<64x128xbf16>, vector<128x1024xbf16>, vector<64x1024xf32> -> vector<64x1024xf32>
    %c0_131 = arith.constant 0 : index
    %c0_132 = arith.constant 0 : index
    %134 = vector.load %arg4[%c0_131, %c0_132] : memref<1x1024xf32, #tpu.memory_space<vmem>>, vector<1x1024xf32>
    %135 = vector.broadcast %134 : vector<1x1024xf32> to vector<64x1024xf32>
    %136 = arith.addf %133, %135 : vector<64x1024xf32>
    %c0_133 = arith.constant 0 : index
    %c0_134 = arith.constant 0 : index
    %137 = vector.load %arg9[%c0_133, %c0_134] : memref<64x1024xf32, #tpu.memory_space<vmem>>, vector<64x1024xf32>
    tpu.vector_store %arg9[%c0_133, %c0_134], %136 {strides = array<i32>} : memref<64x1024xf32, #tpu.memory_space<vmem>>, vector<64x1024xf32>,
    %cst_135 = arith.constant 0.000000e+00 : f32
    %138 = vector.broadcast %cst_135 : f32 to vector<8x256xf32>
    %cst_136 = arith.constant 0.000000e+00 : f32
    %139 = vector.broadcast %cst_136 : f32 to vector<8x256xf32>
    %c0_137 = arith.constant 0 : index
    %c0_138 = arith.constant 0 : index
    %140 = vector.load %arg9[%c0_137, %c0_138] : memref<64x1024xf32, #tpu.memory_space<vmem>>, vector<8x1024xf32>
    %141 = arith.truncf %138 : vector<8x256xf32> to vector<8x256xbf16>
    %c0_139 = arith.constant 0 : index
    %c0_140 = arith.constant 0 : index
    %142 = vector.load %arg3[%c0_139, %c0_140] : memref<256x1024xbf16, #tpu.memory_space<vmem>>, vector<256x1024xbf16>
    %cst_141 = arith.constant dense<0.000000e+00> : vector<8x1024xf32>
    %143 = tpu.matmul %141, %142, %cst_141 {dimension_numbers = #tpu.dot_dimension_numbers<[1], [0], [0], [1], [0, 0, 1, 1], [], []>} : vector<8x256xbf16>, vector<256x1024xbf16>, vector<8x1024xf32> -> vector<8x1024xf32>
    %144 = arith.addf %140, %143 : vector<8x1024xf32>
    %145 = vector.extract_strided_slice %144 {offsets = [0, 0], sizes = [8, 256], strides = [1, 1]} : vector<8x1024xf32> to vector<8x256xf32>
    %cst_142 = arith.constant 5.000000e-01 : f32
    %146 = vector.broadcast %cst_142 : f32 to vector<8x256xf32>
    %147 = arith.mulf %146, %145 : vector<8x256xf32>
    %148 = math.tanh %147 : vector<8x256xf32>
    %cst_143 = arith.constant 1.000000e+00 : f32
    %149 = vector.broadcast %cst_143 : f32 to vector<8x256xf32>
    %150 = arith.addf %148, %149 : vector<8x256xf32>
    %cst_144 = arith.constant 5.000000e-01 : f32
    %151 = vector.broadcast %cst_144 : f32 to vector<8x256xf32>
    %152 = arith.mulf %151, %150 : vector<8x256xf32>
    %153 = vector.extract_strided_slice %144 {offsets = [0, 256], sizes = [8, 256], strides = [1, 1]} : vector<8x1024xf32> to vector<8x256xf32>
    %cst_145 = arith.constant 5.000000e-01 : f32
    %154 = vector.broadcast %cst_145 : f32 to vector<8x256xf32>
    %155 = arith.mulf %154, %153 : vector<8x256xf32>
    %156 = math.tanh %155 : vector<8x256xf32>
    %cst_146 = arith.constant 1.000000e+00 : f32
    %157 = vector.broadcast %cst_146 : f32 to vector<8x256xf32>
    %158 = arith.addf %156, %157 : vector<8x256xf32>
    %cst_147 = arith.constant 5.000000e-01 : f32
    %159 = vector.broadcast %cst_147 : f32 to vector<8x256xf32>
    %160 = arith.mulf %159, %158 : vector<8x256xf32>
    %161 = vector.extract_strided_slice %144 {offsets = [0, 512], sizes = [8, 256], strides = [1, 1]} : vector<8x1024xf32> to vector<8x256xf32>
    %162 = math.tanh %161 : vector<8x256xf32>
    %163 = vector.extract_strided_slice %144 {offsets = [0, 768], sizes = [8, 256], strides = [1, 1]} : vector<8x1024xf32> to vector<8x256xf32>
    %cst_148 = arith.constant 5.000000e-01 : f32
    %164 = vector.broadcast %cst_148 : f32 to vector<8x256xf32>
    %165 = arith.mulf %164, %163 : vector<8x256xf32>
    %166 = math.tanh %165 : vector<8x256xf32>
    %cst_149 = arith.constant 1.000000e+00 : f32
    %167 = vector.broadcast %cst_149 : f32 to vector<8x256xf32>
    %168 = arith.addf %166, %167 : vector<8x256xf32>
    %cst_150 = arith.constant 5.000000e-01 : f32
    %169 = vector.broadcast %cst_150 : f32 to vector<8x256xf32>
    %170 = arith.mulf %169, %168 : vector<8x256xf32>
    %171 = arith.mulf %160, %139 : vector<8x256xf32>
    %172 = arith.mulf %152, %162 : vector<8x256xf32>
    %173 = arith.addf %171, %172 : vector<8x256xf32>
    %174 = math.tanh %173 : vector<8x256xf32>
    %175 = arith.mulf %170, %174 : vector<8x256xf32>
    %c8_151 = arith.constant 8 : index
    %c0_152 = arith.constant 0 : index
    %176 = vector.load %arg9[%c8_151, %c0_152] : memref<64x1024xf32, #tpu.memory_space<vmem>>, vector<8x1024xf32>
    %177 = arith.truncf %175 : vector<8x256xf32> to vector<8x256xbf16>
    %c0_153 = arith.constant 0 : index
    %c0_154 = arith.constant 0 : index
    %178 = vector.load %arg3[%c0_153, %c0_154] : memref<256x1024xbf16, #tpu.memory_space<vmem>>, vector<256x1024xbf16>
    %cst_155 = arith.constant dense<0.000000e+00> : vector<8x1024xf32>
    %179 = tpu.matmul %177, %178, %cst_155 {dimension_numbers = #tpu.dot_dimension_numbers<[1], [0], [0], [1], [0, 0, 1, 1], [], []>} : vector<8x256xbf16>, vector<256x1024xbf16>, vector<8x1024xf32> -> vector<8x1024xf32>
    %180 = arith.addf %176, %179 : vector<8x1024xf32>
    %181 = vector.extract_strided_slice %180 {offsets = [0, 0], sizes = [8, 256], strides = [1, 1]} : vector<8x1024xf32> to vector<8x256xf32>
    %cst_156 = arith.constant 5.000000e-01 : f32
    %182 = vector.broadcast %cst_156 : f32 to vector<8x256xf32>
    %183 = arith.mulf %182, %181 : vector<8x256xf32>
    %184 = math.tanh %183 : vector<8x256xf32>
    %cst_157 = arith.constant 1.000000e+00 : f32
    %185 = vector.broadcast %cst_157 : f32 to vector<8x256xf32>
    %186 = arith.addf %184, %185 : vector<8x256xf32>
    %cst_158 = arith.constant 5.000000e-01 : f32
    %187 = vector.broadcast %cst_158 : f32 to vector<8x256xf32>
    %188 = arith.mulf %187, %186 : vector<8x256xf32>
    %189 = vector.extract_strided_slice %180 {offsets = [0, 256], sizes = [8, 256], strides = [1, 1]} : vector<8x1024xf32> to vector<8x256xf32>
    %cst_159 = arith.constant 5.000000e-01 : f32
    %190 = vector.broadcast %cst_159 : f32 to vector<8x256xf32>
    %191 = arith.mulf %190, %189 : vector<8x256xf32>
    %192 = math.tanh %191 : vector<8x256xf32>
    %cst_160 = arith.constant 1.000000e+00 : f32
    %193 = vector.broadcast %cst_160 : f32 to vector<8x256xf32>
    %194 = arith.addf %192, %193 : vector<8x256xf32>
    %cst_161 = arith.constant 5.000000e-01 : f32
    %195 = vector.broadcast %cst_161 : f32 to vector<8x256xf32>
    %196 = arith.mulf %195, %194 : vector<8x256xf32>
    %197 = vector.extract_strided_slice %180 {offsets = [0, 512], sizes = [8, 256], strides = [1, 1]} : vector<8x1024xf32> to vector<8x256xf32>
    %198 = math.tanh %197 : vector<8x256xf32>
    %199 = vector.extract_strided_slice %180 {offsets = [0, 768], sizes = [8, 256], strides = [1, 1]} : vector<8x1024xf32> to vector<8x256xf32>
    %cst_162 = arith.constant 5.000000e-01 : f32
    %200 = vector.broadcast %cst_162 : f32 to vector<8x256xf32>
    %201 = arith.mulf %200, %199 : vector<8x256xf32>
    %202 = math.tanh %201 : vector<8x256xf32>
    %cst_163 = arith.constant 1.000000e+00 : f32
    %203 = vector.broadcast %cst_163 : f32 to vector<8x256xf32>
    %204 = arith.addf %202, %203 : vector<8x256xf32>
    %cst_164 = arith.constant 5.000000e-01 : f32
    %205 = vector.broadcast %cst_164 : f32 to vector<8x256xf32>
    %206 = arith.mulf %205, %204 : vector<8x256xf32>
    %207 = arith.mulf %196, %173 : vector<8x256xf32>
    %208 = arith.mulf %188, %198 : vector<8x256xf32>
    %209 = arith.addf %207, %208 : vector<8x256xf32>
    %210 = math.tanh %209 : vector<8x256xf32>
    %211 = arith.mulf %206, %210 : vector<8x256xf32>
    %c16_165 = arith.constant 16 : index
    %c0_166 = arith.constant 0 : index
    %212 = vector.load %arg9[%c16_165, %c0_166] : memref<64x1024xf32, #tpu.memory_space<vmem>>, vector<8x1024xf32>
    %213 = arith.truncf %211 : vector<8x256xf32> to vector<8x256xbf16>
    %c0_167 = arith.constant 0 : index
    %c0_168 = arith.constant 0 : index
    %214 = vector.load %arg3[%c0_167, %c0_168] : memref<256x1024xbf16, #tpu.memory_space<vmem>>, vector<256x1024xbf16>
    %cst_169 = arith.constant dense<0.000000e+00> : vector<8x1024xf32>
    %215 = tpu.matmul %213, %214, %cst_169 {dimension_numbers = #tpu.dot_dimension_numbers<[1], [0], [0], [1], [0, 0, 1, 1], [], []>} : vector<8x256xbf16>, vector<256x1024xbf16>, vector<8x1024xf32> -> vector<8x1024xf32>
    %216 = arith.addf %212, %215 : vector<8x1024xf32>
    %217 = vector.extract_strided_slice %216 {offsets = [0, 0], sizes = [8, 256], strides = [1, 1]} : vector<8x1024xf32> to vector<8x256xf32>
    %cst_170 = arith.constant 5.000000e-01 : f32
    %218 = vector.broadcast %cst_170 : f32 to vector<8x256xf32>
    %219 = arith.mulf %218, %217 : vector<8x256xf32>
    %220 = math.tanh %219 : vector<8x256xf32>
    %cst_171 = arith.constant 1.000000e+00 : f32
    %221 = vector.broadcast %cst_171 : f32 to vector<8x256xf32>
    %222 = arith.addf %220, %221 : vector<8x256xf32>
    %cst_172 = arith.constant 5.000000e-01 : f32
    %223 = vector.broadcast %cst_172 : f32 to vector<8x256xf32>
    %224 = arith.mulf %223, %222 : vector<8x256xf32>
    %225 = vector.extract_strided_slice %216 {offsets = [0, 256], sizes = [8, 256], strides = [1, 1]} : vector<8x1024xf32> to vector<8x256xf32>
    %cst_173 = arith.constant 5.000000e-01 : f32
    %226 = vector.broadcast %cst_173 : f32 to vector<8x256xf32>
    %227 = arith.mulf %226, %225 : vector<8x256xf32>
    %228 = math.tanh %227 : vector<8x256xf32>
    %cst_174 = arith.constant 1.000000e+00 : f32
    %229 = vector.broadcast %cst_174 : f32 to vector<8x256xf32>
    %230 = arith.addf %228, %229 : vector<8x256xf32>
    %cst_175 = arith.constant 5.000000e-01 : f32
    %231 = vector.broadcast %cst_175 : f32 to vector<8x256xf32>
    %232 = arith.mulf %231, %230 : vector<8x256xf32>
    %233 = vector.extract_strided_slice %216 {offsets = [0, 512], sizes = [8, 256], strides = [1, 1]} : vector<8x1024xf32> to vector<8x256xf32>
    %234 = math.tanh %233 : vector<8x256xf32>
    %235 = vector.extract_strided_slice %216 {offsets = [0, 768], sizes = [8, 256], strides = [1, 1]} : vector<8x1024xf32> to vector<8x256xf32>
    %cst_176 = arith.constant 5.000000e-01 : f32
    %236 = vector.broadcast %cst_176 : f32 to vector<8x256xf32>
    %237 = arith.mulf %236, %235 : vector<8x256xf32>
    %238 = math.tanh %237 : vector<8x256xf32>
    %cst_177 = arith.constant 1.000000e+00 : f32
    %239 = vector.broadcast %cst_177 : f32 to vector<8x256xf32>
    %240 = arith.addf %238, %239 : vector<8x256xf32>
    %cst_178 = arith.constant 5.000000e-01 : f32
    %241 = vector.broadcast %cst_178 : f32 to vector<8x256xf32>
    %242 = arith.mulf %241, %240 : vector<8x256xf32>
    %243 = arith.mulf %232, %209 : vector<8x256xf32>
    %244 = arith.mulf %224, %234 : vector<8x256xf32>
    %245 = arith.addf %243, %244 : vector<8x256xf32>
    %246 = math.tanh %245 : vector<8x256xf32>
    %247 = arith.mulf %242, %246 : vector<8x256xf32>
    %c24_179 = arith.constant 24 : index
    %c0_180 = arith.constant 0 : index
    %248 = vector.load %arg9[%c24_179, %c0_180] : memref<64x1024xf32, #tpu.memory_space<vmem>>, vector<8x1024xf32>
    %249 = arith.truncf %247 : vector<8x256xf32> to vector<8x256xbf16>
    %c0_181 = arith.constant 0 : index
    %c0_182 = arith.constant 0 : index
    %250 = vector.load %arg3[%c0_181, %c0_182] : memref<256x1024xbf16, #tpu.memory_space<vmem>>, vector<256x1024xbf16>
    %cst_183 = arith.constant dense<0.000000e+00> : vector<8x1024xf32>
    %251 = tpu.matmul %249, %250, %cst_183 {dimension_numbers = #tpu.dot_dimension_numbers<[1], [0], [0], [1], [0, 0, 1, 1], [], []>} : vector<8x256xbf16>, vector<256x1024xbf16>, vector<8x1024xf32> -> vector<8x1024xf32>
    %252 = arith.addf %248, %251 : vector<8x1024xf32>
    %253 = vector.extract_strided_slice %252 {offsets = [0, 0], sizes = [8, 256], strides = [1, 1]} : vector<8x1024xf32> to vector<8x256xf32>
    %cst_184 = arith.constant 5.000000e-01 : f32
    %254 = vector.broadcast %cst_184 : f32 to vector<8x256xf32>
    %255 = arith.mulf %254, %253 : vector<8x256xf32>
    %256 = math.tanh %255 : vector<8x256xf32>
    %cst_185 = arith.constant 1.000000e+00 : f32
    %257 = vector.broadcast %cst_185 : f32 to vector<8x256xf32>
    %258 = arith.addf %256, %257 : vector<8x256xf32>
    %cst_186 = arith.constant 5.000000e-01 : f32
    %259 = vector.broadcast %cst_186 : f32 to vector<8x256xf32>
    %260 = arith.mulf %259, %258 : vector<8x256xf32>
    %261 = vector.extract_strided_slice %252 {offsets = [0, 256], sizes = [8, 256], strides = [1, 1]} : vector<8x1024xf32> to vector<8x256xf32>
    %cst_187 = arith.constant 5.000000e-01 : f32
    %262 = vector.broadcast %cst_187 : f32 to vector<8x256xf32>
    %263 = arith.mulf %262, %261 : vector<8x256xf32>
    %264 = math.tanh %263 : vector<8x256xf32>
    %cst_188 = arith.constant 1.000000e+00 : f32
    %265 = vector.broadcast %cst_188 : f32 to vector<8x256xf32>
    %266 = arith.addf %264, %265 : vector<8x256xf32>
    %cst_189 = arith.constant 5.000000e-01 : f32
    %267 = vector.broadcast %cst_189 : f32 to vector<8x256xf32>
    %268 = arith.mulf %267, %266 : vector<8x256xf32>
    %269 = vector.extract_strided_slice %252 {offsets = [0, 512], sizes = [8, 256], strides = [1, 1]} : vector<8x1024xf32> to vector<8x256xf32>
    %270 = math.tanh %269 : vector<8x256xf32>
    %271 = vector.extract_strided_slice %252 {offsets = [0, 768], sizes = [8, 256], strides = [1, 1]} : vector<8x1024xf32> to vector<8x256xf32>
    %cst_190 = arith.constant 5.000000e-01 : f32
    %272 = vector.broadcast %cst_190 : f32 to vector<8x256xf32>
    %273 = arith.mulf %272, %271 : vector<8x256xf32>
    %274 = math.tanh %273 : vector<8x256xf32>
    %cst_191 = arith.constant 1.000000e+00 : f32
    %275 = vector.broadcast %cst_191 : f32 to vector<8x256xf32>
    %276 = arith.addf %274, %275 : vector<8x256xf32>
    %cst_192 = arith.constant 5.000000e-01 : f32
    %277 = vector.broadcast %cst_192 : f32 to vector<8x256xf32>
    %278 = arith.mulf %277, %276 : vector<8x256xf32>
    %279 = arith.mulf %268, %245 : vector<8x256xf32>
    %280 = arith.mulf %260, %270 : vector<8x256xf32>
    %281 = arith.addf %279, %280 : vector<8x256xf32>
    %282 = math.tanh %281 : vector<8x256xf32>
    %283 = arith.mulf %278, %282 : vector<8x256xf32>
    %c32_193 = arith.constant 32 : index
    %c0_194 = arith.constant 0 : index
    %284 = vector.load %arg9[%c32_193, %c0_194] : memref<64x1024xf32, #tpu.memory_space<vmem>>, vector<8x1024xf32>
    %285 = arith.truncf %283 : vector<8x256xf32> to vector<8x256xbf16>
    %c0_195 = arith.constant 0 : index
    %c0_196 = arith.constant 0 : index
    %286 = vector.load %arg3[%c0_195, %c0_196] : memref<256x1024xbf16, #tpu.memory_space<vmem>>, vector<256x1024xbf16>
    %cst_197 = arith.constant dense<0.000000e+00> : vector<8x1024xf32>
    %287 = tpu.matmul %285, %286, %cst_197 {dimension_numbers = #tpu.dot_dimension_numbers<[1], [0], [0], [1], [0, 0, 1, 1], [], []>} : vector<8x256xbf16>, vector<256x1024xbf16>, vector<8x1024xf32> -> vector<8x1024xf32>
    %288 = arith.addf %284, %287 : vector<8x1024xf32>
    %289 = vector.extract_strided_slice %288 {offsets = [0, 0], sizes = [8, 256], strides = [1, 1]} : vector<8x1024xf32> to vector<8x256xf32>
    %cst_198 = arith.constant 5.000000e-01 : f32
    %290 = vector.broadcast %cst_198 : f32 to vector<8x256xf32>
    %291 = arith.mulf %290, %289 : vector<8x256xf32>
    %292 = math.tanh %291 : vector<8x256xf32>
    %cst_199 = arith.constant 1.000000e+00 : f32
    %293 = vector.broadcast %cst_199 : f32 to vector<8x256xf32>
    %294 = arith.addf %292, %293 : vector<8x256xf32>
    %cst_200 = arith.constant 5.000000e-01 : f32
    %295 = vector.broadcast %cst_200 : f32 to vector<8x256xf32>
    %296 = arith.mulf %295, %294 : vector<8x256xf32>
    %297 = vector.extract_strided_slice %288 {offsets = [0, 256], sizes = [8, 256], strides = [1, 1]} : vector<8x1024xf32> to vector<8x256xf32>
    %cst_201 = arith.constant 5.000000e-01 : f32
    %298 = vector.broadcast %cst_201 : f32 to vector<8x256xf32>
    %299 = arith.mulf %298, %297 : vector<8x256xf32>
    %300 = math.tanh %299 : vector<8x256xf32>
    %cst_202 = arith.constant 1.000000e+00 : f32
    %301 = vector.broadcast %cst_202 : f32 to vector<8x256xf32>
    %302 = arith.addf %300, %301 : vector<8x256xf32>
    %cst_203 = arith.constant 5.000000e-01 : f32
    %303 = vector.broadcast %cst_203 : f32 to vector<8x256xf32>
    %304 = arith.mulf %303, %302 : vector<8x256xf32>
    %305 = vector.extract_strided_slice %288 {offsets = [0, 512], sizes = [8, 256], strides = [1, 1]} : vector<8x1024xf32> to vector<8x256xf32>
    %306 = math.tanh %305 : vector<8x256xf32>
    %307 = vector.extract_strided_slice %288 {offsets = [0, 768], sizes = [8, 256], strides = [1, 1]} : vector<8x1024xf32> to vector<8x256xf32>
    %cst_204 = arith.constant 5.000000e-01 : f32
    %308 = vector.broadcast %cst_204 : f32 to vector<8x256xf32>
    %309 = arith.mulf %308, %307 : vector<8x256xf32>
    %310 = math.tanh %309 : vector<8x256xf32>
    %cst_205 = arith.constant 1.000000e+00 : f32
    %311 = vector.broadcast %cst_205 : f32 to vector<8x256xf32>
    %312 = arith.addf %310, %311 : vector<8x256xf32>
    %cst_206 = arith.constant 5.000000e-01 : f32
    %313 = vector.broadcast %cst_206 : f32 to vector<8x256xf32>
    %314 = arith.mulf %313, %312 : vector<8x256xf32>
    %315 = arith.mulf %304, %281 : vector<8x256xf32>
    %316 = arith.mulf %296, %306 : vector<8x256xf32>
    %317 = arith.addf %315, %316 : vector<8x256xf32>
    %318 = math.tanh %317 : vector<8x256xf32>
    %319 = arith.mulf %314, %318 : vector<8x256xf32>
    %c40_207 = arith.constant 40 : index
    %c0_208 = arith.constant 0 : index
    %320 = vector.load %arg9[%c40_207, %c0_208] : memref<64x1024xf32, #tpu.memory_space<vmem>>, vector<8x1024xf32>
    %321 = arith.truncf %319 : vector<8x256xf32> to vector<8x256xbf16>
    %c0_209 = arith.constant 0 : index
    %c0_210 = arith.constant 0 : index
    %322 = vector.load %arg3[%c0_209, %c0_210] : memref<256x1024xbf16, #tpu.memory_space<vmem>>, vector<256x1024xbf16>
    %cst_211 = arith.constant dense<0.000000e+00> : vector<8x1024xf32>
    %323 = tpu.matmul %321, %322, %cst_211 {dimension_numbers = #tpu.dot_dimension_numbers<[1], [0], [0], [1], [0, 0, 1, 1], [], []>} : vector<8x256xbf16>, vector<256x1024xbf16>, vector<8x1024xf32> -> vector<8x1024xf32>
    %324 = arith.addf %320, %323 : vector<8x1024xf32>
    %325 = vector.extract_strided_slice %324 {offsets = [0, 0], sizes = [8, 256], strides = [1, 1]} : vector<8x1024xf32> to vector<8x256xf32>
    %cst_212 = arith.constant 5.000000e-01 : f32
    %326 = vector.broadcast %cst_212 : f32 to vector<8x256xf32>
    %327 = arith.mulf %326, %325 : vector<8x256xf32>
    %328 = math.tanh %327 : vector<8x256xf32>
    %cst_213 = arith.constant 1.000000e+00 : f32
    %329 = vector.broadcast %cst_213 : f32 to vector<8x256xf32>
    %330 = arith.addf %328, %329 : vector<8x256xf32>
    %cst_214 = arith.constant 5.000000e-01 : f32
    %331 = vector.broadcast %cst_214 : f32 to vector<8x256xf32>
    %332 = arith.mulf %331, %330 : vector<8x256xf32>
    %333 = vector.extract_strided_slice %324 {offsets = [0, 256], sizes = [8, 256], strides = [1, 1]} : vector<8x1024xf32> to vector<8x256xf32>
    %cst_215 = arith.constant 5.000000e-01 : f32
    %334 = vector.broadcast %cst_215 : f32 to vector<8x256xf32>
    %335 = arith.mulf %334, %333 : vector<8x256xf32>
    %336 = math.tanh %335 : vector<8x256xf32>
    %cst_216 = arith.constant 1.000000e+00 : f32
    %337 = vector.broadcast %cst_216 : f32 to vector<8x256xf32>
    %338 = arith.addf %336, %337 : vector<8x256xf32>
    %cst_217 = arith.constant 5.000000e-01 : f32
    %339 = vector.broadcast %cst_217 : f32 to vector<8x256xf32>
    %340 = arith.mulf %339, %338 : vector<8x256xf32>
    %341 = vector.extract_strided_slice %324 {offsets = [0, 512], sizes = [8, 256], strides = [1, 1]} : vector<8x1024xf32> to vector<8x256xf32>
    %342 = math.tanh %341 : vector<8x256xf32>
    %343 = vector.extract_strided_slice %324 {offsets = [0, 768], sizes = [8, 256], strides = [1, 1]} : vector<8x1024xf32> to vector<8x256xf32>
    %cst_218 = arith.constant 5.000000e-01 : f32
    %344 = vector.broadcast %cst_218 : f32 to vector<8x256xf32>
    %345 = arith.mulf %344, %343 : vector<8x256xf32>
    %346 = math.tanh %345 : vector<8x256xf32>
    %cst_219 = arith.constant 1.000000e+00 : f32
    %347 = vector.broadcast %cst_219 : f32 to vector<8x256xf32>
    %348 = arith.addf %346, %347 : vector<8x256xf32>
    %cst_220 = arith.constant 5.000000e-01 : f32
    %349 = vector.broadcast %cst_220 : f32 to vector<8x256xf32>
    %350 = arith.mulf %349, %348 : vector<8x256xf32>
    %351 = arith.mulf %340, %317 : vector<8x256xf32>
    %352 = arith.mulf %332, %342 : vector<8x256xf32>
    %353 = arith.addf %351, %352 : vector<8x256xf32>
    %354 = math.tanh %353 : vector<8x256xf32>
    %355 = arith.mulf %350, %354 : vector<8x256xf32>
    %c48_221 = arith.constant 48 : index
    %c0_222 = arith.constant 0 : index
    %356 = vector.load %arg9[%c48_221, %c0_222] : memref<64x1024xf32, #tpu.memory_space<vmem>>, vector<8x1024xf32>
    %357 = arith.truncf %355 : vector<8x256xf32> to vector<8x256xbf16>
    %c0_223 = arith.constant 0 : index
    %c0_224 = arith.constant 0 : index
    %358 = vector.load %arg3[%c0_223, %c0_224] : memref<256x1024xbf16, #tpu.memory_space<vmem>>, vector<256x1024xbf16>
    %cst_225 = arith.constant dense<0.000000e+00> : vector<8x1024xf32>
    %359 = tpu.matmul %357, %358, %cst_225 {dimension_numbers = #tpu.dot_dimension_numbers<[1], [0], [0], [1], [0, 0, 1, 1], [], []>} : vector<8x256xbf16>, vector<256x1024xbf16>, vector<8x1024xf32> -> vector<8x1024xf32>
    %360 = arith.addf %356, %359 : vector<8x1024xf32>
    %361 = vector.extract_strided_slice %360 {offsets = [0, 0], sizes = [8, 256], strides = [1, 1]} : vector<8x1024xf32> to vector<8x256xf32>
    %cst_226 = arith.constant 5.000000e-01 : f32
    %362 = vector.broadcast %cst_226 : f32 to vector<8x256xf32>
    %363 = arith.mulf %362, %361 : vector<8x256xf32>
    %364 = math.tanh %363 : vector<8x256xf32>
    %cst_227 = arith.constant 1.000000e+00 : f32
    %365 = vector.broadcast %cst_227 : f32 to vector<8x256xf32>
    %366 = arith.addf %364, %365 : vector<8x256xf32>
    %cst_228 = arith.constant 5.000000e-01 : f32
    %367 = vector.broadcast %cst_228 : f32 to vector<8x256xf32>
    %368 = arith.mulf %367, %366 : vector<8x256xf32>
    %369 = vector.extract_strided_slice %360 {offsets = [0, 256], sizes = [8, 256], strides = [1, 1]} : vector<8x1024xf32> to vector<8x256xf32>
    %cst_229 = arith.constant 5.000000e-01 : f32
    %370 = vector.broadcast %cst_229 : f32 to vector<8x256xf32>
    %371 = arith.mulf %370, %369 : vector<8x256xf32>
    %372 = math.tanh %371 : vector<8x256xf32>
    %cst_230 = arith.constant 1.000000e+00 : f32
    %373 = vector.broadcast %cst_230 : f32 to vector<8x256xf32>
    %374 = arith.addf %372, %373 : vector<8x256xf32>
    %cst_231 = arith.constant 5.000000e-01 : f32
    %375 = vector.broadcast %cst_231 : f32 to vector<8x256xf32>
    %376 = arith.mulf %375, %374 : vector<8x256xf32>
    %377 = vector.extract_strided_slice %360 {offsets = [0, 512], sizes = [8, 256], strides = [1, 1]} : vector<8x1024xf32> to vector<8x256xf32>
    %378 = math.tanh %377 : vector<8x256xf32>
    %379 = vector.extract_strided_slice %360 {offsets = [0, 768], sizes = [8, 256], strides = [1, 1]} : vector<8x1024xf32> to vector<8x256xf32>
    %cst_232 = arith.constant 5.000000e-01 : f32
    %380 = vector.broadcast %cst_232 : f32 to vector<8x256xf32>
    %381 = arith.mulf %380, %379 : vector<8x256xf32>
    %382 = math.tanh %381 : vector<8x256xf32>
    %cst_233 = arith.constant 1.000000e+00 : f32
    %383 = vector.broadcast %cst_233 : f32 to vector<8x256xf32>
    %384 = arith.addf %382, %383 : vector<8x256xf32>
    %cst_234 = arith.constant 5.000000e-01 : f32
    %385 = vector.broadcast %cst_234 : f32 to vector<8x256xf32>
    %386 = arith.mulf %385, %384 : vector<8x256xf32>
    %387 = arith.mulf %376, %353 : vector<8x256xf32>
    %388 = arith.mulf %368, %378 : vector<8x256xf32>
    %389 = arith.addf %387, %388 : vector<8x256xf32>
    %390 = math.tanh %389 : vector<8x256xf32>
    %391 = arith.mulf %386, %390 : vector<8x256xf32>
    %c56_235 = arith.constant 56 : index
    %c0_236 = arith.constant 0 : index
    %392 = vector.load %arg9[%c56_235, %c0_236] : memref<64x1024xf32, #tpu.memory_space<vmem>>, vector<8x1024xf32>
    %393 = arith.truncf %391 : vector<8x256xf32> to vector<8x256xbf16>
    %c0_237 = arith.constant 0 : index
    %c0_238 = arith.constant 0 : index
    %394 = vector.load %arg3[%c0_237, %c0_238] : memref<256x1024xbf16, #tpu.memory_space<vmem>>, vector<256x1024xbf16>
    %cst_239 = arith.constant dense<0.000000e+00> : vector<8x1024xf32>
    %395 = tpu.matmul %393, %394, %cst_239 {dimension_numbers = #tpu.dot_dimension_numbers<[1], [0], [0], [1], [0, 0, 1, 1], [], []>} : vector<8x256xbf16>, vector<256x1024xbf16>, vector<8x1024xf32> -> vector<8x1024xf32>
    %396 = arith.addf %392, %395 : vector<8x1024xf32>
    %397 = vector.extract_strided_slice %396 {offsets = [0, 0], sizes = [8, 256], strides = [1, 1]} : vector<8x1024xf32> to vector<8x256xf32>
    %cst_240 = arith.constant 5.000000e-01 : f32
    %398 = vector.broadcast %cst_240 : f32 to vector<8x256xf32>
    %399 = arith.mulf %398, %397 : vector<8x256xf32>
    %400 = math.tanh %399 : vector<8x256xf32>
    %cst_241 = arith.constant 1.000000e+00 : f32
    %401 = vector.broadcast %cst_241 : f32 to vector<8x256xf32>
    %402 = arith.addf %400, %401 : vector<8x256xf32>
    %cst_242 = arith.constant 5.000000e-01 : f32
    %403 = vector.broadcast %cst_242 : f32 to vector<8x256xf32>
    %404 = arith.mulf %403, %402 : vector<8x256xf32>
    %405 = vector.extract_strided_slice %396 {offsets = [0, 256], sizes = [8, 256], strides = [1, 1]} : vector<8x1024xf32> to vector<8x256xf32>
    %cst_243 = arith.constant 5.000000e-01 : f32
    %406 = vector.broadcast %cst_243 : f32 to vector<8x256xf32>
    %407 = arith.mulf %406, %405 : vector<8x256xf32>
    %408 = math.tanh %407 : vector<8x256xf32>
    %cst_244 = arith.constant 1.000000e+00 : f32
    %409 = vector.broadcast %cst_244 : f32 to vector<8x256xf32>
    %410 = arith.addf %408, %409 : vector<8x256xf32>
    %cst_245 = arith.constant 5.000000e-01 : f32
    %411 = vector.broadcast %cst_245 : f32 to vector<8x256xf32>
    %412 = arith.mulf %411, %410 : vector<8x256xf32>
    %413 = vector.extract_strided_slice %396 {offsets = [0, 512], sizes = [8, 256], strides = [1, 1]} : vector<8x1024xf32> to vector<8x256xf32>
    %414 = math.tanh %413 : vector<8x256xf32>
    %415 = vector.extract_strided_slice %396 {offsets = [0, 768], sizes = [8, 256], strides = [1, 1]} : vector<8x1024xf32> to vector<8x256xf32>
    %cst_246 = arith.constant 5.000000e-01 : f32
    %416 = vector.broadcast %cst_246 : f32 to vector<8x256xf32>
    %417 = arith.mulf %416, %415 : vector<8x256xf32>
    %418 = math.tanh %417 : vector<8x256xf32>
    %cst_247 = arith.constant 1.000000e+00 : f32
    %419 = vector.broadcast %cst_247 : f32 to vector<8x256xf32>
    %420 = arith.addf %418, %419 : vector<8x256xf32>
    %cst_248 = arith.constant 5.000000e-01 : f32
    %421 = vector.broadcast %cst_248 : f32 to vector<8x256xf32>
    %422 = arith.mulf %421, %420 : vector<8x256xf32>
    %423 = arith.mulf %412, %389 : vector<8x256xf32>
    %424 = arith.mulf %404, %414 : vector<8x256xf32>
    %425 = arith.addf %423, %424 : vector<8x256xf32>
    %426 = math.tanh %425 : vector<8x256xf32>
    %427 = arith.mulf %422, %426 : vector<8x256xf32>
    %428 = arith.truncf %427 : vector<8x256xf32> to vector<8x256xbf16>
    %c0_249 = arith.constant 0 : index
    %c0_250 = arith.constant 0 : index
    %429 = vector.load %arg5[%c0_249, %c0_250] : memref<256x128xbf16, #tpu.memory_space<vmem>>, vector<256x128xbf16>
    %cst_251 = arith.constant dense<0.000000e+00> : vector<8x128xf32>
    %430 = tpu.matmul %428, %429, %cst_251 {dimension_numbers = #tpu.dot_dimension_numbers<[1], [0], [0], [1], [0, 0, 1, 1], [], []>} : vector<8x256xbf16>, vector<256x128xbf16>, vector<8x128xf32> -> vector<8x128xf32>
    %c0_252 = arith.constant 0 : index
    %c0_253 = arith.constant 0 : index
    %431 = vector.load %arg6[%c0_252, %c0_253] : memref<1x128xf32, #tpu.memory_space<vmem>>, vector<1x128xf32>
    %432 = vector.broadcast %431 : vector<1x128xf32> to vector<8x128xf32>
    %433 = arith.addf %430, %432 : vector<8x128xf32>
    %c0_254 = arith.constant 0 : index
    %c0_255 = arith.constant 0 : index
    %434 = vector.load %arg7[%c0_254, %c0_255] : memref<8x128xf32, #tpu.memory_space<vmem>>, vector<8x128xf32>
    tpu.vector_store %arg7[%c0_254, %c0_255], %433 {strides = array<i32>} : memref<8x128xf32, #tpu.memory_space<vmem>>, vector<8x128xf32>,
    return
  }
}

</mosaic_0001>

<bundles_post_ra>
// kernel: tpu_custom_call.1
= control target key start
LH: loop header
LB: loop body
LE: loop exit
PB: predicated region body
PF: predicated region fallthrough
CT: control target
= control target key end

     0   :  { %12 = vsyncpa [#allocation7], 0  ;;  %s6400_s0 = inlined_call_operand.hbm [shape: s32[4,8], index: 0, kind: input, shape index: {}]   ;;  %s6401_s1 = inlined_call_operand.hbm [shape: f32[1000,128], index: 1, kind: input, shape index: {}]   ;;  %s6402_s2 = inlined_call_operand.hbm [shape: bf16[128,1024], index: 2, kind: input, shape index: {}]   ;;  %s6403_s3 = inlined_call_operand.hbm [shape: bf16[256,1024], index: 3, kind: input, shape index: {}]   ;;  %s6404_s4 = inlined_call_operand.vmem [shape: f32[1,1024], index: 4, kind: input, shape index: {}]   ;;  %s6405_s5 = inlined_call_operand.hbm [shape: bf16[256,128], index: 5, kind: input, shape index: {}]   ;;  %s6406_s6 = inlined_call_operand.vmem [shape: f32[1,128], index: 6, kind: input, shape index: {}]   ;;  %s6407_s7 = inlined_call_operand.hbm [shape: f32[8,128], index: 7, kind: output, shape index: {}]  }
   0x1   :  { %13 = vsyncpa [#allocation5], 0 }
   0x2   :  { %14 = vsyncpa [#allocation10], 0 }
   0x3   :  { %15 = vsyncpa [#allocation13], 0 }
   0x4   :  { %16 = vsyncpa [#allocation6], 0  ;;  %s4344_s24 = smov [#allocation9]   ;;  %s4214_s28 = scalar_lea.hbm %s6402_s2, 8192 }
   0x5   :  { %s42_s25 = sshll.u32 %s4344_s24, 4  ;;  %p4215_p0 = scmp.ne.s32.totalorder %s6402_s2, %s4214_s28  ;;  %s43_s25 = int_to_ptr.vmem [resolvable:$true] %s42_s25 }
   0x6   :  { %p4218_p1 = scmp.lt.u32.totalorder %s4214_s28, %s6402_s2 }
   0x8   :  { %p4220_p2 = pnand %p4218_p1, %p4215_p0 }
   0xa   :  { %4223 = shalt.err (!%p4220_p2)
}
   0xb   :  { %s4224_s10 = scalar_lea.vmem %s43_s25, 8192  ;;  %p4229_p4 = scmp.lt.s32.totalorder %s43_s25, %s43_s25 }
   0xc   :  { %p4225_p3 = scmp.ne.s32.totalorder %s43_s25, %s4224_s10  ;;  %p4230_p5 = scmp.lt.s32.totalorder %s4224_s10, %s4224_s10 }
   0xe   :  { %p4231_p6 = por %p4230_p5, %p4229_p4 }
  0x10   :  { %p4232_p7 = pnand %p4231_p6, %p4225_p3 }
  0x12   :  { %4235 = shalt.err (!%p4232_p7)
}
  0x13   :  { %s4345_s11 = smov 512   ;;  %s4346_s12 = smov 32  }
  0x14   :  { %48 = dma.hbm_to_vmem [thread:$0]  %s6402_s2, 8192, %s43_s25, [#allocation10], %s4345_s11, %s4345_s11, %s4346_s12  }
  0x15   :  { %s4236_s17 = scalar_lea.hbm %s6400_s0, 64 }
  0x16   :  { %p4237_p8 = scmp.ne.s32.totalorder %s6400_s0, %s4236_s17  ;;  %p4240_p9 = scmp.lt.u32.totalorder %s4236_s17, %s6400_s0 }
  0x18   :  { %p4242_p10 = pnand %p4240_p9, %p4237_p8 }
  0x1a   :  { %4245 = shalt.err (!%p4242_p10)
}
  0x1b   :  { %s4347_s22 = smov [#allocation4]   ;;  %s4348_s2 = smov [#allocation8]  }
  0x1c   :  { %24 = dma.hbm_to_smem %s6400_s0, 64, %s4347_s22, [#allocation7]  }
  0x1d   :  { %s30_s25 = sshll.u32 %s4348_s2, 4  ;;  %s4246_s28 = scalar_lea.hbm %s6401_s1, 16000  ;;  %s31_s25 = int_to_ptr.vmem [resolvable:$true] %s30_s25 }
  0x1e   :  { %p4247_p11 = scmp.ne.s32.totalorder %s6401_s1, %s4246_s28  ;;  %p4250_p12 = scmp.lt.u32.totalorder %s4246_s28, %s6401_s1 }
  0x20   :  { %p4252_p13 = pnand %p4250_p12, %p4247_p11 }
  0x22   :  { %4255 = shalt.err (!%p4252_p13)
}
  0x23   :  { %s4256_s10 = scalar_lea.vmem %s31_s25, 16000  ;;  %p4261_p1 = scmp.lt.s32.totalorder %s31_s25, %s31_s25 }
  0x24   :  { %p4257_p0 = scmp.ne.s32.totalorder %s31_s25, %s4256_s10  ;;  %p4262_p2 = scmp.lt.s32.totalorder %s4256_s10, %s4256_s10 }
  0x26   :  { %p4263_p3 = por %p4262_p2, %p4261_p1 }
  0x28   :  { %p4264_p4 = pnand %p4263_p3, %p4257_p0 }
  0x2a   :  { %4267 = shalt.err (!%p4264_p4)
}
  0x2b   :  { %s4349_s0 = smov 128   ;;  %s4350_s13 = smov 8  }
  0x2c   :  { %36 = dma.hbm_to_vmem [thread:$0]  %s6401_s1, 16000, %s31_s25, [#allocation5], %s4349_s0, %s4349_s0, %s4350_s13  }
  0x2d   :  { %s4351_s16 = smov [#allocation11]   ;;  %s4352_s18 = smov [#allocation12]  }
  0x2e   :  { %s54_s17 = sshll.u32 %s4351_s16, 4  ;;  %s68_s19 = sshll.u32 %s4352_s18, 4  ;;  %s55_s17 = int_to_ptr.vmem [resolvable:$true] %s54_s17  ;;  %s69_s19 = int_to_ptr.vmem [resolvable:$true] %s68_s19 }
  0x2f   :  { %s4268_s22 = scalar_lea.hbm %s6403_s3, 16384 }
  0x30   :  { %p4269_p5 = scmp.ne.s32.totalorder %s6403_s3, %s4268_s22  ;;  %p4272_p6 = scmp.lt.u32.totalorder %s4268_s22, %s6403_s3 }
  0x32   :  { %p4274_p7 = pnand %p4272_p6, %p4269_p5 }
  0x34   :  { %4277 = shalt.err (!%p4274_p7)
}
  0x35   :  { %s4278_s1 = scalar_lea.vmem %s55_s17, 16384  ;;  %p4283_p9 = scmp.lt.s32.totalorder %s55_s17, %s55_s17 }
  0x36   :  { %p4279_p8 = scmp.ne.s32.totalorder %s55_s17, %s4278_s1  ;;  %p4284_p10 = scmp.lt.s32.totalorder %s4278_s1, %s4278_s1 }
  0x38   :  { %p4285_p11 = por %p4284_p10, %p4283_p9 }
  0x3a   :  { %p4286_p12 = pnand %p4285_p11, %p4279_p8 }
  0x3c   :  { %4289 = shalt.err (!%p4286_p12)
}
  0x3d   :  { %60 = dma.hbm_to_vmem [thread:$0]  %s6403_s3, 16384, %s55_s17, [#allocation10], %s4345_s11, %s4345_s11, %s4346_s12  }
  0x3e   :  { %s4290_s30 = scalar_lea.hbm %s6405_s5, 2048 }
  0x3f   :  { %p4291_p13 = scmp.ne.s32.totalorder %s6405_s5, %s4290_s30  ;;  %p4294_p0 = scmp.lt.u32.totalorder %s4290_s30, %s6405_s5 }
  0x41   :  { %p4296_p1 = pnand %p4294_p0, %p4291_p13 }
  0x43   :  { %4299 = shalt.err (!%p4296_p1)
}
  0x44   :  { %s4300_s13 = scalar_lea.vmem %s69_s19, 2048  ;;  %p4305_p3 = scmp.lt.s32.totalorder %s69_s19, %s69_s19 }
  0x45   :  { %p4301_p2 = scmp.ne.s32.totalorder %s69_s19, %s4300_s13  ;;  %p4306_p4 = scmp.lt.s32.totalorder %s4300_s13, %s4300_s13 }
  0x47   :  { %p4307_p5 = por %p4306_p4, %p4305_p3 }
  0x49   :  { %p4308_p6 = pnand %p4307_p5, %p4301_p2 }
  0x4b   :  { %4311 = shalt.err (!%p4308_p6)
}
  0x4c   :  { %s4353_s3 = smov 64   ;;  %s4354_s11 = smov 4  }
  0x4d   :  { %74 = dma.hbm_to_vmem [thread:$0]  %s6405_s5, 2048, %s69_s19, [#allocation13], %s4353_s3, %s4353_s3, %s4354_s11  }
  0x4e   :  { %4334 = dma.done.wait [#allocation7], 64  }
  0x4f   :  { %4335 = vsyncadd [#allocation7], 4294967232 }
  0x50   :  { %4336 = dma.done.wait [#allocation5], 16000  }
  0x51   :  { %4337 = vsyncadd [#allocation5], 4294951296 }
  0x52   :  { %4338 = dma.done.wait [#allocation10], 24576  }
  0x53   :  { %4339 = vsyncadd [#allocation10], 4294942720 }
  0x54   :  { %4340 = dma.done.wait [#allocation13], 2048  }
  0x55   :  { %4341 = vsyncadd [#allocation13], 4294965248 }
  0x56   :  { %92 = sfence }
  0x57   :  { %v242_v0 = vld [vmem:[#allocation9] sm:$0xff]  ;;  %v243_v2 = vld [vmem:[#allocation9 + $0x8] sm:$0xff]  ;;  %v6408_v8 = vmov 0   ;;  %v4356_v9 = vmov 0.0   ;;  %s4465_s5 = sld [smem:[#allocation4]]  ;;  %s4474_s18 = sld [smem:[#allocation4 + $0x1]] }
  0x58   :  { %v246_v1 = vld [vmem:[#allocation9 + $0x20] sm:$0xff]  ;;  %v247_v4 = vld [vmem:[#allocation9 + $0x28] sm:$0xff]  ;;  %700 = vmatprep.mubr.bf16.mxu0 %v6408_v8  ;;  %94 = vst [vmem:[#allocation2] sm:$0xff] %v4356_v9  ;;  %95 = vst [vmem:[#allocation2 + $0x8] sm:$0xff] %v4356_v9  ;;  %773 = vmatprep.mubr.bf16.mxu1 %v6408_v8  ;;  %s4468_s15 = sld [smem:[#allocation4 + $0x80]]  ;;  %s4476_s19 = sld [smem:[#allocation4 + $0x81]] }
  0x59   :  { %v3794_v3 = vcombine.high %v242_v0, %v246_v1  ;;  %v3793_v5 = vcombine.low %v242_v0, %v246_v1  ;;  %v250_v6 = vld [vmem:[#allocation9 + $0x40] sm:$0xff]  ;;  %96 = vst [vmem:[#allocation2 + $0x10] sm:$0xff] %v4356_v9  ;;  %97 = vst [vmem:[#allocation2 + $0x18] sm:$0xff] %v4356_v9  ;;  %v3796_v10 = vcombine.high %v243_v2, %v247_v4  ;;  %v251_v13 = vld [vmem:[#allocation9 + $0x48] sm:$0xff]  ;;  %s4470_s16 = sld [smem:[#allocation4 + $0x100]]  ;;  %s4478_s20 = sld [smem:[#allocation4 + $0x101]] }
  0x5a   :  { %v254_v7 = vld [vmem:[#allocation9 + $0x60] sm:$0xff]  ;;  %98 = vst [vmem:[#allocation2 + $0x20] sm:$0xff] %v4356_v9  ;;  %99 = vst [vmem:[#allocation2 + $0x28] sm:$0xff] %v4356_v9  ;;  %v3795_v11 = vcombine.low %v243_v2, %v247_v4  ;;  %v255_v14 = vld [vmem:[#allocation9 + $0x68] sm:$0xff]  ;;  %s4472_s17 = sld [smem:[#allocation4 + $0x180]]  ;;  %s4480_s21 = sld [smem:[#allocation4 + $0x181]] }
  0x5b   :  { %100 = vst [vmem:[#allocation2 + $0x30] sm:$0xff] %v4356_v9  ;;  %101 = vst [vmem:[#allocation2 + $0x38] sm:$0xff] %v4356_v9  ;;  %v3802_v12 = vcombine.high %v250_v6, %v254_v7  ;;  %v258_v15 = vld [vmem:[#allocation9 + $0x80] sm:$0xff]  ;;  %668 = vmatprep.subr.bf16.mxu0 %v3794_v3  ;;  %v3804_v16 = vcombine.high %v251_v13, %v255_v14  ;;  %v259_v18 = vld [vmem:[#allocation9 + $0x88] sm:$0xff]  ;;  %741 = vmatprep.subr.bf16.mxu1 %v3796_v10  ;;  %s4486_s22 = sld [smem:[#allocation4 + $0x2]]  ;;  %s4515_s10 = sld [smem:[#allocation4 + $0x3]] }
  0x5c   :  { %v262_v17 = vld [vmem:[#allocation9 + $0xa0] sm:$0xff]  ;;  %v263_v19 = vld [vmem:[#allocation9 + $0xa8] sm:$0xff]  ;;  %669 = vmatpush1.bf16.msra.mxu0 %v3793_v5  ;;  %v3801_v20 = vcombine.low %v250_v6, %v254_v7  ;;  %742 = vmatpush1.bf16.msra.mxu1 %v3795_v11  ;;  %v3803_v21 = vcombine.low %v251_v13, %v255_v14  ;;  %s4507_s30 = sld [smem:[#allocation4 + $0x82]]  ;;  %s4517_s0 = sld [smem:[#allocation4 + $0x83]]  ;;  %v4547_v9 = vld [vmem:[#allocation9 + $0x10] sm:$0xff] }
  0x5d   :  { %670 = vmatprep.subr.bf16.mxu0 %v3802_v12  ;;  %v3810_v22 = vcombine.high %v258_v15, %v262_v17  ;;  %743 = vmatprep.subr.bf16.mxu1 %v3804_v16  ;;  %v3812_v23 = vcombine.high %v259_v18, %v263_v19  ;;  %v266_v24 = vld [vmem:[#allocation9 + $0xc0] sm:$0xff]  ;;  %v267_v26 = vld [vmem:[#allocation9 + $0xc8] sm:$0xff]  ;;  %v3809_v28 = vcombine.low %v258_v15, %v262_v17  ;;  %s103_s23 = scalar_lea.vmem [#allocation8], %s4465_s5  ;;  %s119_s1 = scalar_lea.vmem [#allocation8], %s4474_s18  ;;  %v4549_v10 = vld [vmem:[#allocation9 + $0x30] sm:$0xff] }
  0x5e   :  { %v270_v25 = vld [vmem:[#allocation9 + $0xe0] sm:$0xff]  ;;  %v271_v27 = vld [vmem:[#allocation9 + $0xe8] sm:$0xff]  ;;  %v3811_v29 = vcombine.low %v259_v18, %v263_v19  ;;  %v104_v36 = vld [vmem:[%s103_s23] sm:$0x1]  ;;  %s107_s24 = scalar_lea.vmem [#allocation8], %s4468_s15  ;;  %s123_s25 = scalar_lea.vmem [#allocation8], %s4476_s19 }
  0x5f   :  { %v3818_v30 = vcombine.high %v266_v24, %v270_v25  ;;  %v4482_v31 = vld [vmem:[#allocation9 + $0x100] sm:$0xff]  ;;  %v3820_v33 = vcombine.high %v267_v26, %v271_v27  ;;  %v4488_v34 = vld [vmem:[#allocation9 + $0x108] sm:$0xff]  ;;  %105 = vst [vmem:[#allocation2] sm:$0x1] %v104_v36  ;;  %v108_v37 = vld [vmem:[%s107_s24] sm:$0x1]  ;;  %v3817_v40 = vcombine.low %v266_v24, %v270_v25  ;;  %v3819_v41 = vcombine.low %v267_v26, %v271_v27 }
  0x60   :  { %671 = vmatpush1.bf16.msra.mxu0 %v3801_v20  ;;  %744 = vmatpush1.bf16.msra.mxu1 %v3803_v21  ;;  %v4484_v32 = vld [vmem:[#allocation9 + $0x120] sm:$0xff]  ;;  %v4490_v35 = vld [vmem:[#allocation9 + $0x128] sm:$0xff]  ;;  %s111_s2 = scalar_lea.vmem [#allocation8], %s4470_s16  ;;  %s115_s26 = scalar_lea.vmem [#allocation8], %s4472_s17  ;;  %109 = vst [vmem:[#allocation2 + $0x1] sm:$0x1] %v108_v37  ;;  %v3797_v36 = vcombine.low %v4547_v9, %v4549_v10 }
  0x61   :  { %672 = vmatprep.subr.bf16.mxu0 %v3810_v22  ;;  %745 = vmatprep.subr.bf16.mxu1 %v3812_v23  ;;  %v112_v38 = vld [vmem:[%s111_s2] sm:$0x1]  ;;  %v3826_v42 = vcombine.high %v4482_v31, %v4484_v32  ;;  %v3828_v45 = vcombine.high %v4488_v34, %v4490_v35  ;;  %v282_v46 = vld [vmem:[#allocation9 + $0x140] sm:$0xff]  ;;  %s127_s27 = scalar_lea.vmem [#allocation8], %s4478_s20  ;;  %v283_v49 = vld [vmem:[#allocation9 + $0x148] sm:$0xff]  ;;  %s131_s28 = scalar_lea.vmem [#allocation8], %s4480_s21  ;;  %v3825_v52 = vcombine.low %v4482_v31, %v4484_v32 }
  0x62   :  { %v116_v39 = vld [vmem:[%s115_s26] sm:$0x1]  ;;  %113 = vst [vmem:[#allocation2 + $0x2] sm:$0x1] %v112_v38  ;;  %v286_v47 = vld [vmem:[#allocation9 + $0x160] sm:$0xff]  ;;  %v287_v50 = vld [vmem:[#allocation9 + $0x168] sm:$0xff]  ;;  %v3827_v54 = vcombine.low %v4488_v34, %v4490_v35 }
  0x63   :  { %117 = vst [vmem:[#allocation2 + $0x3] sm:$0x1] %v116_v39  ;;  %v120_v43 = vld [vmem:[%s119_s1] sm:$0x1]  ;;  %s135_s29 = scalar_lea.vmem [#allocation8], %s4486_s22  ;;  %s4509_s8 = sld [smem:[#allocation4 + $0x102]]  ;;  %v3834_v55 = vcombine.high %v282_v46, %v286_v47  ;;  %v3836_v56 = vcombine.high %v283_v49, %v287_v50  ;;  %v3833_v61 = vcombine.low %v282_v46, %v286_v47  ;;  %v3835_v62 = vcombine.low %v283_v49, %v287_v50 }
  0x64   :  { %673 = vmatpush1.bf16.msra.mxu0 %v3809_v28  ;;  %746 = vmatpush1.bf16.msra.mxu1 %v3811_v29  ;;  %v124_v44 = vld [vmem:[%s123_s25] sm:$0x1]  ;;  %121 = vst [vmem:[#allocation2 + $0x8] sm:$0x1] %v120_v43  ;;  %s4513_s9 = sld [smem:[#allocation4 + $0x182]]  ;;  %v290_v57 = vld [vmem:[#allocation9 + $0x180] sm:$0xff]  ;;  %v3798_v29 = vcombine.high %v4547_v9, %v4549_v10 }
  0x65   :  { %674 = vmatprep.subr.bf16.mxu0 %v3818_v30  ;;  %747 = vmatprep.subr.bf16.mxu1 %v3820_v33  ;;  %125 = vst [vmem:[#allocation2 + $0x9] sm:$0x1] %v124_v44  ;;  %v128_v48 = vld [vmem:[%s127_s27] sm:$0x1]  ;;  %v294_v58 = vld [vmem:[#allocation9 + $0x1a0] sm:$0xff]  ;;  %s4519_s13 = sld [smem:[#allocation4 + $0x103]] }
  0x66   :  { %129 = vst [vmem:[#allocation2 + $0xa] sm:$0x1] %v128_v48  ;;  %v132_v51 = vld [vmem:[%s131_s28] sm:$0x1]  ;;  %v4521_v59 = vld [vmem:[#allocation9 + $0x188] sm:$0xff]  ;;  %s4525_s3 = sld [smem:[#allocation4 + $0x183]]  ;;  %v3842_v63 = vcombine.high %v290_v57, %v294_v58  ;;  %v3841_v7 = vcombine.low %v290_v57, %v294_v58 }
  0x67   :  { %133 = vst [vmem:[#allocation2 + $0xb] sm:$0x1] %v132_v51  ;;  %v136_v53 = vld [vmem:[%s135_s29] sm:$0x1]  ;;  %v4523_v60 = vld [vmem:[#allocation9 + $0x1a8] sm:$0xff]  ;;  %s4527_s11 = sld [smem:[#allocation4 + $0x4]] }
  0x68   :  { %675 = vmatpush1.bf16.msra.mxu0 %v3817_v40  ;;  %748 = vmatpush1.bf16.msra.mxu1 %v3819_v41  ;;  %137 = vst [vmem:[#allocation2 + $0x10] sm:$0x1] %v136_v53  ;;  %s4529_s12 = sld [smem:[#allocation4 + $0x84]]  ;;  %v3844_v0 = vcombine.high %v4521_v59, %v4523_v60  ;;  %v4537_v1 = vld [vmem:[#allocation9 + $0x1c0] sm:$0xff]  ;;  %v4541_v3 = vld [vmem:[#allocation9 + $0x1c8] sm:$0xff]  ;;  %s139_s15 = scalar_lea.vmem [#allocation8], %s4507_s30  ;;  %v3843_v12 = vcombine.low %v4521_v59, %v4523_v60 }
  0x69   :  { %676 = vmatprep.subr.bf16.mxu0 %v3826_v42  ;;  %749 = vmatprep.subr.bf16.mxu1 %v3828_v45  ;;  %s4531_s14 = sld [smem:[#allocation4 + $0x104]]  ;;  %v4539_v2 = vld [vmem:[#allocation9 + $0x1e0] sm:$0xff]  ;;  %v4543_v4 = vld [vmem:[#allocation9 + $0x1e8] sm:$0xff]  ;;  %v140_v5 = vld [vmem:[%s139_s15] sm:$0x1]  ;;  %s143_s16 = scalar_lea.vmem [#allocation8], %s4509_s8 }
  0x6a   :  { %s4533_s5 = sld [smem:[#allocation4 + $0x184]]  ;;  %v144_v6 = vld [vmem:[%s143_s16] sm:$0x1]  ;;  %141 = vst [vmem:[#allocation2 + $0x11] sm:$0x1] %v140_v5  ;;  %s147_s17 = scalar_lea.vmem [#allocation8], %s4513_s9  ;;  %v3850_v13 = vcombine.high %v4537_v1, %v4539_v2  ;;  %v3852_v18 = vcombine.high %v4541_v3, %v4543_v4  ;;  %v3849_v25 = vcombine.low %v4537_v1, %v4539_v2  ;;  %v3851_v28 = vcombine.low %v4541_v3, %v4543_v4 }
  0x6b   :  { %145 = vst [vmem:[#allocation2 + $0x12] sm:$0x1] %v144_v6  ;;  %v148_v11 = vld [vmem:[%s147_s17] sm:$0x1]  ;;  %v4556_v14 = vld [vmem:[#allocation9 + $0x18] sm:$0xff]  ;;  %s151_s18 = scalar_lea.vmem [#allocation8], %s4515_s10 }
  0x6c   :  { %677 = vmatpush1.bf16.msra.mxu0 %v3825_v52  ;;  %750 = vmatpush1.bf16.msra.mxu1 %v3827_v54  ;;  %v4558_v15 = vld [vmem:[#allocation9 + $0x38] sm:$0xff]  ;;  %149 = vst [vmem:[#allocation2 + $0x13] sm:$0x1] %v148_v11  ;;  %v152_v16 = vld [vmem:[%s151_s18] sm:$0x1]  ;;  %s155_s19 = scalar_lea.vmem [#allocation8], %s4517_s0 }
  0x6d   :  { %678 = vmatprep.subr.bf16.mxu0 %v3834_v55  ;;  %751 = vmatprep.subr.bf16.mxu1 %v3836_v56  ;;  %v156_v17 = vld [vmem:[%s155_s19] sm:$0x1]  ;;  %v230_v19 = vld [vmem:[#allocation2] sm:$0xff]  ;;  %153 = vst [vmem:[#allocation2 + $0x18] sm:$0x1] %v152_v16  ;;  %s159_s20 = scalar_lea.vmem [#allocation8], %s4519_s13  ;;  %v3800_v30 = vcombine.high %v4556_v14, %v4558_v15  ;;  %v3799_v37 = vcombine.low %v4556_v14, %v4558_v15 }
  0x6e   :  { %v231_v20 = vld [vmem:[#allocation2 + $0x8] sm:$0xff]  ;;  %157 = vst [vmem:[#allocation2 + $0x19] sm:$0x1] %v156_v17  ;;  %v160_v21 = vld [vmem:[%s159_s20] sm:$0x1]  ;;  %s163_s21 = scalar_lea.vmem [#allocation8], %s4525_s3 }
  0x6f   :  { %v164_v22 = vld [vmem:[%s163_s21] sm:$0x1]  ;;  %161 = vst [vmem:[#allocation2 + $0x1a] sm:$0x1] %v160_v21  ;;  %s167_s22 = scalar_lea.vmem [#allocation8], %s4527_s11  ;;  %s171_s23 = scalar_lea.vmem [#allocation8], %s4529_s12  ;;  %v4592_v33 = vpack.c.bf16 %v231_v20, %v230_v19 }
  0x70   :  { %679 = vmatpush1.bf16.msra.mxu0 %v3833_v61  ;;  %752 = vmatpush1.bf16.msra.mxu1 %v3835_v62  ;;  %165 = vst [vmem:[#allocation2 + $0x1b] sm:$0x1] %v164_v22  ;;  %v168_v23 = vld [vmem:[%s167_s22] sm:$0x1]  ;;  %s175_s24 = scalar_lea.vmem [#allocation8], %s4531_s14  ;;  %s179_s2 = scalar_lea.vmem [#allocation8], %s4533_s5 }
  0x71   :  { %680 = vmatprep.subr.bf16.mxu0 %v3842_v63  ;;  %753 = vmatprep.subr.bf16.mxu1 %v3844_v0  ;;  %v172_v24 = vld [vmem:[%s171_s23] sm:$0x1]  ;;  %169 = vst [vmem:[#allocation2 + $0x20] sm:$0x1] %v168_v23  ;;  %s4572_s26 = sld [smem:[#allocation4 + $0x5]]  ;;  %s4590_s28 = sld [smem:[#allocation4 + $0x6]] }
  0x72   :  { %173 = vst [vmem:[#allocation2 + $0x21] sm:$0x1] %v172_v24  ;;  %v176_v26 = vld [vmem:[%s175_s24] sm:$0x1]  ;;  %s4578_s1 = sld [smem:[#allocation4 + $0x85]]  ;;  %v4594_v34 = vld [vmem:[#allocation9 + $0x58] sm:$0xff] }
  0x73   :  { %v180_v27 = vld [vmem:[%s179_s2] sm:$0x1]  ;;  %177 = vst [vmem:[#allocation2 + $0x22] sm:$0x1] %v176_v26  ;;  %s4580_s25 = sld [smem:[#allocation4 + $0x105]]  ;;  %v4596_v35 = vld [vmem:[#allocation9 + $0x78] sm:$0xff] }
  0x74   :  { %681 = vmatpush1.bf16.msra.mxu0 %v3841_v7  ;;  %754 = vmatpush1.bf16.msra.mxu1 %v3843_v12  ;;  %181 = vst [vmem:[#allocation2 + $0x23] sm:$0x1] %v180_v27  ;;  %v4584_v31 = vld [vmem:[#allocation9 + $0x50] sm:$0xff]  ;;  %s4588_s27 = sld [smem:[#allocation4 + $0x185]]  ;;  %s4598_s29 = sld [smem:[#allocation4 + $0x86]]  ;;  %v3808_v39 = vcombine.high %v4594_v34, %v4596_v35  ;;  %v4622_v42 = vld [vmem:[#allocation9 + $0x98] sm:$0xff]  ;;  %v3807_v52 = vcombine.low %v4594_v34, %v4596_v35 }
  0x75   :  { %682 = vmatprep.subr.bf16.mxu0 %v3850_v13  ;;  %755 = vmatprep.subr.bf16.mxu1 %v3852_v18  ;;  %v4586_v32 = vld [vmem:[#allocation9 + $0x70] sm:$0xff]  ;;  %s4600_s30 = sld [smem:[#allocation4 + $0x106]]  ;;  %s4606_s9 = sld [smem:[#allocation4 + $0x7]]  ;;  %v232_v43 = vld [vmem:[#allocation2 + $0x10] sm:$0xff]  ;;  %v4627_v44 = vld [vmem:[#allocation9 + $0xb8] sm:$0xff] }
  0x76   :  { %s4604_s8 = sld [smem:[#allocation4 + $0x186]]  ;;  %v3806_v38 = vcombine.high %v4584_v31, %v4586_v32  ;;  %s4612_s10 = sld [smem:[#allocation4 + $0x87]]  ;;  %v4618_v40 = vld [vmem:[#allocation9 + $0x90] sm:$0xff]  ;;  %v3805_v46 = vcombine.low %v4584_v31, %v4586_v32  ;;  %v4643_v54 = vld [vmem:[#allocation9 + $0xd8] sm:$0xff]  ;;  %v3816_v57 = vcombine.high %v4622_v42, %v4627_v44  ;;  %v3815_v2 = vcombine.low %v4622_v42, %v4627_v44 }
  0x77   :  { %s4614_s0 = sld [smem:[#allocation4 + $0x107]]  ;;  %v4620_v41 = vld [vmem:[#allocation9 + $0xb0] sm:$0xff]  ;;  %s183_s3 = scalar_lea.vmem [#allocation8], %s4572_s26  ;;  %v4645_v55 = vld [vmem:[#allocation9 + $0xf8] sm:$0xff] }
  0x78   :  { %683 = vmatpush1.bf16.msra.mxu0 %v3849_v25  ;;  %756 = vmatpush1.bf16.msra.mxu1 %v3851_v28  ;;  %s4624_s13 = sld [smem:[#allocation4 + $0x187]]  ;;  %v184_v45 = vld [vmem:[%s183_s3] sm:$0x1]  ;;  %s187_s11 = scalar_lea.vmem [#allocation8], %s4578_s1  ;;  %v3814_v53 = vcombine.high %v4618_v40, %v4620_v41  ;;  %v3813_v63 = vcombine.low %v4618_v40, %v4620_v41  ;;  %v3824_v6 = vcombine.high %v4643_v54, %v4645_v55  ;;  %v277_v10 = vld [vmem:[#allocation9 + $0x118] sm:$0xff] }
  0x79   :  { %814 = vmatprep.subr.bf16.mxu0 %v3798_v29  ;;  %887 = vmatprep.subr.bf16.mxu1 %v3800_v30  ;;  %v233_v47 = vld [vmem:[#allocation2 + $0x18] sm:$0xff]  ;;  %185 = vst [vmem:[#allocation2 + $0x28] sm:$0x1] %v184_v45  ;;  %s191_s12 = scalar_lea.vmem [#allocation8], %s4580_s25  ;;  %s199_s5 = scalar_lea.vmem [#allocation8], %s4590_s28  ;;  %v281_v11 = vld [vmem:[#allocation9 + $0x138] sm:$0xff]  ;;  %v3823_v14 = vcombine.low %v4643_v54, %v4645_v55 }
  0x7a   :  { %v4633_v48 = vld [vmem:[#allocation9 + $0xd0] sm:$0xff]  ;;  %s195_s14 = scalar_lea.vmem [#allocation8], %s4588_s27  ;;  %s203_s15 = scalar_lea.vmem [#allocation8], %s4598_s29  ;;  %v4653_v60 = vpack.c.bf16 %v233_v47, %v232_v43  ;;  %v3832_v17 = vcombine.high %v277_v10, %v281_v11  ;;  %v285_v21 = vld [vmem:[#allocation9 + $0x158] sm:$0xff]  ;;  %v3831_v24 = vcombine.low %v277_v10, %v281_v11  ;;  %v1032_v47 = vld [vmem:[#allocation11] sm:$0xff] }
  0x7b   :  { %701 = vmatmul.mubr.bf16.vlgmr.msra.gmra.mrb[0].mxu0 %v4592_v33  ;;  %774 = vmatmul.mubr.bf16.vlgmr.msra.gmra.mrb[0].mxu1 %v4592_v33  ;;  %v4635_v49 = vld [vmem:[#allocation9 + $0xf0] sm:$0xff]  ;;  %s207_s16 = scalar_lea.vmem [#allocation8], %s4600_s30  ;;  %s215_s18 = scalar_lea.vmem [#allocation8], %s4606_s9  ;;  %v234_v13 = vld [vmem:[#allocation2 + $0x20] sm:$0xff]  ;;  %v1040_v55 = vld [vmem:[#allocation11 + $0x40] sm:$0xff] }
  0x7c   :  { %815 = vmatpush1.bf16.msra.mxu0 %v3797_v36  ;;  %v188_v50 = vld [vmem:[%s187_s11] sm:$0x1]  ;;  %888 = vmatpush1.bf16.msra.mxu1 %v3799_v37  ;;  %s211_s17 = scalar_lea.vmem [#allocation8], %s4604_s8  ;;  %s219_s19 = scalar_lea.vmem [#allocation8], %s4612_s10  ;;  %v3822_v3 = vcombine.high %v4633_v48, %v4635_v49  ;;  %v3821_v12 = vcombine.low %v4633_v48, %v4635_v49  ;;  %v289_v22 = vld [vmem:[#allocation9 + $0x178] sm:$0xff]  ;;  %v1036_v48 = vld [vmem:[#allocation11 + $0x20] sm:$0xff] }
  0x7d   :  { %v192_v51 = vld [vmem:[%s191_s12] sm:$0x1]  ;;  %816 = vmatprep.subr.bf16.mxu0 %v3806_v38  ;;  %189 = vst [vmem:[#allocation2 + $0x29] sm:$0x1] %v188_v50  ;;  %889 = vmatprep.subr.bf16.mxu1 %v3808_v39  ;;  %s223_s20 = scalar_lea.vmem [#allocation8], %s4614_s0  ;;  %v3840_v26 = vcombine.high %v285_v21, %v289_v22  ;;  %v293_v29 = vld [vmem:[#allocation9 + $0x198] sm:$0xff]  ;;  %v3839_v35 = vcombine.low %v285_v21, %v289_v22 }
  0x7e   :  { %193 = vst [vmem:[#allocation2 + $0x2a] sm:$0x1] %v192_v51  ;;  %v196_v56 = vld [vmem:[%s195_s14] sm:$0x1]  ;;  %710 = vmatprep.mubr.bf16.mxu0 %v6408_v8  ;;  %783 = vmatprep.mubr.bf16.mxu1 %v6408_v8  ;;  %s227_s21 = scalar_lea.vmem [#allocation8], %s4624_s13  ;;  %v297_v30 = vld [vmem:[#allocation9 + $0x1b8] sm:$0xff] }
  0x7f   :  { %197 = vst [vmem:[#allocation2 + $0x2b] sm:$0x1] %v196_v56  ;;  %v200_v58 = vld [vmem:[%s199_s5] sm:$0x1]  ;;  %v3848_v37 = vcombine.high %v293_v29, %v297_v30  ;;  %v301_v41 = vld [vmem:[#allocation9 + $0x1d8] sm:$0xff]  ;;  %v3847_v44 = vcombine.low %v293_v29, %v297_v30  ;;  %v1033_v49 = vld [vmem:[#allocation11 + $0x8] sm:$0xff] }
  0x80   :  { %v204_v59 = vld [vmem:[%s203_s15] sm:$0x1]  ;;  %201 = vst [vmem:[#allocation2 + $0x30] sm:$0x1] %v200_v58  ;;  %817 = vmatpush1.bf16.msra.mxu0 %v3805_v46  ;;  %890 = vmatpush1.bf16.msra.mxu1 %v3807_v52  ;;  %v305_v42 = vld [vmem:[#allocation9 + $0x1f8] sm:$0xff]  ;;  %v1037_v50 = vld [vmem:[#allocation11 + $0x28] sm:$0xff] }
  0x81   :  { %205 = vst [vmem:[#allocation2 + $0x31] sm:$0x1] %v204_v59  ;;  %v208_v61 = vld [vmem:[%s207_s16] sm:$0x1]  ;;  %818 = vmatprep.subr.bf16.mxu0 %v3814_v53  ;;  %891 = vmatprep.subr.bf16.mxu1 %v3816_v57  ;;  %v3856_v46 = vcombine.high %v301_v41, %v305_v42  ;;  %v3855_v52 = vcombine.low %v301_v41, %v305_v42  ;;  %v1044_v56 = vld [vmem:[#allocation11 + $0x60] sm:$0xff]  ;;  %v1041_v57 = vld [vmem:[#allocation11 + $0x48] sm:$0xff] }
  0x82   :  { %v212_v62 = vld [vmem:[%s211_s17] sm:$0x1]  ;;  %209 = vst [vmem:[#allocation2 + $0x32] sm:$0x1] %v208_v61  ;;  %v4688_v53 = vcombine.high %v1032_v47, %v1036_v48  ;;  %v4691_v54 = vcombine.high %v1033_v49, %v1037_v50  ;;  %v1045_v58 = vld [vmem:[#allocation11 + $0x68] sm:$0xff]  ;;  %v4694_v59 = vcombine.low %v1032_v47, %v1036_v48  ;;  %v4697_v61 = vcombine.low %v1033_v49, %v1037_v50  ;;  %v1060_v10 = vld [vmem:[#allocation11 + $0xe0] sm:$0xff] }
  0x83   :  { %213 = vst [vmem:[#allocation2 + $0x33] sm:$0x1] %v212_v62  ;;  %v216_v0 = vld [vmem:[%s215_s18] sm:$0x1]  ;;  %711 = vmatmul.mubr.bf16.gmra.mrb[4].mxu0 %v4653_v60  ;;  %784 = vmatmul.mubr.bf16.gmra.mrb[4].mxu1 %v4653_v60  ;;  %v4699_v62 = vcombine.high %v1040_v55, %v1044_v56  ;;  %v1061_v11 = vld [vmem:[#allocation11 + $0xe8] sm:$0xff]  ;;  %v1100_v47 = vld [vmem:[#allocation11 + $0x220] sm:$0xff] }
  0x84   :  { %v220_v1 = vld [vmem:[%s219_s19] sm:$0x1]  ;;  %217 = vst [vmem:[#allocation2 + $0x38] sm:$0x1] %v216_v0  ;;  %819 = vmatpush1.bf16.msra.mxu0 %v3813_v63  ;;  %892 = vmatpush1.bf16.msra.mxu1 %v3815_v2  ;;  %6675 = vst [vmem:[#allocation20_spill] sm:$0xff] %v4688_v53  ;;  %v4702_v63 = vcombine.high %v1041_v57, %v1045_v58  ;;  %v1048_v0 = vld [vmem:[#allocation11 + $0x80] sm:$0xff] }
  0x85   :  { %221 = vst [vmem:[#allocation2 + $0x39] sm:$0x1] %v220_v1  ;;  %v224_v4 = vld [vmem:[%s223_s20] sm:$0x1]  ;;  %820 = vmatprep.subr.bf16.mxu0 %v3822_v3  ;;  %893 = vmatprep.subr.bf16.mxu1 %v3824_v6  ;;  %6676 = vst [vmem:[#allocation21_spill] sm:$0xff] %v4691_v54  ;;  %v1052_v1 = vld [vmem:[#allocation11 + $0xa0] sm:$0xff] }
  0x86   :  { %v228_v5 = vld [vmem:[%s227_s21] sm:$0x1]  ;;  %225 = vst [vmem:[#allocation2 + $0x3a] sm:$0x1] %v224_v4  ;;  %v235_v15 = vld [vmem:[#allocation2 + $0x28] sm:$0xff]  ;;  %720 = vmatprep.mubr.bf16.mxu0 %v6408_v8  ;;  %793 = vmatprep.mubr.bf16.mxu1 %v6408_v8  ;;  %6677 = vst [vmem:[#allocation22_spill] sm:$0xff] %v4694_v59  ;;  %v4707_v4 = vcombine.low %v1040_v55, %v1044_v56  ;;  %v4713_v6 = vcombine.high %v1048_v0, %v1052_v1 }
  0x87   :  { %v276_v7 = vld [vmem:[#allocation9 + $0x110] sm:$0xff]  ;;  %229 = vst [vmem:[#allocation2 + $0x3b] sm:$0x1] %v228_v5  ;;  %v4677_v20 = vpack.c.bf16 %v235_v15, %v234_v13  ;;  %6678 = vst [vmem:[#allocation23_spill] sm:$0xff] %v4697_v61  ;;  %v1049_v2 = vld [vmem:[#allocation11 + $0x88] sm:$0xff]  ;;  %v4711_v5 = vcombine.low %v1041_v57, %v1045_v58  ;;  %s4357_s2 = smov [#allocation14]  }
  0x88   :  { %v280_v9 = vld [vmem:[#allocation9 + $0x130] sm:$0xff]  ;;  %821 = vmatpush1.bf16.msra.mxu0 %v3821_v12  ;;  %894 = vmatpush1.bf16.msra.mxu1 %v3823_v14  ;;  %6679 = vst [vmem:[#allocation24_spill] sm:$0xff] %v4699_v62  ;;  %6680 = vst [vmem:[#allocation25_spill] sm:$0xff] %v4702_v63  ;;  %v1053_v3 = vld [vmem:[#allocation11 + $0xa8] sm:$0xff]  ;;  %v4721_v12 = vcombine.low %v1048_v0, %v1052_v1  ;;  %s3718_s26 = sshll.u32 %s4357_s2, 4  ;;  %s3719_s26 = int_to_ptr.vmem [resolvable:$true] %s3718_s26 }
  0x89   :  { %v3830_v16 = vcombine.high %v276_v7, %v280_v9  ;;  %v284_v18 = vld [vmem:[#allocation9 + $0x150] sm:$0xff]  ;;  %v3829_v23 = vcombine.low %v276_v7, %v280_v9  ;;  %895 = vmatprep.subr.bf16.mxu1 %v3832_v17  ;;  %6681 = vst [vmem:[#allocation26_spill] sm:$0xff] %v4707_v4  ;;  %6682 = vst [vmem:[#allocation27_spill] sm:$0xff] %v4711_v5  ;;  %v4716_v7 = vcombine.high %v1049_v2, %v1053_v3  ;;  %v1056_v9 = vld [vmem:[#allocation11 + $0xc0] sm:$0xff]  ;;  %s4312_s1 = scalar_lea.vmem %s3719_s26, 128  ;;  %p4317_p8 = scmp.lt.s32.totalorder %s3719_s26, %s3719_s26 }
  0x8a   :  { %v288_v19 = vld [vmem:[#allocation9 + $0x170] sm:$0xff]  ;;  %v236_v32 = vld [vmem:[#allocation2 + $0x30] sm:$0xff]  ;;  %6683 = vst [vmem:[#allocation28_spill] sm:$0xff] %v4713_v6  ;;  %6685 = vst [vmem:[#allocation30_spill] sm:$0xff] %v4721_v12  ;;  %v4725_v13 = vcombine.low %v1049_v2, %v1053_v3  ;;  %v4727_v14 = vcombine.high %v1056_v9, %v1060_v10  ;;  %v4734_v21 = vcombine.low %v1056_v9, %v1060_v10  ;;  %p4313_p7 = scmp.ne.s32.totalorder %s3719_s26, %s4312_s1  ;;  %p4318_p9 = scmp.lt.s32.totalorder %s4312_s1, %s4312_s1 }
  0x8b   :  { %822 = vmatprep.subr.bf16.mxu0 %v3830_v16  ;;  %v3838_v25 = vcombine.high %v284_v18, %v288_v19  ;;  %v292_v27 = vld [vmem:[#allocation9 + $0x190] sm:$0xff]  ;;  %721 = vmatmul.mubr.bf16.gmra.mrb[8].mxu0 %v4677_v20  ;;  %v3837_v31 = vcombine.low %v284_v18, %v288_v19  ;;  %6684 = vst [vmem:[#allocation29_spill] sm:$0xff] %v4716_v7  ;;  %v1064_v16 = vld [vmem:[#allocation11 + $0x100] sm:$0xff]  ;;  %v1065_v18 = vld [vmem:[#allocation11 + $0x108] sm:$0xff] }
  0x8c   :  { %v296_v28 = vld [vmem:[#allocation9 + $0x1b0] sm:$0xff]  ;;  %794 = vmatmul.mubr.bf16.gmra.mrb[8].mxu1 %v4677_v20  ;;  %823 = vmatpush1.bf16.msra.mxu0 %v3829_v23  ;;  %6686 = vst [vmem:[#allocation31_spill] sm:$0xff] %v4725_v13  ;;  %6687 = vst [vmem:[#allocation32_spill] sm:$0xff] %v4727_v14  ;;  %v1068_v17 = vld [vmem:[#allocation11 + $0x120] sm:$0xff]  ;;  %p4319_p10 = por %p4318_p9, %p4317_p8 }
  0x8d   :  { %896 = vmatpush1.bf16.msra.mxu1 %v3831_v24  ;;  %824 = vmatprep.subr.bf16.mxu0 %v3838_v25  ;;  %v3846_v36 = vcombine.high %v292_v27, %v296_v28  ;;  %v300_v38 = vld [vmem:[#allocation9 + $0x1d0] sm:$0xff]  ;;  %v3845_v43 = vcombine.low %v292_v27, %v296_v28  ;;  %v1069_v19 = vld [vmem:[#allocation11 + $0x128] sm:$0xff]  ;;  %6689 = vst [vmem:[#allocation34_spill] sm:$0xff] %v4734_v21  ;;  %v1072_v25 = vld [vmem:[#allocation11 + $0x140] sm:$0xff] }
  0x8e   :  { %v237_v34 = vld [vmem:[#allocation2 + $0x38] sm:$0xff]  ;;  %897 = vmatprep.subr.bf16.mxu1 %v3840_v26  ;;  %730 = vmatprep.mubr.bf16.mxu0 %v6408_v8  ;;  %v4741_v23 = vcombine.high %v1064_v16, %v1068_v17  ;;  %v4744_v24 = vcombine.high %v1065_v18, %v1069_v19  ;;  %v1076_v26 = vld [vmem:[#allocation11 + $0x160] sm:$0xff]  ;;  %v1073_v27 = vld [vmem:[#allocation11 + $0x148] sm:$0xff]  ;;  %v4753_v29 = vcombine.low %v1065_v18, %v1069_v19  ;;  %p4320_p11 = pnand %p4319_p10, %p4313_p7 }
  0x8f   :  { %v304_v39 = vld [vmem:[#allocation9 + $0x1f0] sm:$0xff]  ;;  %v4683_v40 = vpack.c.bf16 %v237_v34, %v236_v32  ;;  %803 = vmatprep.mubr.bf16.mxu1 %v6408_v8  ;;  %v1077_v28 = vld [vmem:[#allocation11 + $0x168] sm:$0xff]  ;;  %v4755_v30 = vcombine.high %v1072_v25, %v1076_v26  ;;  %v1080_v32 = vld [vmem:[#allocation11 + $0x180] sm:$0xff] }
  0x90   :  { %825 = vmatpush1.bf16.msra.mxu0 %v3837_v31  ;;  %v3854_v45 = vcombine.high %v300_v38, %v304_v39  ;;  %v3853_v51 = vcombine.low %v300_v38, %v304_v39  ;;  %6691 = vst [vmem:[#allocation36_spill] sm:$0xff] %v4741_v23  ;;  %6692 = vst [vmem:[#allocation37_spill] sm:$0xff] %v4744_v24  ;;  %v4758_v31 = vcombine.high %v1073_v27, %v1077_v28  ;;  %v1084_v34 = vld [vmem:[#allocation11 + $0x1a0] sm:$0xff]  ;;  %v1097_v50 = vld [vmem:[#allocation11 + $0x208] sm:$0xff] }
  0x91   :  { %898 = vmatpush1.bf16.msra.mxu1 %v3839_v35  ;;  %826 = vmatprep.subr.bf16.mxu0 %v3846_v36  ;;  %6694 = vst [vmem:[#allocation39_spill] sm:$0xff] %v4753_v29  ;;  %6695 = vst [vmem:[#allocation40_spill] sm:$0xff] %v4755_v30  ;;  %v1081_v35 = vld [vmem:[#allocation11 + $0x188] sm:$0xff]  ;;  %v1088_v38 = vld [vmem:[#allocation11 + $0x1c0] sm:$0xff]  ;;  %v4767_v41 = vcombine.low %v1073_v27, %v1077_v28  ;;  %v4769_v42 = vcombine.high %v1080_v32, %v1084_v34 }
  0x92   :  { %899 = vmatprep.subr.bf16.mxu1 %v3848_v37  ;;  %6696 = vst [vmem:[#allocation41_spill] sm:$0xff] %v4758_v31  ;;  %v1085_v36 = vld [vmem:[#allocation11 + $0x1a8] sm:$0xff]  ;;  %v4762_v37 = vcombine.low %v1072_v25, %v1076_v26  ;;  %v1092_v39 = vld [vmem:[#allocation11 + $0x1e0] sm:$0xff] }
  0x93   :  { %731 = vmatmul.mubr.bf16.gmra.mrb[12].mxu0 %v4683_v40  ;;  %6698 = vst [vmem:[#allocation43_spill] sm:$0xff] %v4767_v41  ;;  %6699 = vst [vmem:[#allocation44_spill] sm:$0xff] %v4769_v42  ;;  %v4781_v48 = vcombine.low %v1081_v35, %v1085_v36  ;;  %v4783_v49 = vcombine.high %v1088_v38, %v1092_v39  ;;  %v4790_v55 = vcombine.low %v1088_v38, %v1092_v39  ;;  %v1104_v0 = vld [vmem:[#allocation11 + $0x240] sm:$0xff]  ;;  %v1105_v2 = vld [vmem:[#allocation11 + $0x248] sm:$0xff] }
  0x94   :  { %804 = vmatmul.mubr.bf16.gmra.mrb[12].mxu1 %v4683_v40  ;;  %827 = vmatpush1.bf16.msra.mxu0 %v3845_v43  ;;  %6697 = vst [vmem:[#allocation42_spill] sm:$0xff] %v4762_v37  ;;  %v1089_v43 = vld [vmem:[#allocation11 + $0x1c8] sm:$0xff]  ;;  %v1108_v1 = vld [vmem:[#allocation11 + $0x260] sm:$0xff] }
  0x95   :  { %900 = vmatpush1.bf16.msra.mxu1 %v3847_v44  ;;  %828 = vmatprep.subr.bf16.mxu0 %v3854_v45  ;;  %v1093_v44 = vld [vmem:[#allocation11 + $0x1e8] sm:$0xff]  ;;  %v4772_v45 = vcombine.high %v1081_v35, %v1085_v36  ;;  %6702 = vst [vmem:[#allocation47_spill] sm:$0xff] %v4781_v48  ;;  %6703 = vst [vmem:[#allocation48_spill] sm:$0xff] %v4783_v49  ;;  %v4811_v10 = vcombine.high %v1104_v0, %v1108_v1  ;;  %v1120_v28 = vld [vmem:[#allocation11 + $0x2c0] sm:$0xff] }
  0x96   :  { %901 = vmatprep.subr.bf16.mxu1 %v3856_v46  ;;  %846 = vmatprep.mubr.bf16.mxu0 %v6408_v8  ;;  %v1096_v46 = vld [vmem:[#allocation11 + $0x200] sm:$0xff]  ;;  %6705 = vst [vmem:[#allocation50_spill] sm:$0xff] %v4790_v55  ;;  %v4795_v56 = vcombine.low %v1089_v43, %v1093_v44  ;;  %v1109_v3 = vld [vmem:[#allocation11 + $0x268] sm:$0xff]  ;;  %v4817_v19 = vcombine.low %v1104_v0, %v1108_v1 }
  0x97   :  { %919 = vmatprep.mubr.bf16.mxu1 %v6408_v8  ;;  %6700 = vst [vmem:[#allocation45_spill] sm:$0xff] %v4772_v45  ;;  %v4797_v57 = vcombine.high %v1096_v46, %v1100_v47  ;;  %6711 = vst [vmem:[#allocation56_spill] sm:$0xff] %v4811_v10  ;;  %v1117_v18 = vld [vmem:[#allocation11 + $0x2a8] sm:$0xff]  ;;  %v4821_v25 = vcombine.low %v1105_v2, %v1109_v3 }
  0x98   :  { %829 = vmatpush1.bf16.msra.mxu0 %v3853_v51  ;;  %v1101_v51 = vld [vmem:[#allocation11 + $0x228] sm:$0xff]  ;;  %6706 = vst [vmem:[#allocation51_spill] sm:$0xff] %v4795_v56  ;;  %6713 = vst [vmem:[#allocation58_spill] sm:$0xff] %v4817_v19 }
  0x99   :  { %902 = vmatpush1.bf16.msra.mxu1 %v3855_v52  ;;  %1800 = vmatprep.subr.bf16.mxu0 %v4688_v53  ;;  %v4786_v52 = vcombine.high %v1089_v43, %v1093_v44  ;;  %6707 = vst [vmem:[#allocation52_spill] sm:$0xff] %v4797_v57  ;;  %v4800_v58 = vcombine.high %v1097_v50, %v1101_v51  ;;  %6714 = vst [vmem:[#allocation59_spill] sm:$0xff] %v4821_v25  ;;  %v1125_v35 = vld [vmem:[#allocation11 + $0x2e8] sm:$0xff]  ;;  %v1128_v44 = vld [vmem:[#allocation11 + $0x300] sm:$0xff] }
  0x9a   :  { %1841 = vmatprep.subr.bf16.mxu1 %v4691_v54  ;;  %v4809_v9 = vcombine.low %v1097_v50, %v1101_v51  ;;  %v1133_v50 = vld [vmem:[#allocation11 + $0x328] sm:$0xff] }
  0x9b   :  { %847 = vmatmul.mubr.bf16.vlgmr.msra.gmra.mrb[16].mxu0 %v4592_v33  ;;  %6704 = vst [vmem:[#allocation49_spill] sm:$0xff] %v4786_v52  ;;  %6708 = vst [vmem:[#allocation53_spill] sm:$0xff] %v4800_v58 }
  0x9c   :  { %920 = vmatmul.mubr.bf16.vlgmr.msra.gmra.mrb[16].mxu1 %v4592_v33  ;;  %1801 = vmatpush1.bf16.msra.mxu0 %v4694_v59  ;;  %v1057_v33 = vld [vmem:[#allocation11 + $0xc8] sm:$0xff]  ;;  %6710 = vst [vmem:[#allocation55_spill] sm:$0xff] %v4809_v9 }
  0x9d   :  { %1842 = vmatpush1.bf16.msra.mxu1 %v4697_v61  ;;  %1802 = vmatprep.subr.bf16.mxu0 %v4699_v62  ;;  %v4730_v15 = vcombine.high %v1057_v33, %v1061_v11  ;;  %v4739_v22 = vcombine.low %v1057_v33, %v1061_v11  ;;  %v4814_v33 = vcombine.high %v1105_v2, %v1109_v3  ;;  %v1112_v11 = vld [vmem:[#allocation11 + $0x280] sm:$0xff] }
  0x9e   :  { %1843 = vmatprep.subr.bf16.mxu1 %v4702_v63  ;;  %856 = vmatprep.mubr.bf16.mxu0 %v6408_v8  ;;  %v1136_v3 = vld [vmem:[#allocation11 + $0x340] sm:$0xff] }
  0x9f   :  { %929 = vmatprep.mubr.bf16.mxu1 %v6408_v8  ;;  %6688 = vst [vmem:[#allocation33_spill] sm:$0xff] %v4730_v15  ;;  %6690 = vst [vmem:[#allocation35_spill] sm:$0xff] %v4739_v22 }
  0xa0   :  { %1803 = vmatpush1.bf16.msra.mxu0 %v4707_v4  ;;  %6712 = vst [vmem:[#allocation57_spill] sm:$0xff] %v4814_v33 }
  0xa1   :  { %1844 = vmatpush1.bf16.msra.mxu1 %v4711_v5  ;;  %1804 = vmatprep.subr.bf16.mxu0 %v4713_v6 }
  0xa2   :  { %1845 = vmatprep.subr.bf16.mxu1 %v4716_v7 }
  0xa3   :  { %857 = vmatmul.mubr.bf16.gmra.mrb[20].mxu0 %v4653_v60 }
  0xa4   :  { %1805 = vmatpush1.bf16.msra.mxu0 %v4721_v12  ;;  %930 = vmatmul.mubr.bf16.gmra.mrb[20].mxu1 %v4653_v60  ;;  %v4749_v60 = vcombine.low %v1064_v16, %v1068_v17  ;;  %v1116_v16 = vld [vmem:[#allocation11 + $0x2a0] sm:$0xff]  ;;  %v1113_v17 = vld [vmem:[#allocation11 + $0x288] sm:$0xff] }
  0xa5   :  { %1846 = vmatpush1.bf16.msra.mxu1 %v4725_v13  ;;  %1806 = vmatprep.subr.bf16.mxu0 %v4727_v14  ;;  %v4823_v26 = vcombine.high %v1112_v11, %v1116_v16  ;;  %v4826_v27 = vcombine.high %v1113_v17, %v1117_v18  ;;  %v4829_v36 = vcombine.low %v1112_v11, %v1116_v16  ;;  %v1140_v11 = vld [vmem:[#allocation11 + $0x360] sm:$0xff]  ;;  %v1137_v16 = vld [vmem:[#allocation11 + $0x348] sm:$0xff] }
  0xa6   :  { %1847 = vmatprep.subr.bf16.mxu1 %v4730_v15  ;;  %866 = vmatprep.mubr.bf16.mxu0 %v6408_v8  ;;  %6693 = vst [vmem:[#allocation38_spill] sm:$0xff] %v4749_v60  ;;  %v4833_v38 = vcombine.low %v1113_v17, %v1117_v18  ;;  %v1141_v17 = vld [vmem:[#allocation11 + $0x368] sm:$0xff] }
  0xa7   :  { %939 = vmatprep.mubr.bf16.mxu1 %v6408_v8  ;;  %6715 = vst [vmem:[#allocation60_spill] sm:$0xff] %v4823_v26  ;;  %6716 = vst [vmem:[#allocation61_spill] sm:$0xff] %v4826_v27 }
  0xa8   :  { %1807 = vmatpush1.bf16.msra.mxu0 %v4734_v21  ;;  %6717 = vst [vmem:[#allocation62_spill] sm:$0xff] %v4829_v36  ;;  %6718 = vst [vmem:[#allocation63_spill] sm:$0xff] %v4833_v38 }
  0xa9   :  { %1848 = vmatpush1.bf16.msra.mxu1 %v4739_v22  ;;  %1808 = vmatprep.subr.bf16.mxu0 %v4741_v23 }
  0xaa   :  { %1849 = vmatprep.subr.bf16.mxu1 %v4744_v24 }
  0xab   :  { %867 = vmatmul.mubr.bf16.gmra.mrb[24].mxu0 %v4677_v20 }
  0xac   :  { %1809 = vmatpush1.bf16.msra.mxu0 %v4749_v60  ;;  %940 = vmatmul.mubr.bf16.gmra.mrb[24].mxu1 %v4677_v20  ;;  %v4777_v20 = vcombine.low %v1080_v32, %v1084_v34  ;;  %v1124_v32 = vld [vmem:[#allocation11 + $0x2e0] sm:$0xff]  ;;  %v1121_v34 = vld [vmem:[#allocation11 + $0x2c8] sm:$0xff] }
  0xad   :  { %1850 = vmatpush1.bf16.msra.mxu1 %v4753_v29  ;;  %1810 = vmatprep.subr.bf16.mxu0 %v4755_v30  ;;  %v4835_v39 = vcombine.high %v1120_v28, %v1124_v32  ;;  %v4838_v43 = vcombine.high %v1121_v34, %v1125_v35  ;;  %v4841_v51 = vcombine.low %v1120_v28, %v1124_v32 }
  0xae   :  { %1851 = vmatprep.subr.bf16.mxu1 %v4758_v31  ;;  %876 = vmatprep.mubr.bf16.mxu0 %v6408_v8  ;;  %6701 = vst [vmem:[#allocation46_spill] sm:$0xff] %v4777_v20  ;;  %v4845_v0 = vcombine.low %v1121_v34, %v1125_v35  ;;  %v4859_v32 = vcombine.high %v1136_v3, %v1140_v11  ;;  %v1144_v35 = vld [vmem:[#allocation11 + $0x380] sm:$0xff] }
  0xaf   :  { %949 = vmatprep.mubr.bf16.mxu1 %v6408_v8  ;;  %6719 = vst [vmem:[#allocation64_spill] sm:$0xff] %v4835_v39  ;;  %6720 = vst [vmem:[#allocation65_spill] sm:$0xff] %v4838_v43  ;;  %v4862_v34 = vcombine.high %v1137_v16, %v1141_v17 }
  0xb0   :  { %1811 = vmatpush1.bf16.msra.mxu0 %v4762_v37  ;;  %6721 = vst [vmem:[#allocation66_spill] sm:$0xff] %v4841_v51  ;;  %6722 = vst [vmem:[#allocation67_spill] sm:$0xff] %v4845_v0 }
  0xb1   :  { %1852 = vmatpush1.bf16.msra.mxu1 %v4767_v41  ;;  %1812 = vmatprep.subr.bf16.mxu0 %v4769_v42  ;;  %6727 = vst [vmem:[#allocation72_spill] sm:$0xff] %v4859_v32  ;;  %6728 = vst [vmem:[#allocation73_spill] sm:$0xff] %v4862_v34 }
  0xb2   :  { %1853 = vmatprep.subr.bf16.mxu1 %v4772_v45 }
  0xb3   :  { %877 = vmatmul.mubr.bf16.gmra.mrb[28].mxu0 %v4683_v40 }
  0xb4   :  { %1813 = vmatpush1.bf16.msra.mxu0 %v4777_v20  ;;  %950 = vmatmul.mubr.bf16.gmra.mrb[28].mxu1 %v4683_v40  ;;  %v4805_v40 = vcombine.low %v1096_v46, %v1100_v47  ;;  %v1132_v46 = vld [vmem:[#allocation11 + $0x320] sm:$0xff]  ;;  %v1129_v47 = vld [vmem:[#allocation11 + $0x308] sm:$0xff] }
  0xb5   :  { %1854 = vmatpush1.bf16.msra.mxu1 %v4781_v48  ;;  %1814 = vmatprep.subr.bf16.mxu0 %v4783_v49  ;;  %v4847_v1 = vcombine.high %v1128_v44, %v1132_v46  ;;  %v4850_v2 = vcombine.high %v1129_v47, %v1133_v50  ;;  %v4853_v18 = vcombine.low %v1128_v44, %v1132_v46 }
  0xb6   :  { %1855 = vmatprep.subr.bf16.mxu1 %v4786_v52  ;;  %1832 = vmatprep.mubr.bf16.mxu0 %v6408_v8  ;;  %6709 = vst [vmem:[#allocation54_spill] sm:$0xff] %v4805_v40  ;;  %v4857_v28 = vcombine.low %v1129_v47, %v1133_v50  ;;  %v4865_v44 = vcombine.low %v1136_v3, %v1140_v11 }
  0xb7   :  { %1873 = vmatprep.mubr.bf16.mxu1 %v6408_v8  ;;  %6723 = vst [vmem:[#allocation68_spill] sm:$0xff] %v4847_v1  ;;  %6724 = vst [vmem:[#allocation69_spill] sm:$0xff] %v4850_v2  ;;  %v1148_v8 = vld [vmem:[#allocation11 + $0x3a0] sm:$0xff]  ;;  %v4869_v46 = vcombine.low %v1137_v16, %v1141_v17 }
  0xb8   :  { %1815 = vmatpush1.bf16.msra.mxu0 %v4790_v55  ;;  %6725 = vst [vmem:[#allocation70_spill] sm:$0xff] %v4853_v18  ;;  %6726 = vst [vmem:[#allocation71_spill] sm:$0xff] %v4857_v28  ;;  %v4871_v47 = vcombine.high %v1144_v35, %v1148_v8  ;;  %v4877_v3 = vcombine.low %v1144_v35, %v1148_v8 }
  0xb9   :  { %1856 = vmatpush1.bf16.msra.mxu1 %v4795_v56  ;;  %1816 = vmatprep.subr.bf16.mxu0 %v4797_v57  ;;  %6729 = vst [vmem:[#allocation74_spill] sm:$0xff] %v4865_v44  ;;  %6730 = vst [vmem:[#allocation75_spill] sm:$0xff] %v4869_v46 }
  0xba   :  { %1857 = vmatprep.subr.bf16.mxu1 %v4800_v58  ;;  %6731 = vst [vmem:[#allocation76_spill] sm:$0xff] %v4871_v47  ;;  %6733 = vst [vmem:[#allocation78_spill] sm:$0xff] %v4877_v3 }
  0xbc   :  { %1817 = vmatpush1.bf16.msra.mxu0 %v4805_v40 }
  0xbd   :  { %1858 = vmatpush1.bf16.msra.mxu1 %v4809_v9  ;;  %1818 = vmatprep.subr.bf16.mxu0 %v4811_v10 }
  0xbe   :  { %1859 = vmatprep.subr.bf16.mxu1 %v4814_v33 }
  0xc0   :  { %1819 = vmatpush1.bf16.msra.mxu0 %v4817_v19 }
  0xc1   :  { %1860 = vmatpush1.bf16.msra.mxu1 %v4821_v25  ;;  %1820 = vmatprep.subr.bf16.mxu0 %v4823_v26 }
  0xc2   :  { %1861 = vmatprep.subr.bf16.mxu1 %v4826_v27 }
  0xc4   :  { %1821 = vmatpush1.bf16.msra.mxu0 %v4829_v36 }
  0xc5   :  { %1862 = vmatpush1.bf16.msra.mxu1 %v4833_v38  ;;  %1822 = vmatprep.subr.bf16.mxu0 %v4835_v39  ;;  %v1149_v39 = vld [vmem:[#allocation11 + $0x3a8] sm:$0xff]  ;;  %v1071_v38 = vld [vmem:[#allocation11 + $0x138] sm:$0xff] }
  0xc6   :  { %1863 = vmatprep.subr.bf16.mxu1 %v4838_v43  ;;  %v1145_v43 = vld [vmem:[#allocation11 + $0x388] sm:$0xff] }
  0xc7   :  { %v4874_v50 = vcombine.high %v1145_v43, %v1149_v39  ;;  %v4881_v11 = vcombine.low %v1145_v43, %v1149_v39 }
  0xc8   :  { %1823 = vmatpush1.bf16.msra.mxu0 %v4841_v51  ;;  %v1157_v51 = vld [vmem:[#allocation11 + $0x3e8] sm:$0xff] }
  0xc9   :  { %1864 = vmatpush1.bf16.msra.mxu1 %v4845_v0  ;;  %1824 = vmatprep.subr.bf16.mxu0 %v4847_v1  ;;  %6732 = vst [vmem:[#allocation77_spill] sm:$0xff] %v4874_v50  ;;  %v1156_v1 = vld [vmem:[#allocation11 + $0x3e0] sm:$0xff]  ;;  %v1153_v0 = vld [vmem:[#allocation11 + $0x3c8] sm:$0xff]  ;;  %6734 = vst [vmem:[#allocation79_spill] sm:$0xff] %v4881_v11 }
  0xca   :  { %1865 = vmatprep.subr.bf16.mxu1 %v4850_v2  ;;  %v1152_v2 = vld [vmem:[#allocation11 + $0x3c0] sm:$0xff]  ;;  %v4886_v17 = vcombine.high %v1153_v0, %v1157_v51  ;;  %v4893_v39 = vcombine.low %v1153_v0, %v1157_v51 }
  0xcb   :  { %v4883_v16 = vcombine.high %v1152_v2, %v1156_v1  ;;  %v4889_v8 = vcombine.low %v1152_v2, %v1156_v1 }
  0xcc   :  { %1825 = vmatpush1.bf16.msra.mxu0 %v4853_v18  ;;  %6736 = vst [vmem:[#allocation81_spill] sm:$0xff] %v4886_v17  ;;  %v1039_v18 = vld [vmem:[#allocation11 + $0x38] sm:$0xff]  ;;  %6738 = vst [vmem:[#allocation83_spill] sm:$0xff] %v4893_v39 }
  0xcd   :  { %1866 = vmatpush1.bf16.msra.mxu1 %v4857_v28  ;;  %1826 = vmatprep.subr.bf16.mxu0 %v4859_v32  ;;  %6735 = vst [vmem:[#allocation80_spill] sm:$0xff] %v4883_v16  ;;  %v1038_v32 = vld [vmem:[#allocation11 + $0x30] sm:$0xff]  ;;  %v1035_v28 = vld [vmem:[#allocation11 + $0x18] sm:$0xff]  ;;  %6737 = vst [vmem:[#allocation82_spill] sm:$0xff] %v4889_v8 }
  0xce   :  { %1867 = vmatprep.subr.bf16.mxu1 %v4862_v34  ;;  %v1034_v34 = vld [vmem:[#allocation11 + $0x10] sm:$0xff]  ;;  %v4898_v35 = vcombine.high %v1035_v28, %v1039_v18  ;;  %v4905_v51 = vcombine.low %v1035_v28, %v1039_v18 }
  0xcf   :  { %v4895_v43 = vcombine.high %v1034_v34, %v1038_v32  ;;  %v4901_v1 = vcombine.low %v1034_v34, %v1038_v32 }
  0xd0   :  { %1827 = vmatpush1.bf16.msra.mxu0 %v4865_v44  ;;  %6740 = vst [vmem:[#allocation85_spill] sm:$0xff] %v4898_v35  ;;  %v1047_v44 = vld [vmem:[#allocation11 + $0x78] sm:$0xff]  ;;  %6742 = vst [vmem:[#allocation87_spill] sm:$0xff] %v4905_v51 }
  0xd1   :  { %1868 = vmatpush1.bf16.msra.mxu1 %v4869_v46  ;;  %1828 = vmatprep.subr.bf16.mxu0 %v4871_v47  ;;  %6739 = vst [vmem:[#allocation84_spill] sm:$0xff] %v4895_v43  ;;  %v1046_v47 = vld [vmem:[#allocation11 + $0x70] sm:$0xff]  ;;  %v1043_v46 = vld [vmem:[#allocation11 + $0x58] sm:$0xff]  ;;  %6741 = vst [vmem:[#allocation86_spill] sm:$0xff] %v4901_v1 }
  0xd2   :  { %1869 = vmatprep.subr.bf16.mxu1 %v4874_v50  ;;  %v1042_v50 = vld [vmem:[#allocation11 + $0x50] sm:$0xff]  ;;  %v4910_v2 = vcombine.high %v1043_v46, %v1047_v44  ;;  %v4919_v18 = vcombine.low %v1043_v46, %v1047_v44 }
  0xd3   :  { %v4907_v0 = vcombine.high %v1042_v50, %v1046_v47  ;;  %v4915_v32 = vcombine.low %v1042_v50, %v1046_v47 }
  0xd4   :  { %1829 = vmatpush1.bf16.msra.mxu0 %v4877_v3  ;;  %6744 = vst [vmem:[#allocation89_spill] sm:$0xff] %v4910_v2  ;;  %v1051_v3 = vld [vmem:[#allocation11 + $0x98] sm:$0xff]  ;;  %6747 = vst [vmem:[#allocation91_spill] sm:$0xff] %v4919_v18 }
  0xd5   :  { %1870 = vmatpush1.bf16.msra.mxu1 %v4881_v11  ;;  %1830 = vmatprep.subr.bf16.mxu0 %v4883_v16  ;;  %6743 = vst [vmem:[#allocation88_spill] sm:$0xff] %v4907_v0  ;;  %v1054_v16 = vld [vmem:[#allocation11 + $0xb0] sm:$0xff]  ;;  %v6745_v11 = vmov 0   ;;  %6746 = vst [vmem:[#allocation90_spill] sm:$0xff] %v4915_v32 }
  0xd6   :  { %1871 = vmatprep.subr.bf16.mxu1 %v4886_v17  ;;  %v1050_v17 = vld [vmem:[#allocation11 + $0x90] sm:$0xff] }
  0xd7   :  { %v4921_v28 = vcombine.high %v1050_v17, %v1054_v16  ;;  %v4929_v47 = vcombine.low %v1050_v17, %v1054_v16 }
  0xd8   :  { %1831 = vmatpush1.bf16.msra.mxu0 %v4889_v8  ;;  %v1055_v8 = vld [vmem:[#allocation11 + $0xb8] sm:$0xff] }
  0xd9   :  { %1872 = vmatpush1.bf16.msra.mxu1 %v4893_v39  ;;  %1882 = vmatprep.subr.bf16.mxu0 %v4895_v43  ;;  %6748 = vst [vmem:[#allocation92_spill] sm:$0xff] %v4921_v28  ;;  %v4924_v34 = vcombine.high %v1051_v3, %v1055_v8  ;;  %v1062_v43 = vld [vmem:[#allocation11 + $0xf0] sm:$0xff]  ;;  %v1059_v39 = vld [vmem:[#allocation11 + $0xd8] sm:$0xff]  ;;  %6750 = vst [vmem:[#allocation94_spill] sm:$0xff] %v4929_v47  ;;  %v4933_v44 = vcombine.low %v1051_v3, %v1055_v8 }
  0xda   :  { %1923 = vmatprep.subr.bf16.mxu1 %v4898_v35  ;;  %v1058_v35 = vld [vmem:[#allocation11 + $0xd0] sm:$0xff] }
  0xdb   :  { %1833 = vmatmul.mubr.bf16.vlgmr.msra.gmra.mrb[32].mxu0 %v6745_v11  ;;  %6749 = vst [vmem:[#allocation93_spill] sm:$0xff] %v4924_v34  ;;  %6751 = vst [vmem:[#allocation95_spill] sm:$0xff] %v4933_v44  ;;  %v4935_v46 = vcombine.high %v1058_v35, %v1062_v43  ;;  %v4941_v16 = vcombine.low %v1058_v35, %v1062_v43 }
  0xdc   :  { %1874 = vmatmul.mubr.bf16.vlgmr.msra.gmra.mrb[32].mxu1 %v6745_v11  ;;  %1883 = vmatpush1.bf16.msra.mxu0 %v4901_v1  ;;  %v1063_v1 = vld [vmem:[#allocation11 + $0xf8] sm:$0xff] }
  0xdd   :  { %1924 = vmatpush1.bf16.msra.mxu1 %v4905_v51  ;;  %1884 = vmatprep.subr.bf16.mxu0 %v4907_v0  ;;  %6752 = vst [vmem:[#allocation96_spill] sm:$0xff] %v4935_v46  ;;  %v4938_v50 = vcombine.high %v1059_v39, %v1063_v1  ;;  %v1070_v0 = vld [vmem:[#allocation11 + $0x130] sm:$0xff]  ;;  %v1067_v51 = vld [vmem:[#allocation11 + $0x118] sm:$0xff]  ;;  %6754 = vst [vmem:[#allocation98_spill] sm:$0xff] %v4941_v16  ;;  %v4945_v3 = vcombine.low %v1059_v39, %v1063_v1 }
  0xde   :  { %1925 = vmatprep.subr.bf16.mxu1 %v4910_v2  ;;  %1914 = vmatprep.mubr.bf16.mxu0 %v6745_v11  ;;  %v1066_v2 = vld [vmem:[#allocation11 + $0x110] sm:$0xff]  ;;  %v4950_v8 = vcombine.high %v1067_v51, %v1071_v38  ;;  %v4957_v39 = vcombine.low %v1067_v51, %v1071_v38 }
  0xdf   :  { %1955 = vmatprep.mubr.bf16.mxu1 %v6745_v11  ;;  %6753 = vst [vmem:[#allocation97_spill] sm:$0xff] %v4938_v50  ;;  %6755 = vst [vmem:[#allocation99_spill] sm:$0xff] %v4945_v3  ;;  %v4947_v17 = vcombine.high %v1066_v2, %v1070_v0  ;;  %v4953_v43 = vcombine.low %v1066_v2, %v1070_v0 }
  0xe0   :  { %1885 = vmatpush1.bf16.msra.mxu0 %v4915_v32  ;;  %6757 = vst [vmem:[#allocation101_spill] sm:$0xff] %v4950_v8  ;;  %v1079_v32 = vld [vmem:[#allocation11 + $0x178] sm:$0xff]  ;;  %6759 = vst [vmem:[#allocation103_spill] sm:$0xff] %v4957_v39 }
  0xe1   :  { %1926 = vmatpush1.bf16.msra.mxu1 %v4919_v18  ;;  %1886 = vmatprep.subr.bf16.mxu0 %v4921_v28  ;;  %6756 = vst [vmem:[#allocation100_spill] sm:$0xff] %v4947_v17  ;;  %v1078_v28 = vld [vmem:[#allocation11 + $0x170] sm:$0xff]  ;;  %v1075_v18 = vld [vmem:[#allocation11 + $0x158] sm:$0xff]  ;;  %6758 = vst [vmem:[#allocation102_spill] sm:$0xff] %v4953_v43 }
  0xe2   :  { %1927 = vmatprep.subr.bf16.mxu1 %v4924_v34  ;;  %v1074_v34 = vld [vmem:[#allocation11 + $0x150] sm:$0xff]  ;;  %v4962_v1 = vcombine.high %v1075_v18, %v1079_v32  ;;  %v4969_v38 = vcombine.low %v1075_v18, %v1079_v32 }
  0xe3   :  { %v4959_v35 = vcombine.high %v1074_v34, %v1078_v28  ;;  %v4965_v0 = vcombine.low %v1074_v34, %v1078_v28 }
  0xe4   :  { %1887 = vmatpush1.bf16.msra.mxu0 %v4929_v47  ;;  %6761 = vst [vmem:[#allocation105_spill] sm:$0xff] %v4962_v1  ;;  %v1087_v47 = vld [vmem:[#allocation11 + $0x1b8] sm:$0xff]  ;;  %6763 = vst [vmem:[#allocation107_spill] sm:$0xff] %v4969_v38 }
  0xe5   :  { %1928 = vmatpush1.bf16.msra.mxu1 %v4933_v44  ;;  %1888 = vmatprep.subr.bf16.mxu0 %v4935_v46  ;;  %6760 = vst [vmem:[#allocation104_spill] sm:$0xff] %v4959_v35  ;;  %v1086_v46 = vld [vmem:[#allocation11 + $0x1b0] sm:$0xff]  ;;  %v1083_v44 = vld [vmem:[#allocation11 + $0x198] sm:$0xff]  ;;  %6762 = vst [vmem:[#allocation106_spill] sm:$0xff] %v4965_v0 }
  0xe6   :  { %1929 = vmatprep.subr.bf16.mxu1 %v4938_v50  ;;  %v1082_v50 = vld [vmem:[#allocation11 + $0x190] sm:$0xff]  ;;  %v4974_v2 = vcombine.high %v1083_v44, %v1087_v47  ;;  %v4981_v32 = vcombine.low %v1083_v44, %v1087_v47 }
  0xe7   :  { %v4971_v51 = vcombine.high %v1082_v50, %v1086_v46  ;;  %v4977_v28 = vcombine.low %v1082_v50, %v1086_v46 }
  0xe8   :  { %1889 = vmatpush1.bf16.msra.mxu0 %v4941_v16  ;;  %6765 = vst [vmem:[#allocation109_spill] sm:$0xff] %v4974_v2  ;;  %v1095_v16 = vld [vmem:[#allocation11 + $0x1f8] sm:$0xff]  ;;  %6767 = vst [vmem:[#allocation111_spill] sm:$0xff] %v4981_v32 }
  0xe9   :  { %1930 = vmatpush1.bf16.msra.mxu1 %v4945_v3  ;;  %1890 = vmatprep.subr.bf16.mxu0 %v4947_v17  ;;  %6764 = vst [vmem:[#allocation108_spill] sm:$0xff] %v4971_v51  ;;  %v1094_v17 = vld [vmem:[#allocation11 + $0x1f0] sm:$0xff]  ;;  %v1091_v3 = vld [vmem:[#allocation11 + $0x1d8] sm:$0xff]  ;;  %6766 = vst [vmem:[#allocation110_spill] sm:$0xff] %v4977_v28 }
  0xea   :  { %1931 = vmatprep.subr.bf16.mxu1 %v4950_v8  ;;  %v1090_v8 = vld [vmem:[#allocation11 + $0x1d0] sm:$0xff]  ;;  %v4986_v34 = vcombine.high %v1091_v3, %v1095_v16  ;;  %v4993_v47 = vcombine.low %v1091_v3, %v1095_v16 }
  0xeb   :  { %v4983_v18 = vcombine.high %v1090_v8, %v1094_v17  ;;  %v4989_v46 = vcombine.low %v1090_v8, %v1094_v17 }
  0xec   :  { %1891 = vmatpush1.bf16.msra.mxu0 %v4953_v43  ;;  %6769 = vst [vmem:[#allocation113_spill] sm:$0xff] %v4986_v34  ;;  %v1103_v43 = vld [vmem:[#allocation11 + $0x238] sm:$0xff]  ;;  %6771 = vst [vmem:[#allocation115_spill] sm:$0xff] %v4993_v47 }
  0xed   :  { %1932 = vmatpush1.bf16.msra.mxu1 %v4957_v39  ;;  %1892 = vmatprep.subr.bf16.mxu0 %v4959_v35  ;;  %6768 = vst [vmem:[#allocation112_spill] sm:$0xff] %v4983_v18  ;;  %v1102_v35 = vld [vmem:[#allocation11 + $0x230] sm:$0xff]  ;;  %v1099_v39 = vld [vmem:[#allocation11 + $0x218] sm:$0xff]  ;;  %6770 = vst [vmem:[#allocation114_spill] sm:$0xff] %v4989_v46 }
  0xee   :  { %1933 = vmatprep.subr.bf16.mxu1 %v4962_v1  ;;  %v1098_v1 = vld [vmem:[#allocation11 + $0x210] sm:$0xff]  ;;  %v4998_v50 = vcombine.high %v1099_v39, %v1103_v43  ;;  %v5005_v16 = vcombine.low %v1099_v39, %v1103_v43 }
  0xef   :  { %v4995_v44 = vcombine.high %v1098_v1, %v1102_v35  ;;  %v5001_v17 = vcombine.low %v1098_v1, %v1102_v35 }
  0xf0   :  { %1893 = vmatpush1.bf16.msra.mxu0 %v4965_v0  ;;  %6773 = vst [vmem:[#allocation117_spill] sm:$0xff] %v4998_v50  ;;  %v1111_v0 = vld [vmem:[#allocation11 + $0x278] sm:$0xff]  ;;  %6775 = vst [vmem:[#allocation119_spill] sm:$0xff] %v5005_v16 }
  0xf1   :  { %1934 = vmatpush1.bf16.msra.mxu1 %v4969_v38  ;;  %1894 = vmatprep.subr.bf16.mxu0 %v4971_v51  ;;  %6772 = vst [vmem:[#allocation116_spill] sm:$0xff] %v4995_v44  ;;  %v1110_v51 = vld [vmem:[#allocation11 + $0x270] sm:$0xff]  ;;  %v1107_v38 = vld [vmem:[#allocation11 + $0x258] sm:$0xff]  ;;  %6774 = vst [vmem:[#allocation118_spill] sm:$0xff] %v5001_v17 }
  0xf2   :  { %1935 = vmatprep.subr.bf16.mxu1 %v4974_v2  ;;  %v1106_v2 = vld [vmem:[#allocation11 + $0x250] sm:$0xff]  ;;  %v5010_v8 = vcombine.high %v1107_v38, %v1111_v0  ;;  %v5017_v43 = vcombine.low %v1107_v38, %v1111_v0 }
  0xf3   :  { %v5007_v3 = vcombine.high %v1106_v2, %v1110_v51  ;;  %v5013_v35 = vcombine.low %v1106_v2, %v1110_v51 }
  0xf4   :  { %1895 = vmatpush1.bf16.msra.mxu0 %v4977_v28  ;;  %6777 = vst [vmem:[#allocation121_spill] sm:$0xff] %v5010_v8  ;;  %v1119_v28 = vld [vmem:[#allocation11 + $0x2b8] sm:$0xff]  ;;  %6779 = vst [vmem:[#allocation123_spill] sm:$0xff] %v5017_v43 }
  0xf5   :  { %1936 = vmatpush1.bf16.msra.mxu1 %v4981_v32  ;;  %1896 = vmatprep.subr.bf16.mxu0 %v4983_v18  ;;  %6776 = vst [vmem:[#allocation120_spill] sm:$0xff] %v5007_v3  ;;  %v1118_v18 = vld [vmem:[#allocation11 + $0x2b0] sm:$0xff]  ;;  %v1115_v32 = vld [vmem:[#allocation11 + $0x298] sm:$0xff]  ;;  %6778 = vst [vmem:[#allocation122_spill] sm:$0xff] %v5013_v35 }
  0xf6   :  { %1937 = vmatprep.subr.bf16.mxu1 %v4986_v34  ;;  %v1114_v34 = vld [vmem:[#allocation11 + $0x290] sm:$0xff]  ;;  %v5022_v1 = vcombine.high %v1115_v32, %v1119_v28  ;;  %v5029_v0 = vcombine.low %v1115_v32, %v1119_v28 }
  0xf7   :  { %v5019_v39 = vcombine.high %v1114_v34, %v1118_v18  ;;  %v5025_v51 = vcombine.low %v1114_v34, %v1118_v18 }
  0xf8   :  { %1897 = vmatpush1.bf16.msra.mxu0 %v4989_v46  ;;  %6781 = vst [vmem:[#allocation125_spill] sm:$0xff] %v5022_v1  ;;  %v1127_v46 = vld [vmem:[#allocation11 + $0x2f8] sm:$0xff]  ;;  %6783 = vst [vmem:[#allocation127_spill] sm:$0xff] %v5029_v0 }
  0xf9   :  { %1938 = vmatpush1.bf16.msra.mxu1 %v4993_v47  ;;  %1898 = vmatprep.subr.bf16.mxu0 %v4995_v44  ;;  %6780 = vst [vmem:[#allocation124_spill] sm:$0xff] %v5019_v39  ;;  %v1126_v44 = vld [vmem:[#allocation11 + $0x2f0] sm:$0xff]  ;;  %v1123_v47 = vld [vmem:[#allocation11 + $0x2d8] sm:$0xff]  ;;  %6782 = vst [vmem:[#allocation126_spill] sm:$0xff] %v5025_v51 }
  0xfa   :  { %1939 = vmatprep.subr.bf16.mxu1 %v4998_v50  ;;  %v1122_v50 = vld [vmem:[#allocation11 + $0x2d0] sm:$0xff]  ;;  %v5034_v2 = vcombine.high %v1123_v47, %v1127_v46  ;;  %v5041_v28 = vcombine.low %v1123_v47, %v1127_v46 }
  0xfb   :  { %v5031_v38 = vcombine.high %v1122_v50, %v1126_v44  ;;  %v5037_v18 = vcombine.low %v1122_v50, %v1126_v44 }
  0xfc   :  { %1899 = vmatpush1.bf16.msra.mxu0 %v5001_v17  ;;  %6785 = vst [vmem:[#allocation129_spill] sm:$0xff] %v5034_v2  ;;  %v1135_v17 = vld [vmem:[#allocation11 + $0x338] sm:$0xff]  ;;  %6787 = vst [vmem:[#allocation131_spill] sm:$0xff] %v5041_v28 }
  0xfd   :  { %1940 = vmatpush1.bf16.msra.mxu1 %v5005_v16  ;;  %1900 = vmatprep.subr.bf16.mxu0 %v5007_v3  ;;  %6784 = vst [vmem:[#allocation128_spill] sm:$0xff] %v5031_v38  ;;  %v1134_v3 = vld [vmem:[#allocation11 + $0x330] sm:$0xff]  ;;  %v1131_v16 = vld [vmem:[#allocation11 + $0x318] sm:$0xff]  ;;  %6786 = vst [vmem:[#allocation130_spill] sm:$0xff] %v5037_v18 }
  0xfe   :  { %1941 = vmatprep.subr.bf16.mxu1 %v5010_v8  ;;  %v1130_v8 = vld [vmem:[#allocation11 + $0x310] sm:$0xff]  ;;  %v5046_v34 = vcombine.high %v1131_v16, %v1135_v17  ;;  %v5053_v46 = vcombine.low %v1131_v16, %v1135_v17 }
  0xff   :  { %v5043_v32 = vcombine.high %v1130_v8, %v1134_v3  ;;  %v5049_v44 = vcombine.low %v1130_v8, %v1134_v3 }
 0x100   :  { %1901 = vmatpush1.bf16.msra.mxu0 %v5013_v35  ;;  %6789 = vst [vmem:[#allocation133_spill] sm:$0xff] %v5046_v34  ;;  %v1143_v35 = vld [vmem:[#allocation11 + $0x378] sm:$0xff]  ;;  %6791 = vst [vmem:[#allocation135_spill] sm:$0xff] %v5053_v46 }
 0x101   :  { %1942 = vmatpush1.bf16.msra.mxu1 %v5017_v43  ;;  %1902 = vmatprep.subr.bf16.mxu0 %v5019_v39  ;;  %6788 = vst [vmem:[#allocation132_spill] sm:$0xff] %v5043_v32  ;;  %v1142_v39 = vld [vmem:[#allocation11 + $0x370] sm:$0xff]  ;;  %v1139_v43 = vld [vmem:[#allocation11 + $0x358] sm:$0xff]  ;;  %6790 = vst [vmem:[#allocation134_spill] sm:$0xff] %v5049_v44 }
 0x102   :  { %1943 = vmatprep.subr.bf16.mxu1 %v5022_v1  ;;  %v1138_v1 = vld [vmem:[#allocation11 + $0x350] sm:$0xff]  ;;  %v5058_v50 = vcombine.high %v1139_v43, %v1143_v35  ;;  %v5065_v17 = vcombine.low %v1139_v43, %v1143_v35 }
 0x103   :  { %v5055_v47 = vcombine.high %v1138_v1, %v1142_v39  ;;  %v5061_v3 = vcombine.low %v1138_v1, %v1142_v39 }
 0x104   :  { %1903 = vmatpush1.bf16.msra.mxu0 %v5025_v51  ;;  %6793 = vst [vmem:[#allocation137_spill] sm:$0xff] %v5058_v50  ;;  %v1151_v51 = vld [vmem:[#allocation11 + $0x3b8] sm:$0xff]  ;;  %6795 = vst [vmem:[#allocation139_spill] sm:$0xff] %v5065_v17 }
 0x105   :  { %1944 = vmatpush1.bf16.msra.mxu1 %v5029_v0  ;;  %1904 = vmatprep.subr.bf16.mxu0 %v5031_v38  ;;  %6792 = vst [vmem:[#allocation136_spill] sm:$0xff] %v5055_v47  ;;  %v1150_v38 = vld [vmem:[#allocation11 + $0x3b0] sm:$0xff]  ;;  %v1147_v0 = vld [vmem:[#allocation11 + $0x398] sm:$0xff]  ;;  %6794 = vst [vmem:[#allocation138_spill] sm:$0xff] %v5061_v3 }
 0x106   :  { %1945 = vmatprep.subr.bf16.mxu1 %v5034_v2  ;;  %v1146_v2 = vld [vmem:[#allocation11 + $0x390] sm:$0xff]  ;;  %v5070_v8 = vcombine.high %v1147_v0, %v1151_v51  ;;  %v5077_v35 = vcombine.low %v1147_v0, %v1151_v51  ;;  %v6804_v0 = vld [vmem:[#allocation63_spill] sm:$0xff] }
 0x107   :  { %v5067_v16 = vcombine.high %v1146_v2, %v1150_v38  ;;  %v5073_v39 = vcombine.low %v1146_v2, %v1150_v38  ;;  %v6805_v2 = vld [vmem:[#allocation64_spill] sm:$0xff] }
 0x108   :  { %1905 = vmatpush1.bf16.msra.mxu0 %v5037_v18  ;;  %6797 = vst [vmem:[#allocation141_spill] sm:$0xff] %v5070_v8  ;;  %v1159_v18 = vld [vmem:[#allocation11 + $0x3f8] sm:$0xff]  ;;  %6799 = vst [vmem:[#allocation143_spill] sm:$0xff] %v5077_v35 }
 0x109   :  { %1946 = vmatpush1.bf16.msra.mxu1 %v5041_v28  ;;  %1906 = vmatprep.subr.bf16.mxu0 %v5043_v32  ;;  %6796 = vst [vmem:[#allocation140_spill] sm:$0xff] %v5067_v16  ;;  %v1158_v32 = vld [vmem:[#allocation11 + $0x3f0] sm:$0xff]  ;;  %v1155_v28 = vld [vmem:[#allocation11 + $0x3d8] sm:$0xff]  ;;  %6798 = vst [vmem:[#allocation142_spill] sm:$0xff] %v5073_v39 }
 0x10a   :  { %1947 = vmatprep.subr.bf16.mxu1 %v5046_v34  ;;  %v1154_v34 = vld [vmem:[#allocation11 + $0x3d0] sm:$0xff]  ;;  %v5082_v1 = vcombine.high %v1155_v28, %v1159_v18  ;;  %v5089_v38 = vcombine.low %v1155_v28, %v1159_v18  ;;  %v6807_v28 = vld [vmem:[#allocation66_spill] sm:$0xff] }
 0x10b   :  { %v5079_v43 = vcombine.high %v1154_v34, %v1158_v32  ;;  %v6806_v18 = vld [vmem:[#allocation65_spill] sm:$0xff] }
 0x10c   :  { %1907 = vmatpush1.bf16.msra.mxu0 %v5049_v44  ;;  %6801 = vst [vmem:[#allocation145_spill] sm:$0xff] %v5082_v1  ;;  %6803 = vst [vmem:[#allocation147_spill] sm:$0xff] %v5089_v38 }
 0x10d   :  { %1948 = vmatpush1.bf16.msra.mxu1 %v5053_v46  ;;  %1908 = vmatprep.subr.bf16.mxu0 %v5055_v47  ;;  %6800 = vst [vmem:[#allocation144_spill] sm:$0xff] %v5079_v43 }
 0x10e   :  { %1949 = vmatprep.subr.bf16.mxu1 %v5058_v50  ;;  %v5085_v50 = vcombine.low %v1154_v34, %v1158_v32  ;;  %v6808_v34 = vld [vmem:[#allocation67_spill] sm:$0xff] }
 0x110   :  { %1909 = vmatpush1.bf16.msra.mxu0 %v5061_v3  ;;  %6802 = vst [vmem:[#allocation146_spill] sm:$0xff] %v5085_v50 }
 0x111   :  { %1950 = vmatpush1.bf16.msra.mxu1 %v5065_v17  ;;  %1910 = vmatprep.subr.bf16.mxu0 %v5067_v16 }
 0x112   :  { %1951 = vmatprep.subr.bf16.mxu1 %v5070_v8 }
 0x114   :  { %1911 = vmatpush1.bf16.msra.mxu0 %v5073_v39 }
 0x115   :  { %1952 = vmatpush1.bf16.msra.mxu1 %v5077_v35  ;;  %1912 = vmatprep.subr.bf16.mxu0 %v5079_v43 }
 0x116   :  { %1953 = vmatprep.subr.bf16.mxu1 %v5082_v1 }
 0x118   :  { %1913 = vmatpush1.bf16.msra.mxu0 %v5085_v50 }
 0x119   :  { %1954 = vmatpush1.bf16.msra.mxu1 %v5089_v38  ;;  %2018 = vmatprep.subr.bf16.mxu0 %v4688_v53 }
 0x11a   :  { %2059 = vmatprep.subr.bf16.mxu1 %v4691_v54 }
 0x11b   :  { %1915 = vmatmul.mubr.bf16.vlgmr.msra.gmra.mrb[36].mxu0 %v6745_v11 }
 0x11c   :  { %1956 = vmatmul.mubr.bf16.vlgmr.msra.gmra.mrb[36].mxu1 %v6745_v11  ;;  %2019 = vmatpush1.bf16.msra.mxu0 %v4694_v59  ;;  %v308_v11 = vlaneseq }
 0x11d   :  { %2060 = vmatpush1.bf16.msra.mxu1 %v4697_v61  ;;  %2020 = vmatprep.subr.bf16.mxu0 %v4699_v62 }
 0x11e   :  { %2061 = vmatprep.subr.bf16.mxu1 %v4702_v63  ;;  %v5139_v51 = vshrl.u32 %v308_v11, 7 }
 0x120   :  { %2021 = vmatpush1.bf16.msra.mxu0 %v4707_v4  ;;  %v310_v32 = vsub.s32 0, %v5139_v51  ;;  %v318_v11 = vsub.s32 2, %v5139_v51 }
 0x121   :  { %2062 = vmatpush1.bf16.msra.mxu1 %v4711_v5  ;;  %2022 = vmatprep.subr.bf16.mxu0 %v4713_v6 }
 0x122   :  { %2063 = vmatprep.subr.bf16.mxu1 %v4716_v7 }
 0x124   :  { %2023 = vmatpush1.bf16.msra.mxu0 %v4721_v12 }
 0x125   :  { %2064 = vmatpush1.bf16.msra.mxu1 %v4725_v13  ;;  %2024 = vmatprep.subr.bf16.mxu0 %v4727_v14 }
 0x126   :  { %2065 = vmatprep.subr.bf16.mxu1 %v4730_v15 }
 0x128   :  { %2025 = vmatpush1.bf16.msra.mxu0 %v4734_v21 }
 0x129   :  { %2066 = vmatpush1.bf16.msra.mxu1 %v4739_v22  ;;  %2026 = vmatprep.subr.bf16.mxu0 %v4741_v23 }
 0x12a   :  { %2067 = vmatprep.subr.bf16.mxu1 %v4744_v24 }
 0x12c   :  { %2027 = vmatpush1.bf16.msra.mxu0 %v4749_v60 }
 0x12d   :  { %2068 = vmatpush1.bf16.msra.mxu1 %v4753_v29  ;;  %2028 = vmatprep.subr.bf16.mxu0 %v4755_v30 }
 0x12e   :  { %2069 = vmatprep.subr.bf16.mxu1 %v4758_v31 }
 0x130   :  { %2029 = vmatpush1.bf16.msra.mxu0 %v4762_v37 }
 0x131   :  { %2070 = vmatpush1.bf16.msra.mxu1 %v4767_v41  ;;  %2030 = vmatprep.subr.bf16.mxu0 %v4769_v42 }
 0x132   :  { %2071 = vmatprep.subr.bf16.mxu1 %v4772_v45 }
 0x134   :  { %2031 = vmatpush1.bf16.msra.mxu0 %v4777_v20 }
 0x135   :  { %2072 = vmatpush1.bf16.msra.mxu1 %v4781_v48  ;;  %2032 = vmatprep.subr.bf16.mxu0 %v4783_v49  ;;  %v6834_v49 = vld [vmem:[#allocation84_spill] sm:$0xff] }
 0x136   :  { %2073 = vmatprep.subr.bf16.mxu1 %v4786_v52  ;;  %v6825_v52 = vld [vmem:[#allocation80_spill] sm:$0xff] }
 0x138   :  { %2033 = vmatpush1.bf16.msra.mxu0 %v4790_v55  ;;  %v6821_v55 = vld [vmem:[#allocation77_spill] sm:$0xff] }
 0x139   :  { %2074 = vmatpush1.bf16.msra.mxu1 %v4795_v56  ;;  %2034 = vmatprep.subr.bf16.mxu0 %v4797_v57  ;;  %v6818_v57 = vld [vmem:[#allocation76_spill] sm:$0xff] }
 0x13a   :  { %2075 = vmatprep.subr.bf16.mxu1 %v4800_v58  ;;  %v6817_v58 = vld [vmem:[#allocation75_spill] sm:$0xff] }
 0x13c   :  { %2035 = vmatpush1.bf16.msra.mxu0 %v4805_v40 }
 0x13d   :  { %2076 = vmatpush1.bf16.msra.mxu1 %v4809_v9  ;;  %2036 = vmatprep.subr.bf16.mxu0 %v4811_v10 }
 0x13e   :  { %2077 = vmatprep.subr.bf16.mxu1 %v4814_v33  ;;  %v6814_v33 = vld [vmem:[#allocation73_spill] sm:$0xff] }
 0x140   :  { %2037 = vmatpush1.bf16.msra.mxu0 %v4817_v19 }
 0x141   :  { %2078 = vmatpush1.bf16.msra.mxu1 %v4821_v25  ;;  %2038 = vmatprep.subr.bf16.mxu0 %v4823_v26  ;;  %v6809_v25 = vld [vmem:[#allocation68_spill] sm:$0xff] }
 0x142   :  { %2079 = vmatprep.subr.bf16.mxu1 %v4826_v27 }
 0x144   :  { %2039 = vmatpush1.bf16.msra.mxu0 %v4829_v36  ;;  %v5151_v36 = vld [vmem:[%s6404_s4] sm:$0xff] }
 0x145   :  { %2080 = vmatpush1.bf16.msra.mxu1 %v6804_v0  ;;  %2040 = vmatprep.subr.bf16.mxu0 %v6805_v2  ;;  %v6810_v0 = vld [vmem:[#allocation69_spill] sm:$0xff]  ;;  %v322_v2 = vsub.s32 3, %v5139_v51  ;;  %v5159_v27 = vrot.slane %v5151_v36, %v310_v32  ;;  %v5166_v19 = vrot.slane %v5151_v36, %v318_v11 }
 0x146   :  { %2081 = vmatprep.subr.bf16.mxu1 %v6806_v18  ;;  %v314_v18 = vsub.s32 1, %v5139_v51 }
 0x148   :  { %2041 = vmatpush1.bf16.msra.mxu0 %v6807_v28  ;;  %v6811_v28 = vld [vmem:[#allocation70_spill] sm:$0xff]  ;;  %v5177_v32 = vrot.slane %v5151_v36, %v314_v18 }
 0x149   :  { %2082 = vmatpush1.bf16.msra.mxu1 %v6808_v34  ;;  %2042 = vmatprep.subr.bf16.mxu0 %v6809_v25  ;;  %v6812_v34 = vld [vmem:[#allocation71_spill] sm:$0xff]  ;;  %v6813_v25 = vld [vmem:[#allocation72_spill] sm:$0xff] }
 0x14a   :  { %2083 = vmatprep.subr.bf16.mxu1 %v6810_v0 }
 0x14c   :  { %2043 = vmatpush1.bf16.msra.mxu0 %v6811_v28  ;;  %v5174_v28 = vrot.slane %v5151_v36, %v322_v2 }
 0x14d   :  { %2084 = vmatpush1.bf16.msra.mxu1 %v6812_v34  ;;  %2044 = vmatprep.subr.bf16.mxu0 %v6813_v25  ;;  %v6815_v25 = vld [vmem:[#allocation74_spill] sm:$0xff] }
 0x14e   :  { %v5163_v26 = vpop.f32.mrb[0].mxu0  ;;  %2085 = vmatprep.subr.bf16.mxu1 %v6814_v33  ;;  %v5171_v10 = vpop.f32.mrb[0].mxu1 }
 0x14f   :  { %v5169_v0 = vpop.f32.mrb[1].mxu0  ;;  %v5179_v9 = vpop.f32.mrb[1].mxu1 }
 0x150   :  { %v706_v34 = vpop.f32.mrb[2].mxu0  ;;  %2045 = vmatpush1.bf16.msra.mxu0 %v6815_v25  ;;  %v779_v33 = vpop.f32.mrb[2].mxu1 }
 0x151   :  { %v5183_v11 = vadd.f32 %v706_v34, %v5159_v27  ;;  %v708_v40 = vpop.f32.mrb[3].mxu0  ;;  %2086 = vmatpush1.bf16.msra.mxu1 %v6817_v58  ;;  %2046 = vmatprep.subr.bf16.mxu0 %v6818_v57  ;;  %v5191_v18 = vadd.f32 %v779_v33, %v5166_v19  ;;  %v781_v56 = vpop.f32.mrb[3].mxu1  ;;  %v6823_v34 = vld [vmem:[#allocation78_spill] sm:$0xff]  ;;  %v6826_v57 = vld [vmem:[#allocation81_spill] sm:$0xff] }
 0x152   :  { %v5188_v2 = vadd.f32 %v708_v40, %v5177_v32  ;;  %2087 = vmatprep.subr.bf16.mxu1 %v6821_v55  ;;  %v5195_v25 = vadd.f32 %v781_v56, %v5174_v28 }
 0x153   :  { %6816 = vst [vmem:[#allocation148_spill] sm:$0xff] %v5183_v11  ;;  %6820 = vst [vmem:[#allocation150_spill] sm:$0xff] %v5191_v18  ;;  %v6824_v11 = vld [vmem:[#allocation79_spill] sm:$0xff] }
 0x154   :  { %6819 = vst [vmem:[#allocation149_spill] sm:$0xff] %v5188_v2  ;;  %6822 = vst [vmem:[#allocation151_spill] sm:$0xff] %v5195_v25  ;;  %2047 = vmatpush1.bf16.msra.mxu0 %v6823_v34  ;;  %v6830_v34 = vld [vmem:[#allocation82_spill] sm:$0xff] }
 0x155   :  { %2088 = vmatpush1.bf16.msra.mxu1 %v6824_v11  ;;  %2048 = vmatprep.subr.bf16.mxu0 %v6825_v52 }
 0x156   :  { %v712_v58 = vpop.f32.mrb[4].mxu0  ;;  %2089 = vmatprep.subr.bf16.mxu1 %v6826_v57  ;;  %v785_v2 = vpop.f32.mrb[4].mxu1 }
 0x157   :  { %v5202_v40 = vadd.f32 %v712_v58, %v5159_v27  ;;  %v714_v33 = vpop.f32.mrb[5].mxu0  ;;  %v5208_v56 = vadd.f32 %v785_v2, %v5166_v19  ;;  %v787_v25 = vpop.f32.mrb[5].mxu1 }
 0x158   :  { %v5205_v18 = vadd.f32 %v714_v33, %v5177_v32  ;;  %v716_v55 = vpop.f32.mrb[6].mxu0  ;;  %2049 = vmatpush1.bf16.msra.mxu0 %v6830_v34  ;;  %v5215_v57 = vadd.f32 %v787_v25, %v5174_v28  ;;  %v789_v58 = vpop.f32.mrb[6].mxu1 }
 0x159   :  { %6827 = vst [vmem:[#allocation152_spill] sm:$0xff] %v5202_v40  ;;  %6829 = vst [vmem:[#allocation154_spill] sm:$0xff] %v5208_v56  ;;  %v5212_v52 = vadd.f32 %v716_v55, %v5159_v27  ;;  %v718_v11 = vpop.f32.mrb[7].mxu0  ;;  %v6833_v40 = vld [vmem:[#allocation83_spill] sm:$0xff]  ;;  %2100 = vmatprep.subr.bf16.mxu0 %v6834_v49  ;;  %v5223_v2 = vadd.f32 %v789_v58, %v5166_v19  ;;  %v6837_v56 = vld [vmem:[#allocation85_spill] sm:$0xff] }
 0x15a   :  { %6828 = vst [vmem:[#allocation153_spill] sm:$0xff] %v5205_v18  ;;  %6832 = vst [vmem:[#allocation156_spill] sm:$0xff] %v5215_v57  ;;  %2090 = vmatpush1.bf16.msra.mxu1 %v6833_v40  ;;  %v5220_v33 = vadd.f32 %v718_v11, %v5177_v32  ;;  %v791_v18 = vpop.f32.mrb[7].mxu1 }
 0x15b   :  { %6831 = vst [vmem:[#allocation155_spill] sm:$0xff] %v5212_v52  ;;  %6836 = vst [vmem:[#allocation158_spill] sm:$0xff] %v5223_v2  ;;  %2141 = vmatprep.subr.bf16.mxu1 %v6837_v56  ;;  %v5227_v55 = vadd.f32 %v791_v18, %v5174_v28 }
 0x15c   :  { %6835 = vst [vmem:[#allocation157_spill] sm:$0xff] %v5220_v33 }
 0x15d   :  { %6838 = vst [vmem:[#allocation159_spill] sm:$0xff] %v5227_v55 }
 0x15e   :  { %v722_v52 = vpop.f32.mrb[8].mxu0 }
 0x15f   :  { %v5230_v25 = vadd.f32 %v722_v52, %v5159_v27  ;;  %v724_v57 = vpop.f32.mrb[9].mxu0  ;;  %v795_v40 = vpop.f32.mrb[8].mxu1 }
 0x160   :  { %v5233_v49 = vadd.f32 %v724_v57, %v5177_v32  ;;  %v726_v11 = vpop.f32.mrb[10].mxu0  ;;  %v5236_v33 = vadd.f32 %v795_v40, %v5166_v19  ;;  %v797_v58 = vpop.f32.mrb[9].mxu1 }
 0x161   :  { %6839 = vst [vmem:[#allocation160_spill] sm:$0xff] %v5230_v25  ;;  %v5239_v2 = vadd.f32 %v726_v11, %v5159_v27  ;;  %v728_v56 = vpop.f32.mrb[11].mxu0  ;;  %v5242_v18 = vadd.f32 %v797_v58, %v5174_v28  ;;  %v799_v55 = vpop.f32.mrb[10].mxu1 }
 0x162   :  { %6840 = vst [vmem:[#allocation161_spill] sm:$0xff] %v5233_v49  ;;  %6841 = vst [vmem:[#allocation162_spill] sm:$0xff] %v5236_v33  ;;  %v5245_v52 = vadd.f32 %v728_v56, %v5177_v32  ;;  %v5248_v25 = vadd.f32 %v799_v55, %v5166_v19  ;;  %v801_v57 = vpop.f32.mrb[11].mxu1 }
 0x163   :  { %6842 = vst [vmem:[#allocation163_spill] sm:$0xff] %v5239_v2  ;;  %6843 = vst [vmem:[#allocation164_spill] sm:$0xff] %v5242_v18  ;;  %v5251_v49 = vadd.f32 %v801_v57, %v5174_v28 }
 0x164   :  { %6844 = vst [vmem:[#allocation165_spill] sm:$0xff] %v5245_v52  ;;  %6845 = vst [vmem:[#allocation166_spill] sm:$0xff] %v5248_v25 }
 0x165   :  { %6846 = vst [vmem:[#allocation167_spill] sm:$0xff] %v5251_v49 }
 0x166   :  { %v732_v40 = vpop.f32.mrb[12].mxu0 }
 0x167   :  { %v5254_v33 = vadd.f32 %v732_v40, %v5159_v27  ;;  %v734_v11 = vpop.f32.mrb[13].mxu0  ;;  %v805_v2 = vpop.f32.mrb[12].mxu1  ;;  %v326_v40 = vsub.s32 4, %v5139_v51 }
 0x168   :  { %v5257_v58 = vadd.f32 %v734_v11, %v5177_v32  ;;  %v736_v18 = vpop.f32.mrb[14].mxu0  ;;  %v5260_v56 = vadd.f32 %v805_v2, %v5166_v19  ;;  %v807_v52 = vpop.f32.mrb[13].mxu1  ;;  %v334_v2 = vsub.s32 6, %v5139_v51 }
 0x169   :  { %6847 = vst [vmem:[#allocation168_spill] sm:$0xff] %v5254_v33  ;;  %v5263_v55 = vadd.f32 %v736_v18, %v5159_v27  ;;  %v738_v25 = vpop.f32.mrb[15].mxu0  ;;  %v5266_v57 = vadd.f32 %v807_v52, %v5174_v28  ;;  %v809_v33 = vpop.f32.mrb[14].mxu1  ;;  %v338_v18 = vsub.s32 7, %v5139_v51  ;;  %v330_v52 = vsub.s32 5, %v5139_v51 }
 0x16a   :  { %6848 = vst [vmem:[#allocation169_spill] sm:$0xff] %v5257_v58  ;;  %6849 = vst [vmem:[#allocation170_spill] sm:$0xff] %v5260_v56  ;;  %v5270_v49 = vadd.f32 %v738_v25, %v5177_v32  ;;  %v5273_v11 = vadd.f32 %v809_v33, %v5166_v19  ;;  %v811_v58 = vpop.f32.mrb[15].mxu1  ;;  %v5287_v25 = vrot.slane %v5151_v36, %v334_v2 }
 0x16b   :  { %6850 = vst [vmem:[#allocation171_spill] sm:$0xff] %v5263_v55  ;;  %6851 = vst [vmem:[#allocation172_spill] sm:$0xff] %v5266_v57  ;;  %v5277_v56 = vadd.f32 %v811_v58, %v5174_v28  ;;  %v5282_v55 = vrot.slane %v5151_v36, %v326_v40  ;;  %v5297_v58 = vrot.slane %v5151_v36, %v330_v52 }
 0x16c   :  { %6852 = vst [vmem:[#allocation173_spill] sm:$0xff] %v5270_v49  ;;  %6853 = vst [vmem:[#allocation174_spill] sm:$0xff] %v5273_v11  ;;  %v5294_v11 = vrot.slane %v5151_v36, %v338_v18 }
 0x16d   :  { %6854 = vst [vmem:[#allocation175_spill] sm:$0xff] %v5277_v56 }
 0x16e   :  { %v5284_v57 = vpop.f32.mrb[16].mxu0 }
 0x16f   :  { %v5289_v33 = vpop.f32.mrb[17].mxu0  ;;  %v5291_v49 = vpop.f32.mrb[16].mxu1 }
 0x170   :  { %v852_v56 = vpop.f32.mrb[18].mxu0  ;;  %v5299_v51 = vpop.f32.mrb[17].mxu1 }
 0x171   :  { %v5302_v40 = vadd.f32 %v852_v56, %v5282_v55  ;;  %v854_v34 = vpop.f32.mrb[19].mxu0  ;;  %v925_v48 = vpop.f32.mrb[18].mxu1 }
 0x172   :  { %v5305_v2 = vadd.f32 %v854_v34, %v5297_v58  ;;  %v5308_v20 = vadd.f32 %v925_v48, %v5287_v25  ;;  %v927_v45 = vpop.f32.mrb[19].mxu1 }
 0x173   :  { %6855 = vst [vmem:[#allocation176_spill] sm:$0xff] %v5302_v40  ;;  %v5311_v18 = vadd.f32 %v927_v45, %v5294_v11 }
 0x174   :  { %6856 = vst [vmem:[#allocation177_spill] sm:$0xff] %v5305_v2  ;;  %6857 = vst [vmem:[#allocation178_spill] sm:$0xff] %v5308_v20 }
 0x175   :  { %6858 = vst [vmem:[#allocation179_spill] sm:$0xff] %v5311_v18 }
 0x176   :  { %v858_v36 = vpop.f32.mrb[20].mxu0 }
 0x177   :  { %v5314_v52 = vadd.f32 %v858_v36, %v5282_v55  ;;  %v860_v42 = vpop.f32.mrb[21].mxu0  ;;  %v931_v41 = vpop.f32.mrb[20].mxu1 }
 0x178   :  { %v5317_v56 = vadd.f32 %v860_v42, %v5297_v58  ;;  %v862_v40 = vpop.f32.mrb[22].mxu0  ;;  %v5320_v34 = vadd.f32 %v931_v41, %v5287_v25  ;;  %v933_v2 = vpop.f32.mrb[21].mxu1 }
 0x179   :  { %6859 = vst [vmem:[#allocation180_spill] sm:$0xff] %v5314_v52  ;;  %v5323_v48 = vadd.f32 %v862_v40, %v5282_v55  ;;  %v864_v20 = vpop.f32.mrb[23].mxu0  ;;  %v5326_v45 = vadd.f32 %v933_v2, %v5294_v11  ;;  %v935_v18 = vpop.f32.mrb[22].mxu1 }
 0x17a   :  { %6860 = vst [vmem:[#allocation181_spill] sm:$0xff] %v5317_v56  ;;  %6861 = vst [vmem:[#allocation182_spill] sm:$0xff] %v5320_v34  ;;  %v5329_v36 = vadd.f32 %v864_v20, %v5297_v58  ;;  %v5332_v52 = vadd.f32 %v935_v18, %v5287_v25  ;;  %v937_v42 = vpop.f32.mrb[23].mxu1 }
 0x17b   :  { %6862 = vst [vmem:[#allocation183_spill] sm:$0xff] %v5323_v48  ;;  %6863 = vst [vmem:[#allocation184_spill] sm:$0xff] %v5326_v45  ;;  %v5335_v56 = vadd.f32 %v937_v42, %v5294_v11 }
 0x17c   :  { %6864 = vst [vmem:[#allocation185_spill] sm:$0xff] %v5329_v36  ;;  %6865 = vst [vmem:[#allocation186_spill] sm:$0xff] %v5332_v52 }
 0x17d   :  { %6866 = vst [vmem:[#allocation187_spill] sm:$0xff] %v5335_v56 }
 0x17e   :  { %v868_v41 = vpop.f32.mrb[24].mxu0 }
 0x17f   :  { %v5338_v34 = vadd.f32 %v868_v41, %v5282_v55  ;;  %v870_v40 = vpop.f32.mrb[25].mxu0  ;;  %v941_v48 = vpop.f32.mrb[24].mxu1 }
 0x180   :  { %v5341_v2 = vadd.f32 %v870_v40, %v5297_v58  ;;  %v872_v45 = vpop.f32.mrb[26].mxu0  ;;  %v5344_v20 = vadd.f32 %v941_v48, %v5287_v25  ;;  %v943_v36 = vpop.f32.mrb[25].mxu1 }
 0x181   :  { %6867 = vst [vmem:[#allocation188_spill] sm:$0xff] %v5338_v34  ;;  %v5347_v18 = vadd.f32 %v872_v45, %v5282_v55  ;;  %v874_v52 = vpop.f32.mrb[27].mxu0  ;;  %v5350_v42 = vadd.f32 %v943_v36, %v5294_v11  ;;  %v945_v56 = vpop.f32.mrb[26].mxu1 }
 0x182   :  { %6868 = vst [vmem:[#allocation189_spill] sm:$0xff] %v5341_v2  ;;  %6869 = vst [vmem:[#allocation190_spill] sm:$0xff] %v5344_v20  ;;  %v5353_v41 = vadd.f32 %v874_v52, %v5297_v58  ;;  %v5356_v34 = vadd.f32 %v945_v56, %v5287_v25  ;;  %v947_v40 = vpop.f32.mrb[27].mxu1 }
 0x183   :  { %6870 = vst [vmem:[#allocation191_spill] sm:$0xff] %v5347_v18  ;;  %6871 = vst [vmem:[#allocation192_spill] sm:$0xff] %v5350_v42  ;;  %v5359_v2 = vadd.f32 %v947_v40, %v5294_v11 }
 0x184   :  { %6872 = vst [vmem:[#allocation193_spill] sm:$0xff] %v5353_v41  ;;  %6873 = vst [vmem:[#allocation194_spill] sm:$0xff] %v5356_v34 }
 0x185   :  { %6874 = vst [vmem:[#allocation195_spill] sm:$0xff] %v5359_v2 }
 0x186   :  { %v878_v48 = vpop.f32.mrb[28].mxu0 }
 0x187   :  { %v5362_v20 = vadd.f32 %v878_v48, %v5282_v55  ;;  %v880_v45 = vpop.f32.mrb[29].mxu0  ;;  %v951_v18 = vpop.f32.mrb[28].mxu1 }
 0x188   :  { %v5365_v36 = vadd.f32 %v880_v45, %v5297_v58  ;;  %v882_v42 = vpop.f32.mrb[30].mxu0  ;;  %v5368_v52 = vadd.f32 %v951_v18, %v5287_v25  ;;  %v953_v41 = vpop.f32.mrb[29].mxu1  ;;  %v703_v18 = vadd.f32 %v5163_v26, %v5159_v27 }
 0x189   :  { %6875 = vst [vmem:[#allocation196_spill] sm:$0xff] %v5362_v20  ;;  %v5371_v56 = vadd.f32 %v882_v42, %v5282_v55  ;;  %v884_v34 = vpop.f32.mrb[31].mxu0  ;;  %v5374_v40 = vadd.f32 %v953_v41, %v5294_v11  ;;  %v955_v2 = vpop.f32.mrb[30].mxu1  ;;  %v705_v42 = vadd.f32 %v5169_v0, %v5177_v32  ;;  %v776_v41 = vadd.f32 %v5171_v10, %v5166_v19 }
 0x18a   :  { %6876 = vst [vmem:[#allocation197_spill] sm:$0xff] %v5365_v36  ;;  %6877 = vst [vmem:[#allocation198_spill] sm:$0xff] %v5368_v52  ;;  %v5377_v48 = vadd.f32 %v884_v34, %v5297_v58  ;;  %v5380_v20 = vadd.f32 %v955_v2, %v5287_v25  ;;  %v957_v45 = vpop.f32.mrb[31].mxu1  ;;  %v778_v34 = vadd.f32 %v5179_v9, %v5174_v28 }
 0x18b   :  { %6878 = vst [vmem:[#allocation199_spill] sm:$0xff] %v5371_v56  ;;  %6879 = vst [vmem:[#allocation200_spill] sm:$0xff] %v5374_v40  ;;  %v5383_v36 = vadd.f32 %v957_v45, %v5294_v11  ;;  %v849_v9 = vadd.f32 %v5284_v57, %v5282_v55  ;;  %v851_v10 = vadd.f32 %v5289_v33, %v5297_v58 }
 0x18c   :  { %6880 = vst [vmem:[#allocation201_spill] sm:$0xff] %v5377_v48  ;;  %6881 = vst [vmem:[#allocation202_spill] sm:$0xff] %v5380_v20  ;;  %v922_v19 = vadd.f32 %v5291_v49, %v5287_v25  ;;  %v924_v28 = vadd.f32 %v5299_v51, %v5294_v11 }
 0x18d   :  { %6882 = vst [vmem:[#allocation203_spill] sm:$0xff] %v5383_v36 }
 0x1ae   :  { %v1834_v56 = vpop.f32.mrb[32].mxu0 }
 0x1af   :  { %v1964_v48 = vadd.f32 %v1834_v56, %v703_v18  ;;  %v1875_v2 = vpop.f32.mrb[32].mxu1  ;;  %v1836_v20 = vpop.f32.mrb[33].mxu0 }
 0x1b0   :  { %v1966_v40 = vadd.f32 %v1875_v2, %v776_v41  ;;  %v1965_v52 = vadd.f32 %v1836_v20, %v705_v42  ;;  %v1877_v45 = vpop.f32.mrb[33].mxu1  ;;  %v1838_v36 = vpop.f32.mrb[34].mxu0 }
 0x1b1   :  { %v1967_v37 = vadd.f32 %v1877_v45, %v778_v34  ;;  %v1839_v31 = vpop.f32.mrb[35].mxu0  ;;  %v1879_v26 = vpop.f32.mrb[34].mxu1  ;;  %v1972_v32 = vmul.f32 0.5, %v1964_v48 }
 0x1b2   :  { %v1880_v27 = vpop.f32.mrb[35].mxu1  ;;  %v1980_v30 = vmul.f32 0.5, %v1966_v40  ;;  %v1973_v29 = vmul.f32 0.5, %v1965_v52 }
 0x1b3   :  { %v1981_v0 = vmul.f32 0.5, %v1967_v37 }
 0x1b4   :  { %4054 = vtanh.f32 %v1980_v30 }
 0x1b5   :  { %4056 = vtanh.f32 %v1981_v0 }
 0x1b6   :  { %4058 = vtanh.f32 %v1972_v32 }
 0x1b7   :  { %4060 = vtanh.f32 %v1973_v29 }
 0x1be   :  { %v4055_v40 = vpop.eup %4054 }
 0x1bf   :  { %v4057_v33 = vpop.eup %4056  ;;  %v1984_v18 = vadd.f32 1.0, %v4055_v40 }
 0x1c0   :  { %v4059_v49 = vpop.eup %4058  ;;  %v1985_v11 = vadd.f32 1.0, %v4057_v33 }
 0x1c1   :  { %v4061_v25 = vpop.eup %4060  ;;  %v1976_v41 = vadd.f32 1.0, %v4059_v49  ;;  %v1986_v2 = vmul.f32 0.5, %v1984_v18  ;;  %v6883_v49 = vld [vmem:[#allocation86_spill] sm:$0xff]  ;;  %v6885_v18 = vld [vmem:[#allocation88_spill] sm:$0xff] }
 0x1c2   :  { %v1977_v34 = vadd.f32 1.0, %v4061_v25  ;;  %v1987_v45 = vmul.f32 0.5, %v1985_v11  ;;  %v6884_v25 = vld [vmem:[#allocation87_spill] sm:$0xff]  ;;  %v6887_v11 = vld [vmem:[#allocation90_spill] sm:$0xff] }
 0x1c3   :  { %v1978_v26 = vmul.f32 0.5, %v1976_v41  ;;  %v6889_v41 = vld [vmem:[#allocation92_spill] sm:$0xff] }
 0x1c4   :  { %v1979_v0 = vmul.f32 0.5, %v1977_v34  ;;  %v6890_v34 = vld [vmem:[#allocation93_spill] sm:$0xff] }
 0x1ee   :  { %v1916_v31 = vpop.f32.mrb[36].mxu0 }
 0x1ef   :  { %v1968_v37 = vadd.f32 %v1916_v31, %v849_v9  ;;  %v1957_v20 = vpop.f32.mrb[36].mxu1  ;;  %v1918_v36 = vpop.f32.mrb[37].mxu0  ;;  %v1998_v9 = vmul.f32 0.0, %v1986_v2  ;;  %v6891_v2 = vld [vmem:[#allocation94_spill] sm:$0xff] }
 0x1f0   :  { %v1970_v30 = vadd.f32 %v1957_v20, %v922_v19  ;;  %v1969_v52 = vadd.f32 %v1918_v36, %v851_v10  ;;  %v1959_v56 = vpop.f32.mrb[37].mxu1  ;;  %v1920_v29 = vpop.f32.mrb[38].mxu0  ;;  %v1999_v19 = vmul.f32 0.0, %v1987_v45  ;;  %v6892_v45 = vld [vmem:[#allocation95_spill] sm:$0xff] }
 0x1f1   :  { %4062 = vtanh.f32 %v1968_v37  ;;  %v1971_v55 = vadd.f32 %v1959_v56, %v924_v28  ;;  %v1921_v57 = vpop.f32.mrb[39].mxu0  ;;  %v1961_v48 = vpop.f32.mrb[38].mxu1 }
 0x1f2   :  { %4064 = vtanh.f32 %v1969_v52  ;;  %v1962_v58 = vpop.f32.mrb[39].mxu1  ;;  %v1990_v42 = vmul.f32 0.5, %v1970_v30 }
 0x1f3   :  { %v1991_v51 = vmul.f32 0.5, %v1971_v55 }
 0x1f4   :  { %4066 = vtanh.f32 %v1990_v42  ;;  %v6886_v42 = vld [vmem:[#allocation89_spill] sm:$0xff] }
 0x1f5   :  { %4068 = vtanh.f32 %v1991_v51  ;;  %v6888_v51 = vld [vmem:[#allocation91_spill] sm:$0xff] }
 0x1fb   :  { %v4063_v27 = vpop.eup %4062 }
 0x1fc   :  { %v4065_v32 = vpop.eup %4064  ;;  %v2000_v10 = vmul.f32 %v4063_v27, %v1978_v26  ;;  %v6893_v26 = vld [vmem:[#allocation96_spill] sm:$0xff]  ;;  %v6894_v27 = vld [vmem:[#allocation97_spill] sm:$0xff] }
 0x1fd   :  { %v2001_v31 = vmul.f32 %v4065_v32, %v1979_v0  ;;  %v6895_v0 = vld [vmem:[#allocation98_spill] sm:$0xff]  ;;  %v6896_v32 = vld [vmem:[#allocation99_spill] sm:$0xff] }
 0x1fe   :  { %v5401_v28 = vadd.f32 %v2000_v10, %v1998_v9  ;;  %v4067_v20 = vpop.eup %4066  ;;  %v6897_v9 = vld [vmem:[#allocation100_spill] sm:$0xff]  ;;  %v6898_v10 = vld [vmem:[#allocation101_spill] sm:$0xff] }
 0x1ff   :  { %v5403_v37 = vadd.f32 %v2001_v31, %v1999_v19  ;;  %v4069_v36 = vpop.eup %4068  ;;  %v1994_v30 = vadd.f32 1.0, %v4067_v20  ;;  %v6899_v19 = vld [vmem:[#allocation102_spill] sm:$0xff]  ;;  %v6900_v31 = vld [vmem:[#allocation103_spill] sm:$0xff]  ;;  %v6901_v20 = vld [vmem:[#allocation104_spill] sm:$0xff] }
 0x200   :  { %4070 = vtanh.f32 %v5401_v28  ;;  %v1995_v52 = vadd.f32 1.0, %v4069_v36  ;;  %v6902_v36 = vld [vmem:[#allocation105_spill] sm:$0xff] }
 0x201   :  { %4072 = vtanh.f32 %v5403_v37  ;;  %v1996_v56 = vmul.f32 0.5, %v1994_v30  ;;  %v6903_v30 = vld [vmem:[#allocation106_spill] sm:$0xff] }
 0x202   :  { %v1997_v40 = vmul.f32 0.5, %v1995_v52  ;;  %v6904_v52 = vld [vmem:[#allocation107_spill] sm:$0xff] }
 0x20a   :  { %v4071_v29 = vpop.eup %4070 }
 0x20b   :  { %v4073_v55 = vpop.eup %4072  ;;  %v2006_v57 = vmul.f32 %v4071_v29, %v1996_v56  ;;  %v6905_v56 = vld [vmem:[#allocation108_spill] sm:$0xff]  ;;  %v6906_v29 = vld [vmem:[#allocation109_spill] sm:$0xff] }
 0x20c   :  { %v2007_v48 = vmul.f32 %v4073_v55, %v1997_v40  ;;  %v6907_v40 = vld [vmem:[#allocation110_spill] sm:$0xff]  ;;  %v6908_v55 = vld [vmem:[#allocation111_spill] sm:$0xff] }
 0x20d   :  { %v5407_v58 = vpack.c.bf16 %v2006_v57, %v2006_v57  ;;  %v6909_v57 = vld [vmem:[#allocation112_spill] sm:$0xff] }
 0x20e   :  { %v2017_v33 = vpack.c.bf16 %v2007_v48, %v2007_v48  ;;  %v6910_v48 = vld [vmem:[#allocation113_spill] sm:$0xff] }
 0x210   :  { %2050 = vmatprep.mubr.bf16.mxu0 %v2017_v33  ;;  %2091 = vmatprep.mubr.bf16.mxu1 %v2017_v33 }
 0x211   :  { %2051 = vmatmul.mubr.bf16.vlgmr.msra.gmra.mrb[40].mxu0 %v5407_v58  ;;  %2092 = vmatmul.mubr.bf16.vlgmr.msra.gmra.mrb[40].mxu1 %v5407_v58 }
 0x212   :  { %2101 = vmatpush1.bf16.msra.mxu0 %v6883_v49  ;;  %2142 = vmatpush1.bf16.msra.mxu1 %v6884_v25 }
 0x213   :  { %2132 = vmatprep.mubr.bf16.mxu0 %v2017_v33  ;;  %2173 = vmatprep.mubr.bf16.mxu1 %v2017_v33  ;;  %v6911_v33 = vld [vmem:[#allocation114_spill] sm:$0xff] }
 0x214   :  { %2102 = vmatprep.subr.bf16.mxu0 %v6885_v18  ;;  %2143 = vmatprep.subr.bf16.mxu1 %v6886_v42 }
 0x216   :  { %2103 = vmatpush1.bf16.msra.mxu0 %v6887_v11  ;;  %2144 = vmatpush1.bf16.msra.mxu1 %v6888_v51 }
 0x217   :  { %2104 = vmatprep.subr.bf16.mxu0 %v6889_v41  ;;  %2145 = vmatprep.subr.bf16.mxu1 %v6890_v34 }
 0x21a   :  { %2105 = vmatpush1.bf16.msra.mxu0 %v6891_v2  ;;  %2146 = vmatpush1.bf16.msra.mxu1 %v6892_v45 }
 0x21b   :  { %2106 = vmatprep.subr.bf16.mxu0 %v6893_v26  ;;  %2147 = vmatprep.subr.bf16.mxu1 %v6894_v27 }
 0x21e   :  { %2107 = vmatpush1.bf16.msra.mxu0 %v6895_v0  ;;  %2148 = vmatpush1.bf16.msra.mxu1 %v6896_v32 }
 0x21f   :  { %2108 = vmatprep.subr.bf16.mxu0 %v6897_v9  ;;  %2149 = vmatprep.subr.bf16.mxu1 %v6898_v10 }
 0x222   :  { %2109 = vmatpush1.bf16.msra.mxu0 %v6899_v19  ;;  %2150 = vmatpush1.bf16.msra.mxu1 %v6900_v31 }
 0x223   :  { %2110 = vmatprep.subr.bf16.mxu0 %v6901_v20  ;;  %2151 = vmatprep.subr.bf16.mxu1 %v6902_v36  ;;  %v6912_v20 = vld [vmem:[#allocation115_spill] sm:$0xff]  ;;  %v6913_v36 = vld [vmem:[#allocation116_spill] sm:$0xff] }
 0x226   :  { %2111 = vmatpush1.bf16.msra.mxu0 %v6903_v30  ;;  %2152 = vmatpush1.bf16.msra.mxu1 %v6904_v52  ;;  %v6914_v30 = vld [vmem:[#allocation117_spill] sm:$0xff]  ;;  %v6915_v52 = vld [vmem:[#allocation118_spill] sm:$0xff] }
 0x227   :  { %2112 = vmatprep.subr.bf16.mxu0 %v6905_v56  ;;  %2153 = vmatprep.subr.bf16.mxu1 %v6906_v29  ;;  %v6916_v56 = vld [vmem:[#allocation119_spill] sm:$0xff]  ;;  %v6917_v29 = vld [vmem:[#allocation120_spill] sm:$0xff] }
 0x22a   :  { %2113 = vmatpush1.bf16.msra.mxu0 %v6907_v40  ;;  %2154 = vmatpush1.bf16.msra.mxu1 %v6908_v55  ;;  %v6918_v40 = vld [vmem:[#allocation121_spill] sm:$0xff]  ;;  %v6919_v55 = vld [vmem:[#allocation122_spill] sm:$0xff] }
 0x22b   :  { %2114 = vmatprep.subr.bf16.mxu0 %v6909_v57  ;;  %2155 = vmatprep.subr.bf16.mxu1 %v6910_v48  ;;  %v6920_v57 = vld [vmem:[#allocation123_spill] sm:$0xff]  ;;  %v6921_v48 = vld [vmem:[#allocation124_spill] sm:$0xff] }
 0x22e   :  { %2115 = vmatpush1.bf16.msra.mxu0 %v6911_v33  ;;  %2156 = vmatpush1.bf16.msra.mxu1 %v6912_v20  ;;  %v6922_v33 = vld [vmem:[#allocation125_spill] sm:$0xff]  ;;  %v6923_v20 = vld [vmem:[#allocation126_spill] sm:$0xff] }
 0x22f   :  { %2116 = vmatprep.subr.bf16.mxu0 %v6913_v36  ;;  %2157 = vmatprep.subr.bf16.mxu1 %v6914_v30  ;;  %v6924_v36 = vld [vmem:[#allocation127_spill] sm:$0xff]  ;;  %v6925_v30 = vld [vmem:[#allocation128_spill] sm:$0xff] }
 0x232   :  { %2117 = vmatpush1.bf16.msra.mxu0 %v6915_v52  ;;  %2158 = vmatpush1.bf16.msra.mxu1 %v6916_v56  ;;  %v6926_v52 = vld [vmem:[#allocation129_spill] sm:$0xff]  ;;  %v6927_v56 = vld [vmem:[#allocation130_spill] sm:$0xff] }
 0x233   :  { %2118 = vmatprep.subr.bf16.mxu0 %v6917_v29  ;;  %2159 = vmatprep.subr.bf16.mxu1 %v6918_v40  ;;  %v6928_v29 = vld [vmem:[#allocation131_spill] sm:$0xff]  ;;  %v6929_v40 = vld [vmem:[#allocation132_spill] sm:$0xff] }
 0x236   :  { %2119 = vmatpush1.bf16.msra.mxu0 %v6919_v55  ;;  %2160 = vmatpush1.bf16.msra.mxu1 %v6920_v57  ;;  %v6930_v55 = vld [vmem:[#allocation133_spill] sm:$0xff] }
 0x237   :  { %2120 = vmatprep.subr.bf16.mxu0 %v6921_v48  ;;  %2161 = vmatprep.subr.bf16.mxu1 %v6922_v33 }
 0x23a   :  { %2121 = vmatpush1.bf16.msra.mxu0 %v6923_v20  ;;  %2162 = vmatpush1.bf16.msra.mxu1 %v6924_v36  ;;  %v6931_v20 = vld [vmem:[#allocation137_spill] sm:$0xff] }
 0x23b   :  { %2122 = vmatprep.subr.bf16.mxu0 %v6925_v30  ;;  %2163 = vmatprep.subr.bf16.mxu1 %v6926_v52 }
 0x23e   :  { %2123 = vmatpush1.bf16.msra.mxu0 %v6927_v56  ;;  %2164 = vmatpush1.bf16.msra.mxu1 %v6928_v29 }
 0x23f   :  { %2124 = vmatprep.subr.bf16.mxu0 %v6929_v40  ;;  %2165 = vmatprep.subr.bf16.mxu1 %v6930_v55 }
 0x242   :  { %2125 = vmatpush1.bf16.msra.mxu0 %v5049_v44  ;;  %2166 = vmatpush1.bf16.msra.mxu1 %v5053_v46 }
 0x243   :  { %2126 = vmatprep.subr.bf16.mxu0 %v5055_v47  ;;  %2167 = vmatprep.subr.bf16.mxu1 %v6931_v20 }
 0x246   :  { %2127 = vmatpush1.bf16.msra.mxu0 %v5061_v3  ;;  %2168 = vmatpush1.bf16.msra.mxu1 %v5065_v17 }
 0x247   :  { %2128 = vmatprep.subr.bf16.mxu0 %v5067_v16  ;;  %2169 = vmatprep.subr.bf16.mxu1 %v5070_v8 }
 0x24a   :  { %2129 = vmatpush1.bf16.msra.mxu0 %v5073_v39  ;;  %2170 = vmatpush1.bf16.msra.mxu1 %v5077_v35 }
 0x24b   :  { %2130 = vmatprep.subr.bf16.mxu0 %v5079_v43  ;;  %2171 = vmatprep.subr.bf16.mxu1 %v5082_v1 }
 0x24e   :  { %2131 = vmatpush1.bf16.msra.mxu0 %v5085_v50  ;;  %2172 = vmatpush1.bf16.msra.mxu1 %v5089_v38  ;;  %v6984_v38 = vld [vmem:[#allocation178_spill] sm:$0xff] }
 0x24f   :  { %2236 = vmatprep.subr.bf16.mxu0 %v4688_v53  ;;  %2277 = vmatprep.subr.bf16.mxu1 %v4691_v54 }
 0x251   :  { %2133 = vmatmul.mubr.bf16.vlgmr.msra.gmra.mrb[44].mxu0 %v5407_v58  ;;  %2174 = vmatmul.mubr.bf16.vlgmr.msra.gmra.mrb[44].mxu1 %v5407_v58  ;;  %v6932_v58 = vld [vmem:[#allocation39_spill] sm:$0xff] }
 0x252   :  { %2237 = vmatpush1.bf16.msra.mxu0 %v4694_v59  ;;  %2278 = vmatpush1.bf16.msra.mxu1 %v4697_v61 }
 0x253   :  { %2238 = vmatprep.subr.bf16.mxu0 %v4699_v62  ;;  %2279 = vmatprep.subr.bf16.mxu1 %v4702_v63  ;;  %v6981_v63 = vld [vmem:[#allocation149_spill] sm:$0xff]  ;;  %v6982_v62 = vld [vmem:[#allocation151_spill] sm:$0xff] }
 0x256   :  { %2239 = vmatpush1.bf16.msra.mxu0 %v4707_v4  ;;  %2280 = vmatpush1.bf16.msra.mxu1 %v4711_v5  ;;  %v6980_v5 = vld [vmem:[#allocation150_spill] sm:$0xff] }
 0x257   :  { %2240 = vmatprep.subr.bf16.mxu0 %v4713_v6  ;;  %2281 = vmatprep.subr.bf16.mxu1 %v4716_v7  ;;  %v6933_v7 = vld [vmem:[#allocation40_spill] sm:$0xff] }
 0x258   :  { %v6979_v6 = vld [vmem:[#allocation148_spill] sm:$0xff] }
 0x25a   :  { %2241 = vmatpush1.bf16.msra.mxu0 %v4721_v12  ;;  %2282 = vmatpush1.bf16.msra.mxu1 %v4725_v13  ;;  %v6934_v12 = vld [vmem:[#allocation41_spill] sm:$0xff]  ;;  %v6935_v13 = vld [vmem:[#allocation42_spill] sm:$0xff] }
 0x25b   :  { %2242 = vmatprep.subr.bf16.mxu0 %v4727_v14  ;;  %2283 = vmatprep.subr.bf16.mxu1 %v4730_v15  ;;  %v6936_v14 = vld [vmem:[#allocation43_spill] sm:$0xff]  ;;  %v6937_v15 = vld [vmem:[#allocation44_spill] sm:$0xff] }
 0x25e   :  { %2243 = vmatpush1.bf16.msra.mxu0 %v4734_v21  ;;  %2284 = vmatpush1.bf16.msra.mxu1 %v4739_v22  ;;  %v6938_v21 = vld [vmem:[#allocation45_spill] sm:$0xff]  ;;  %v6939_v22 = vld [vmem:[#allocation46_spill] sm:$0xff] }
 0x25f   :  { %2244 = vmatprep.subr.bf16.mxu0 %v4741_v23  ;;  %2285 = vmatprep.subr.bf16.mxu1 %v4744_v24  ;;  %v6940_v23 = vld [vmem:[#allocation47_spill] sm:$0xff]  ;;  %v6941_v24 = vld [vmem:[#allocation48_spill] sm:$0xff] }
 0x262   :  { %2245 = vmatpush1.bf16.msra.mxu0 %v4749_v60  ;;  %2286 = vmatpush1.bf16.msra.mxu1 %v6932_v58  ;;  %v6942_v60 = vld [vmem:[#allocation49_spill] sm:$0xff]  ;;  %v6943_v58 = vld [vmem:[#allocation50_spill] sm:$0xff] }
 0x263   :  { %2246 = vmatprep.subr.bf16.mxu0 %v6933_v7  ;;  %2287 = vmatprep.subr.bf16.mxu1 %v6934_v12  ;;  %v6944_v7 = vld [vmem:[#allocation51_spill] sm:$0xff]  ;;  %v6945_v12 = vld [vmem:[#allocation52_spill] sm:$0xff] }
 0x266   :  { %2247 = vmatpush1.bf16.msra.mxu0 %v6935_v13  ;;  %2288 = vmatpush1.bf16.msra.mxu1 %v6936_v14  ;;  %v6946_v13 = vld [vmem:[#allocation53_spill] sm:$0xff]  ;;  %v6947_v14 = vld [vmem:[#allocation54_spill] sm:$0xff] }
 0x267   :  { %2248 = vmatprep.subr.bf16.mxu0 %v6937_v15  ;;  %2289 = vmatprep.subr.bf16.mxu1 %v6938_v21  ;;  %v6948_v15 = vld [vmem:[#allocation55_spill] sm:$0xff]  ;;  %v6949_v21 = vld [vmem:[#allocation56_spill] sm:$0xff] }
 0x26a   :  { %2249 = vmatpush1.bf16.msra.mxu0 %v6939_v22  ;;  %2290 = vmatpush1.bf16.msra.mxu1 %v6940_v23  ;;  %v6950_v22 = vld [vmem:[#allocation57_spill] sm:$0xff]  ;;  %v6951_v23 = vld [vmem:[#allocation58_spill] sm:$0xff] }
 0x26b   :  { %2250 = vmatprep.subr.bf16.mxu0 %v6941_v24  ;;  %2291 = vmatprep.subr.bf16.mxu1 %v6942_v60  ;;  %v6952_v24 = vld [vmem:[#allocation59_spill] sm:$0xff]  ;;  %v6953_v60 = vld [vmem:[#allocation60_spill] sm:$0xff] }
 0x26e   :  { %2251 = vmatpush1.bf16.msra.mxu0 %v6943_v58  ;;  %2292 = vmatpush1.bf16.msra.mxu1 %v6944_v7  ;;  %v6954_v58 = vld [vmem:[#allocation61_spill] sm:$0xff]  ;;  %v6955_v7 = vld [vmem:[#allocation62_spill] sm:$0xff] }
 0x26f   :  { %2252 = vmatprep.subr.bf16.mxu0 %v6945_v12  ;;  %2293 = vmatprep.subr.bf16.mxu1 %v6946_v13  ;;  %v6956_v12 = vld [vmem:[#allocation63_spill] sm:$0xff]  ;;  %v6957_v13 = vld [vmem:[#allocation64_spill] sm:$0xff] }
 0x272   :  { %2253 = vmatpush1.bf16.msra.mxu0 %v6947_v14  ;;  %2294 = vmatpush1.bf16.msra.mxu1 %v6948_v15  ;;  %v6958_v14 = vld [vmem:[#allocation65_spill] sm:$0xff]  ;;  %v6959_v15 = vld [vmem:[#allocation66_spill] sm:$0xff] }
 0x273   :  { %2254 = vmatprep.subr.bf16.mxu0 %v6949_v21  ;;  %2295 = vmatprep.subr.bf16.mxu1 %v6950_v22  ;;  %v6960_v21 = vld [vmem:[#allocation67_spill] sm:$0xff]  ;;  %v6961_v22 = vld [vmem:[#allocation68_spill] sm:$0xff] }
 0x276   :  { %2255 = vmatpush1.bf16.msra.mxu0 %v6951_v23  ;;  %2296 = vmatpush1.bf16.msra.mxu1 %v6952_v24  ;;  %v6962_v23 = vld [vmem:[#allocation69_spill] sm:$0xff]  ;;  %v6963_v24 = vld [vmem:[#allocation70_spill] sm:$0xff] }
 0x277   :  { %2256 = vmatprep.subr.bf16.mxu0 %v6953_v60  ;;  %2297 = vmatprep.subr.bf16.mxu1 %v6954_v58  ;;  %v6964_v60 = vld [vmem:[#allocation71_spill] sm:$0xff]  ;;  %v6965_v58 = vld [vmem:[#allocation72_spill] sm:$0xff] }
 0x27a   :  { %2257 = vmatpush1.bf16.msra.mxu0 %v6955_v7  ;;  %2298 = vmatpush1.bf16.msra.mxu1 %v6956_v12  ;;  %v6966_v7 = vld [vmem:[#allocation73_spill] sm:$0xff]  ;;  %v6967_v12 = vld [vmem:[#allocation74_spill] sm:$0xff] }
 0x27b   :  { %2258 = vmatprep.subr.bf16.mxu0 %v6957_v13  ;;  %2299 = vmatprep.subr.bf16.mxu1 %v6958_v14  ;;  %v6968_v13 = vld [vmem:[#allocation75_spill] sm:$0xff]  ;;  %v6969_v14 = vld [vmem:[#allocation76_spill] sm:$0xff] }
 0x27e   :  { %2259 = vmatpush1.bf16.msra.mxu0 %v6959_v15  ;;  %2300 = vmatpush1.bf16.msra.mxu1 %v6960_v21  ;;  %v6970_v15 = vld [vmem:[#allocation77_spill] sm:$0xff]  ;;  %v6971_v21 = vld [vmem:[#allocation78_spill] sm:$0xff] }
 0x27f   :  { %2260 = vmatprep.subr.bf16.mxu0 %v6961_v22  ;;  %2301 = vmatprep.subr.bf16.mxu1 %v6962_v23  ;;  %v6972_v22 = vld [vmem:[#allocation79_spill] sm:$0xff]  ;;  %v6973_v23 = vld [vmem:[#allocation80_spill] sm:$0xff] }
 0x282   :  { %2261 = vmatpush1.bf16.msra.mxu0 %v6963_v24  ;;  %2302 = vmatpush1.bf16.msra.mxu1 %v6964_v60  ;;  %v6974_v24 = vld [vmem:[#allocation81_spill] sm:$0xff]  ;;  %v6975_v60 = vld [vmem:[#allocation82_spill] sm:$0xff] }
 0x283   :  { %2262 = vmatprep.subr.bf16.mxu0 %v6965_v58  ;;  %2303 = vmatprep.subr.bf16.mxu1 %v6966_v7  ;;  %v6976_v58 = vld [vmem:[#allocation83_spill] sm:$0xff]  ;;  %v6977_v7 = vld [vmem:[#allocation84_spill] sm:$0xff] }
 0x286   :  { %2263 = vmatpush1.bf16.msra.mxu0 %v6967_v12  ;;  %2304 = vmatpush1.bf16.msra.mxu1 %v6968_v13  ;;  %v6978_v12 = vld [vmem:[#allocation85_spill] sm:$0xff] }
 0x287   :  { %2264 = vmatprep.subr.bf16.mxu0 %v6969_v14  ;;  %2305 = vmatprep.subr.bf16.mxu1 %v6970_v15 }
 0x28a   :  { %2265 = vmatpush1.bf16.msra.mxu0 %v6971_v21  ;;  %2306 = vmatpush1.bf16.msra.mxu1 %v6972_v22 }
 0x28b   :  { %2266 = vmatprep.subr.bf16.mxu0 %v6973_v23  ;;  %2307 = vmatprep.subr.bf16.mxu1 %v6974_v24 }
 0x28e   :  { %2267 = vmatpush1.bf16.msra.mxu0 %v6975_v60  ;;  %2308 = vmatpush1.bf16.msra.mxu1 %v6976_v58 }
 0x28f   :  { %2318 = vmatprep.subr.bf16.mxu0 %v6977_v7  ;;  %2359 = vmatprep.subr.bf16.mxu1 %v6978_v12 }
 0x2e4   :  { %v2052_v13 = vpop.f32.mrb[40].mxu0  ;;  %v2093_v14 = vpop.f32.mrb[40].mxu1 }
 0x2e5   :  { %v2182_v15 = vadd.f32 %v2052_v13, %v6979_v6  ;;  %v2184_v21 = vadd.f32 %v2093_v14, %v6980_v5  ;;  %v2054_v4 = vpop.f32.mrb[41].mxu0  ;;  %v2095_v22 = vpop.f32.mrb[41].mxu1  ;;  %v6983_v13 = vld [vmem:[#allocation176_spill] sm:$0xff] }
 0x2e6   :  { %v2183_v23 = vadd.f32 %v2054_v4, %v6981_v63  ;;  %v2185_v24 = vadd.f32 %v2095_v22, %v6982_v62  ;;  %v2056_v61 = vpop.f32.mrb[42].mxu0  ;;  %v2097_v60 = vpop.f32.mrb[42].mxu1 }
 0x2e7   :  { %v2057_v59 = vpop.f32.mrb[43].mxu0  ;;  %v2098_v58 = vpop.f32.mrb[43].mxu1  ;;  %v2198_v54 = vmul.f32 0.5, %v2184_v21  ;;  %v2190_v53 = vmul.f32 0.5, %v2182_v15  ;;  %v6985_v61 = vld [vmem:[#allocation177_spill] sm:$0xff] }
 0x2e8   :  { %v2199_v7 = vmul.f32 0.5, %v2185_v24  ;;  %v2191_v12 = vmul.f32 0.5, %v2183_v23  ;;  %v6986_v59 = vld [vmem:[#allocation179_spill] sm:$0xff] }
 0x2e9   :  { %4074 = vtanh.f32 %v2198_v54 }
 0x2ea   :  { %4076 = vtanh.f32 %v2199_v7 }
 0x2eb   :  { %4078 = vtanh.f32 %v2190_v53 }
 0x2ec   :  { %4080 = vtanh.f32 %v2191_v12 }
 0x2f3   :  { %v4075_v15 = vpop.eup %4074 }
 0x2f4   :  { %v4077_v53 = vpop.eup %4076  ;;  %v2202_v58 = vadd.f32 1.0, %v4075_v15 }
 0x2f5   :  { %v4079_v12 = vpop.eup %4078 }
 0x2f6   :  { %v4081_v23 = vpop.eup %4080  ;;  %v2204_v1 = vmul.f32 0.5, %v2202_v58 }
 0x2f7   :  { %v2195_v50 = vadd.f32 1.0, %v4081_v23 }
 0x324   :  { %v2134_v6 = vpop.f32.mrb[44].mxu0  ;;  %v2175_v5 = vpop.f32.mrb[44].mxu1 }
 0x325   :  { %v2186_v14 = vadd.f32 %v2134_v6, %v6983_v13  ;;  %v2188_v63 = vadd.f32 %v2175_v5, %v6984_v38  ;;  %v2136_v4 = vpop.f32.mrb[45].mxu0  ;;  %v2177_v62 = vpop.f32.mrb[45].mxu1  ;;  %v2203_v13 = vadd.f32 1.0, %v4077_v53  ;;  %v2194_v5 = vadd.f32 1.0, %v4079_v12 }
 0x326   :  { %v2187_v22 = vadd.f32 %v2136_v4, %v6985_v61  ;;  %v2189_v60 = vadd.f32 %v2177_v62, %v6986_v59  ;;  %v2138_v21 = vpop.f32.mrb[46].mxu0  ;;  %v2179_v24 = vpop.f32.mrb[46].mxu1  ;;  %v2197_v59 = vmul.f32 0.5, %v2195_v50 }
 0x327   :  { %4082 = vtanh.f32 %v2186_v14  ;;  %v2139_v54 = vpop.f32.mrb[47].mxu0  ;;  %v2180_v7 = vpop.f32.mrb[47].mxu1  ;;  %v2208_v6 = vmul.f32 0.5, %v2188_v63  ;;  %v2205_v4 = vmul.f32 0.5, %v2203_v13  ;;  %v2196_v62 = vmul.f32 0.5, %v2194_v5  ;;  %v6988_v5 = vld [vmem:[#allocation105_spill] sm:$0xff] }
 0x328   :  { %4084 = vtanh.f32 %v2187_v22  ;;  %v2209_v38 = vmul.f32 0.5, %v2189_v60  ;;  %v2216_v21 = vmul.f32 %v2204_v1, %v5401_v28 }
 0x329   :  { %4086 = vtanh.f32 %v2208_v6  ;;  %v2217_v22 = vmul.f32 %v2205_v4, %v5403_v37  ;;  %v6989_v4 = vld [vmem:[#allocation106_spill] sm:$0xff] }
 0x32a   :  { %4088 = vtanh.f32 %v2209_v38  ;;  %v6987_v38 = vld [vmem:[#allocation104_spill] sm:$0xff] }
 0x331   :  { %v4083_v61 = vpop.eup %4082 }
 0x332   :  { %v4085_v14 = vpop.eup %4084  ;;  %v2218_v24 = vmul.f32 %v4083_v61, %v2196_v62  ;;  %v6990_v62 = vld [vmem:[#allocation107_spill] sm:$0xff]  ;;  %v6991_v61 = vld [vmem:[#allocation108_spill] sm:$0xff] }
 0x333   :  { %v2219_v54 = vmul.f32 %v4085_v14, %v2197_v59  ;;  %v4087_v60 = vpop.eup %4086  ;;  %v6992_v59 = vld [vmem:[#allocation109_spill] sm:$0xff]  ;;  %v6993_v14 = vld [vmem:[#allocation110_spill] sm:$0xff] }
 0x334   :  { %v5551_v15 = vadd.f32 %v2218_v24, %v2216_v21  ;;  %v4089_v7 = vpop.eup %4088  ;;  %v2212_v53 = vadd.f32 1.0, %v4087_v60  ;;  %v6994_v21 = vld [vmem:[#allocation111_spill] sm:$0xff]  ;;  %v6995_v24 = vld [vmem:[#allocation112_spill] sm:$0xff] }
 0x335   :  { %v5553_v63 = vadd.f32 %v2219_v54, %v2217_v22  ;;  %v2213_v12 = vadd.f32 1.0, %v4089_v7  ;;  %v6996_v22 = vld [vmem:[#allocation113_spill] sm:$0xff]  ;;  %v6997_v54 = vld [vmem:[#allocation114_spill] sm:$0xff]  ;;  %v6998_v60 = vld [vmem:[#allocation115_spill] sm:$0xff] }
 0x336   :  { %4090 = vtanh.f32 %v5551_v15  ;;  %v2214_v50 = vmul.f32 0.5, %v2212_v53  ;;  %v6999_v7 = vld [vmem:[#allocation116_spill] sm:$0xff]  ;;  %v7000_v53 = vld [vmem:[#allocation117_spill] sm:$0xff] }
 0x337   :  { %4092 = vtanh.f32 %v5553_v63  ;;  %v2215_v58 = vmul.f32 0.5, %v2213_v12  ;;  %v7001_v12 = vld [vmem:[#allocation118_spill] sm:$0xff] }
 0x340   :  { %v4091_v23 = vpop.eup %4090 }
 0x341   :  { %v4093_v1 = vpop.eup %4092  ;;  %v2224_v28 = vmul.f32 %v4091_v23, %v2214_v50  ;;  %v7002_v50 = vld [vmem:[#allocation119_spill] sm:$0xff]  ;;  %v7003_v23 = vld [vmem:[#allocation120_spill] sm:$0xff] }
 0x342   :  { %v2225_v6 = vmul.f32 %v4093_v1, %v2215_v58  ;;  %v7004_v58 = vld [vmem:[#allocation121_spill] sm:$0xff]  ;;  %v7005_v1 = vld [vmem:[#allocation122_spill] sm:$0xff] }
 0x343   :  { %v5557_v13 = vpack.c.bf16 %v2224_v28, %v2224_v28  ;;  %v7006_v28 = vld [vmem:[#allocation126_spill] sm:$0xff] }
 0x344   :  { %v2235_v37 = vpack.c.bf16 %v2225_v6, %v2225_v6  ;;  %v7007_v6 = vld [vmem:[#allocation145_spill] sm:$0xff] }
 0x346   :  { %2268 = vmatprep.mubr.bf16.mxu0 %v2235_v37  ;;  %2309 = vmatprep.mubr.bf16.mxu1 %v2235_v37 }
 0x347   :  { %2269 = vmatmul.mubr.bf16.vlgmr.msra.gmra.mrb[48].mxu0 %v5557_v13  ;;  %2310 = vmatmul.mubr.bf16.vlgmr.msra.gmra.mrb[48].mxu1 %v5557_v13 }
 0x348   :  { %2319 = vmatpush1.bf16.msra.mxu0 %v6883_v49  ;;  %2360 = vmatpush1.bf16.msra.mxu1 %v6884_v25 }
 0x349   :  { %2350 = vmatprep.mubr.bf16.mxu0 %v2235_v37  ;;  %2391 = vmatprep.mubr.bf16.mxu1 %v2235_v37  ;;  %v7008_v37 = vld [vmem:[#allocation146_spill] sm:$0xff] }
 0x34a   :  { %2320 = vmatprep.subr.bf16.mxu0 %v6885_v18  ;;  %2361 = vmatprep.subr.bf16.mxu1 %v6886_v42 }
 0x34c   :  { %2321 = vmatpush1.bf16.msra.mxu0 %v6887_v11  ;;  %2362 = vmatpush1.bf16.msra.mxu1 %v6888_v51 }
 0x34d   :  { %2322 = vmatprep.subr.bf16.mxu0 %v6889_v41  ;;  %2363 = vmatprep.subr.bf16.mxu1 %v6890_v34 }
 0x350   :  { %2323 = vmatpush1.bf16.msra.mxu0 %v6891_v2  ;;  %2364 = vmatpush1.bf16.msra.mxu1 %v6892_v45 }
 0x351   :  { %2324 = vmatprep.subr.bf16.mxu0 %v6893_v26  ;;  %2365 = vmatprep.subr.bf16.mxu1 %v6894_v27 }
 0x354   :  { %2325 = vmatpush1.bf16.msra.mxu0 %v6895_v0  ;;  %2366 = vmatpush1.bf16.msra.mxu1 %v6896_v32 }
 0x355   :  { %2326 = vmatprep.subr.bf16.mxu0 %v6897_v9  ;;  %2367 = vmatprep.subr.bf16.mxu1 %v6898_v10 }
 0x358   :  { %2327 = vmatpush1.bf16.msra.mxu0 %v6899_v19  ;;  %2368 = vmatpush1.bf16.msra.mxu1 %v6900_v31 }
 0x359   :  { %2328 = vmatprep.subr.bf16.mxu0 %v6987_v38  ;;  %2369 = vmatprep.subr.bf16.mxu1 %v6988_v5 }
 0x35c   :  { %2329 = vmatpush1.bf16.msra.mxu0 %v6989_v4  ;;  %2370 = vmatpush1.bf16.msra.mxu1 %v6990_v62 }
 0x35d   :  { %2330 = vmatprep.subr.bf16.mxu0 %v6991_v61  ;;  %2371 = vmatprep.subr.bf16.mxu1 %v6992_v59 }
 0x360   :  { %2331 = vmatpush1.bf16.msra.mxu0 %v6993_v14  ;;  %2372 = vmatpush1.bf16.msra.mxu1 %v6994_v21 }
 0x361   :  { %2332 = vmatprep.subr.bf16.mxu0 %v6995_v24  ;;  %2373 = vmatprep.subr.bf16.mxu1 %v6996_v22 }
 0x364   :  { %2333 = vmatpush1.bf16.msra.mxu0 %v6997_v54  ;;  %2374 = vmatpush1.bf16.msra.mxu1 %v6998_v60 }
 0x365   :  { %2334 = vmatprep.subr.bf16.mxu0 %v6999_v7  ;;  %2375 = vmatprep.subr.bf16.mxu1 %v7000_v53 }
 0x368   :  { %2335 = vmatpush1.bf16.msra.mxu0 %v7001_v12  ;;  %2376 = vmatpush1.bf16.msra.mxu1 %v7002_v50 }
 0x369   :  { %2336 = vmatprep.subr.bf16.mxu0 %v7003_v23  ;;  %2377 = vmatprep.subr.bf16.mxu1 %v7004_v58 }
 0x36c   :  { %2337 = vmatpush1.bf16.msra.mxu0 %v7005_v1  ;;  %2378 = vmatpush1.bf16.msra.mxu1 %v6920_v57 }
 0x36d   :  { %2338 = vmatprep.subr.bf16.mxu0 %v6921_v48  ;;  %2379 = vmatprep.subr.bf16.mxu1 %v6922_v33 }
 0x370   :  { %2339 = vmatpush1.bf16.msra.mxu0 %v7006_v28  ;;  %2380 = vmatpush1.bf16.msra.mxu1 %v6924_v36  ;;  %v7081_v36 = vld [vmem:[#allocation182_spill] sm:$0xff] }
 0x371   :  { %2340 = vmatprep.subr.bf16.mxu0 %v6925_v30  ;;  %2381 = vmatprep.subr.bf16.mxu1 %v6926_v52 }
 0x374   :  { %2341 = vmatpush1.bf16.msra.mxu0 %v6927_v56  ;;  %2382 = vmatpush1.bf16.msra.mxu1 %v6928_v29 }
 0x375   :  { %2342 = vmatprep.subr.bf16.mxu0 %v6929_v40  ;;  %2383 = vmatprep.subr.bf16.mxu1 %v6930_v55  ;;  %v7078_v55 = vld [vmem:[#allocation153_spill] sm:$0xff]  ;;  %v7079_v40 = vld [vmem:[#allocation156_spill] sm:$0xff] }
 0x378   :  { %2343 = vmatpush1.bf16.msra.mxu0 %v5049_v44  ;;  %2384 = vmatpush1.bf16.msra.mxu1 %v5053_v46  ;;  %v7077_v46 = vld [vmem:[#allocation154_spill] sm:$0xff] }
 0x379   :  { %2344 = vmatprep.subr.bf16.mxu0 %v5055_v47  ;;  %2385 = vmatprep.subr.bf16.mxu1 %v6931_v20  ;;  %v7009_v47 = vld [vmem:[#allocation147_spill] sm:$0xff]  ;;  %v7010_v20 = vld [vmem:[#allocation20_spill] sm:$0xff] }
 0x37c   :  { %2345 = vmatpush1.bf16.msra.mxu0 %v5061_v3  ;;  %2386 = vmatpush1.bf16.msra.mxu1 %v5065_v17  ;;  %v7011_v3 = vld [vmem:[#allocation21_spill] sm:$0xff]  ;;  %v7076_v17 = vld [vmem:[#allocation152_spill] sm:$0xff] }
 0x37d   :  { %2346 = vmatprep.subr.bf16.mxu0 %v5067_v16  ;;  %2387 = vmatprep.subr.bf16.mxu1 %v5070_v8  ;;  %v7012_v8 = vld [vmem:[#allocation22_spill] sm:$0xff]  ;;  %v7021_v16 = vld [vmem:[#allocation31_spill] sm:$0xff] }
 0x380   :  { %2347 = vmatpush1.bf16.msra.mxu0 %v5073_v39  ;;  %2388 = vmatpush1.bf16.msra.mxu1 %v5077_v35  ;;  %v7013_v39 = vld [vmem:[#allocation23_spill] sm:$0xff]  ;;  %v7014_v35 = vld [vmem:[#allocation24_spill] sm:$0xff] }
 0x381   :  { %2348 = vmatprep.subr.bf16.mxu0 %v5079_v43  ;;  %2389 = vmatprep.subr.bf16.mxu1 %v7007_v6  ;;  %v7015_v43 = vld [vmem:[#allocation25_spill] sm:$0xff]  ;;  %v7016_v6 = vld [vmem:[#allocation26_spill] sm:$0xff] }
 0x384   :  { %2349 = vmatpush1.bf16.msra.mxu0 %v7008_v37  ;;  %2390 = vmatpush1.bf16.msra.mxu1 %v7009_v47  ;;  %v7017_v37 = vld [vmem:[#allocation27_spill] sm:$0xff]  ;;  %v7018_v47 = vld [vmem:[#allocation28_spill] sm:$0xff] }
 0x385   :  { %2454 = vmatprep.subr.bf16.mxu0 %v7010_v20  ;;  %2495 = vmatprep.subr.bf16.mxu1 %v7011_v3  ;;  %v7019_v20 = vld [vmem:[#allocation29_spill] sm:$0xff]  ;;  %v7020_v3 = vld [vmem:[#allocation30_spill] sm:$0xff] }
 0x387   :  { %2351 = vmatmul.mubr.bf16.vlgmr.msra.gmra.mrb[52].mxu0 %v5557_v13  ;;  %2392 = vmatmul.mubr.bf16.vlgmr.msra.gmra.mrb[52].mxu1 %v5557_v13  ;;  %v7022_v13 = vld [vmem:[#allocation32_spill] sm:$0xff] }
 0x388   :  { %2455 = vmatpush1.bf16.msra.mxu0 %v7012_v8  ;;  %2496 = vmatpush1.bf16.msra.mxu1 %v7013_v39  ;;  %v7023_v8 = vld [vmem:[#allocation33_spill] sm:$0xff]  ;;  %v7024_v39 = vld [vmem:[#allocation34_spill] sm:$0xff] }
 0x389   :  { %2456 = vmatprep.subr.bf16.mxu0 %v7014_v35  ;;  %2497 = vmatprep.subr.bf16.mxu1 %v7015_v43  ;;  %v7025_v35 = vld [vmem:[#allocation35_spill] sm:$0xff]  ;;  %v7026_v43 = vld [vmem:[#allocation36_spill] sm:$0xff] }
 0x38c   :  { %2457 = vmatpush1.bf16.msra.mxu0 %v7016_v6  ;;  %2498 = vmatpush1.bf16.msra.mxu1 %v7017_v37  ;;  %v7027_v6 = vld [vmem:[#allocation37_spill] sm:$0xff]  ;;  %v7028_v37 = vld [vmem:[#allocation38_spill] sm:$0xff] }
 0x38d   :  { %2458 = vmatprep.subr.bf16.mxu0 %v7018_v47  ;;  %2499 = vmatprep.subr.bf16.mxu1 %v7019_v20  ;;  %v7029_v47 = vld [vmem:[#allocation39_spill] sm:$0xff]  ;;  %v7030_v20 = vld [vmem:[#allocation40_spill] sm:$0xff] }
 0x390   :  { %2459 = vmatpush1.bf16.msra.mxu0 %v7020_v3  ;;  %2500 = vmatpush1.bf16.msra.mxu1 %v7021_v16  ;;  %v7031_v3 = vld [vmem:[#allocation41_spill] sm:$0xff]  ;;  %v7032_v16 = vld [vmem:[#allocation42_spill] sm:$0xff] }
 0x391   :  { %2460 = vmatprep.subr.bf16.mxu0 %v7022_v13  ;;  %2501 = vmatprep.subr.bf16.mxu1 %v7023_v8  ;;  %v7033_v13 = vld [vmem:[#allocation43_spill] sm:$0xff]  ;;  %v7034_v8 = vld [vmem:[#allocation44_spill] sm:$0xff] }
 0x394   :  { %2461 = vmatpush1.bf16.msra.mxu0 %v7024_v39  ;;  %2502 = vmatpush1.bf16.msra.mxu1 %v7025_v35  ;;  %v7035_v39 = vld [vmem:[#allocation45_spill] sm:$0xff]  ;;  %v7036_v35 = vld [vmem:[#allocation46_spill] sm:$0xff] }
 0x395   :  { %2462 = vmatprep.subr.bf16.mxu0 %v7026_v43  ;;  %2503 = vmatprep.subr.bf16.mxu1 %v7027_v6  ;;  %v7037_v43 = vld [vmem:[#allocation47_spill] sm:$0xff]  ;;  %v7038_v6 = vld [vmem:[#allocation48_spill] sm:$0xff] }
 0x398   :  { %2463 = vmatpush1.bf16.msra.mxu0 %v7028_v37  ;;  %2504 = vmatpush1.bf16.msra.mxu1 %v7029_v47  ;;  %v7039_v37 = vld [vmem:[#allocation49_spill] sm:$0xff]  ;;  %v7040_v47 = vld [vmem:[#allocation50_spill] sm:$0xff] }
 0x399   :  { %2464 = vmatprep.subr.bf16.mxu0 %v7030_v20  ;;  %2505 = vmatprep.subr.bf16.mxu1 %v7031_v3  ;;  %v7041_v20 = vld [vmem:[#allocation51_spill] sm:$0xff]  ;;  %v7042_v3 = vld [vmem:[#allocation52_spill] sm:$0xff] }
 0x39c   :  { %2465 = vmatpush1.bf16.msra.mxu0 %v7032_v16  ;;  %2506 = vmatpush1.bf16.msra.mxu1 %v7033_v13  ;;  %v7043_v16 = vld [vmem:[#allocation53_spill] sm:$0xff]  ;;  %v7044_v13 = vld [vmem:[#allocation54_spill] sm:$0xff] }
 0x39d   :  { %2466 = vmatprep.subr.bf16.mxu0 %v7034_v8  ;;  %2507 = vmatprep.subr.bf16.mxu1 %v7035_v39  ;;  %v7045_v8 = vld [vmem:[#allocation55_spill] sm:$0xff]  ;;  %v7046_v39 = vld [vmem:[#allocation56_spill] sm:$0xff] }
 0x3a0   :  { %2467 = vmatpush1.bf16.msra.mxu0 %v7036_v35  ;;  %2508 = vmatpush1.bf16.msra.mxu1 %v7037_v43  ;;  %v7047_v35 = vld [vmem:[#allocation57_spill] sm:$0xff]  ;;  %v7048_v43 = vld [vmem:[#allocation58_spill] sm:$0xff] }
 0x3a1   :  { %2468 = vmatprep.subr.bf16.mxu0 %v7038_v6  ;;  %2509 = vmatprep.subr.bf16.mxu1 %v7039_v37  ;;  %v7049_v6 = vld [vmem:[#allocation59_spill] sm:$0xff]  ;;  %v7050_v37 = vld [vmem:[#allocation60_spill] sm:$0xff] }
 0x3a4   :  { %2469 = vmatpush1.bf16.msra.mxu0 %v7040_v47  ;;  %2510 = vmatpush1.bf16.msra.mxu1 %v7041_v20  ;;  %v7051_v47 = vld [vmem:[#allocation61_spill] sm:$0xff]  ;;  %v7052_v20 = vld [vmem:[#allocation62_spill] sm:$0xff] }
 0x3a5   :  { %2470 = vmatprep.subr.bf16.mxu0 %v7042_v3  ;;  %2511 = vmatprep.subr.bf16.mxu1 %v7043_v16  ;;  %v7053_v3 = vld [vmem:[#allocation63_spill] sm:$0xff]  ;;  %v7054_v16 = vld [vmem:[#allocation64_spill] sm:$0xff] }
 0x3a8   :  { %2471 = vmatpush1.bf16.msra.mxu0 %v7044_v13  ;;  %2512 = vmatpush1.bf16.msra.mxu1 %v7045_v8  ;;  %v7055_v13 = vld [vmem:[#allocation65_spill] sm:$0xff]  ;;  %v7056_v8 = vld [vmem:[#allocation66_spill] sm:$0xff] }
 0x3a9   :  { %2472 = vmatprep.subr.bf16.mxu0 %v7046_v39  ;;  %2513 = vmatprep.subr.bf16.mxu1 %v7047_v35  ;;  %v7057_v39 = vld [vmem:[#allocation67_spill] sm:$0xff]  ;;  %v7058_v35 = vld [vmem:[#allocation68_spill] sm:$0xff] }
 0x3ac   :  { %2473 = vmatpush1.bf16.msra.mxu0 %v7048_v43  ;;  %2514 = vmatpush1.bf16.msra.mxu1 %v7049_v6  ;;  %v7059_v43 = vld [vmem:[#allocation69_spill] sm:$0xff]  ;;  %v7060_v6 = vld [vmem:[#allocation70_spill] sm:$0xff] }
 0x3ad   :  { %2474 = vmatprep.subr.bf16.mxu0 %v7050_v37  ;;  %2515 = vmatprep.subr.bf16.mxu1 %v7051_v47  ;;  %v7061_v37 = vld [vmem:[#allocation71_spill] sm:$0xff]  ;;  %v7062_v47 = vld [vmem:[#allocation72_spill] sm:$0xff] }
 0x3b0   :  { %2475 = vmatpush1.bf16.msra.mxu0 %v7052_v20  ;;  %2516 = vmatpush1.bf16.msra.mxu1 %v7053_v3  ;;  %v7063_v20 = vld [vmem:[#allocation73_spill] sm:$0xff]  ;;  %v7064_v3 = vld [vmem:[#allocation74_spill] sm:$0xff] }
 0x3b1   :  { %2476 = vmatprep.subr.bf16.mxu0 %v7054_v16  ;;  %2517 = vmatprep.subr.bf16.mxu1 %v7055_v13  ;;  %v7065_v16 = vld [vmem:[#allocation75_spill] sm:$0xff]  ;;  %v7066_v13 = vld [vmem:[#allocation76_spill] sm:$0xff] }
 0x3b4   :  { %2477 = vmatpush1.bf16.msra.mxu0 %v7056_v8  ;;  %2518 = vmatpush1.bf16.msra.mxu1 %v7057_v39  ;;  %v7067_v8 = vld [vmem:[#allocation77_spill] sm:$0xff]  ;;  %v7068_v39 = vld [vmem:[#allocation78_spill] sm:$0xff] }
 0x3b5   :  { %2478 = vmatprep.subr.bf16.mxu0 %v7058_v35  ;;  %2519 = vmatprep.subr.bf16.mxu1 %v7059_v43  ;;  %v7069_v35 = vld [vmem:[#allocation79_spill] sm:$0xff]  ;;  %v7070_v43 = vld [vmem:[#allocation80_spill] sm:$0xff] }
 0x3b8   :  { %2479 = vmatpush1.bf16.msra.mxu0 %v7060_v6  ;;  %2520 = vmatpush1.bf16.msra.mxu1 %v7061_v37  ;;  %v7071_v6 = vld [vmem:[#allocation81_spill] sm:$0xff]  ;;  %v7072_v37 = vld [vmem:[#allocation82_spill] sm:$0xff] }
 0x3b9   :  { %2480 = vmatprep.subr.bf16.mxu0 %v7062_v47  ;;  %2521 = vmatprep.subr.bf16.mxu1 %v7063_v20  ;;  %v7073_v47 = vld [vmem:[#allocation83_spill] sm:$0xff]  ;;  %v7074_v20 = vld [vmem:[#allocation84_spill] sm:$0xff] }
 0x3bc   :  { %2481 = vmatpush1.bf16.msra.mxu0 %v7064_v3  ;;  %2522 = vmatpush1.bf16.msra.mxu1 %v7065_v16  ;;  %v7075_v3 = vld [vmem:[#allocation85_spill] sm:$0xff] }
 0x3bd   :  { %2482 = vmatprep.subr.bf16.mxu0 %v7066_v13  ;;  %2523 = vmatprep.subr.bf16.mxu1 %v7067_v8 }
 0x3c0   :  { %2483 = vmatpush1.bf16.msra.mxu0 %v7068_v39  ;;  %2524 = vmatpush1.bf16.msra.mxu1 %v7069_v35 }
 0x3c1   :  { %2484 = vmatprep.subr.bf16.mxu0 %v7070_v43  ;;  %2525 = vmatprep.subr.bf16.mxu1 %v7071_v6 }
 0x3c4   :  { %2485 = vmatpush1.bf16.msra.mxu0 %v7072_v37  ;;  %2526 = vmatpush1.bf16.msra.mxu1 %v7073_v47 }
 0x3c5   :  { %2536 = vmatprep.subr.bf16.mxu0 %v7074_v20  ;;  %2577 = vmatprep.subr.bf16.mxu1 %v7075_v3 }
 0x41a   :  { %v2270_v16 = vpop.f32.mrb[48].mxu0  ;;  %v2311_v13 = vpop.f32.mrb[48].mxu1 }
 0x41b   :  { %v2400_v8 = vadd.f32 %v2270_v16, %v7076_v17  ;;  %v2402_v39 = vadd.f32 %v2311_v13, %v7077_v46  ;;  %v2272_v44 = vpop.f32.mrb[49].mxu0  ;;  %v2313_v35 = vpop.f32.mrb[49].mxu1  ;;  %v7080_v16 = vld [vmem:[#allocation180_spill] sm:$0xff] }
 0x41c   :  { %v2401_v43 = vadd.f32 %v2272_v44, %v7078_v55  ;;  %v2403_v6 = vadd.f32 %v2313_v35, %v7079_v40  ;;  %v2274_v29 = vpop.f32.mrb[50].mxu0  ;;  %v2315_v37 = vpop.f32.mrb[50].mxu1 }
 0x41d   :  { %v2275_v56 = vpop.f32.mrb[51].mxu0  ;;  %v2316_v47 = vpop.f32.mrb[51].mxu1  ;;  %v2416_v52 = vmul.f32 0.5, %v2402_v39  ;;  %v2408_v30 = vmul.f32 0.5, %v2400_v8  ;;  %v7082_v29 = vld [vmem:[#allocation181_spill] sm:$0xff] }
 0x41e   :  { %v2417_v20 = vmul.f32 0.5, %v2403_v6  ;;  %v2409_v3 = vmul.f32 0.5, %v2401_v43  ;;  %v7083_v56 = vld [vmem:[#allocation184_spill] sm:$0xff] }
 0x41f   :  { %4094 = vtanh.f32 %v2416_v52 }
 0x420   :  { %4096 = vtanh.f32 %v2417_v20 }
 0x421   :  { %4098 = vtanh.f32 %v2408_v30 }
 0x422   :  { %4100 = vtanh.f32 %v2409_v3 }
 0x429   :  { %v4095_v8 = vpop.eup %4094 }
 0x42a   :  { %v4097_v30 = vpop.eup %4096  ;;  %v2420_v37 = vadd.f32 1.0, %v4095_v8 }
 0x42b   :  { %v4099_v3 = vpop.eup %4098 }
 0x42c   :  { %v4101_v52 = vpop.eup %4100  ;;  %v2422_v33 = vmul.f32 0.5, %v2420_v37 }
 0x42d   :  { %v2413_v28 = vadd.f32 1.0, %v4101_v52 }
 0x45a   :  { %v2352_v17 = vpop.f32.mrb[52].mxu0  ;;  %v2393_v46 = vpop.f32.mrb[52].mxu1 }
 0x45b   :  { %v2404_v13 = vadd.f32 %v2352_v17, %v7080_v16  ;;  %v2406_v44 = vadd.f32 %v2393_v46, %v7081_v36  ;;  %v2354_v55 = vpop.f32.mrb[53].mxu0  ;;  %v2395_v35 = vpop.f32.mrb[53].mxu1  ;;  %v2421_v16 = vadd.f32 1.0, %v4097_v30  ;;  %v2412_v46 = vadd.f32 1.0, %v4099_v3 }
 0x45c   :  { %v2405_v40 = vadd.f32 %v2354_v55, %v7082_v29  ;;  %v2407_v47 = vadd.f32 %v2395_v35, %v7083_v56  ;;  %v2356_v39 = vpop.f32.mrb[54].mxu0  ;;  %v2397_v6 = vpop.f32.mrb[54].mxu1  ;;  %v2415_v56 = vmul.f32 0.5, %v2413_v28 }
 0x45d   :  { %4102 = vtanh.f32 %v2404_v13  ;;  %v2357_v43 = vpop.f32.mrb[55].mxu0  ;;  %v2398_v20 = vpop.f32.mrb[55].mxu1  ;;  %v2426_v17 = vmul.f32 0.5, %v2406_v44  ;;  %v2423_v55 = vmul.f32 0.5, %v2421_v16  ;;  %v2414_v35 = vmul.f32 0.5, %v2412_v46  ;;  %v7085_v46 = vld [vmem:[#allocation126_spill] sm:$0xff] }
 0x45e   :  { %4104 = vtanh.f32 %v2405_v40  ;;  %v2427_v36 = vmul.f32 0.5, %v2407_v47  ;;  %v2434_v39 = vmul.f32 %v2422_v33, %v5551_v15 }
 0x45f   :  { %4106 = vtanh.f32 %v2426_v17  ;;  %v2435_v40 = vmul.f32 %v2423_v55, %v5553_v63  ;;  %v7086_v55 = vld [vmem:[#allocation127_spill] sm:$0xff] }
 0x460   :  { %4108 = vtanh.f32 %v2427_v36  ;;  %v7084_v36 = vld [vmem:[#allocation125_spill] sm:$0xff] }
 0x467   :  { %v4103_v29 = vpop.eup %4102 }
 0x468   :  { %v4105_v13 = vpop.eup %4104  ;;  %v2436_v6 = vmul.f32 %v4103_v29, %v2414_v35  ;;  %v7087_v35 = vld [vmem:[#allocation128_spill] sm:$0xff]  ;;  %v7088_v29 = vld [vmem:[#allocation129_spill] sm:$0xff] }
 0x469   :  { %v2437_v43 = vmul.f32 %v4105_v13, %v2415_v56  ;;  %v4107_v47 = vpop.eup %4106  ;;  %v7089_v56 = vld [vmem:[#allocation130_spill] sm:$0xff]  ;;  %v7090_v13 = vld [vmem:[#allocation131_spill] sm:$0xff] }
 0x46a   :  { %v5701_v8 = vadd.f32 %v2436_v6, %v2434_v39  ;;  %v4109_v20 = vpop.eup %4108  ;;  %v2430_v30 = vadd.f32 1.0, %v4107_v47  ;;  %v7091_v39 = vld [vmem:[#allocation132_spill] sm:$0xff]  ;;  %v7092_v6 = vld [vmem:[#allocation133_spill] sm:$0xff] }
 0x46b   :  { %v5703_v44 = vadd.f32 %v2437_v43, %v2435_v40  ;;  %v2431_v3 = vadd.f32 1.0, %v4109_v20  ;;  %v7093_v40 = vld [vmem:[#allocation134_spill] sm:$0xff]  ;;  %v7094_v43 = vld [vmem:[#allocation135_spill] sm:$0xff]  ;;  %v7095_v47 = vld [vmem:[#allocation136_spill] sm:$0xff] }
 0x46c   :  { %4110 = vtanh.f32 %v5701_v8  ;;  %v2432_v28 = vmul.f32 0.5, %v2430_v30  ;;  %v7096_v20 = vld [vmem:[#allocation137_spill] sm:$0xff]  ;;  %v7097_v30 = vld [vmem:[#allocation138_spill] sm:$0xff] }
 0x46d   :  { %4112 = vtanh.f32 %v5703_v44  ;;  %v2433_v37 = vmul.f32 0.5, %v2431_v3  ;;  %v7098_v3 = vld [vmem:[#allocation139_spill] sm:$0xff] }
 0x476   :  { %v4111_v52 = vpop.eup %4110 }
 0x477   :  { %v4113_v33 = vpop.eup %4112  ;;  %v2442_v15 = vmul.f32 %v4111_v52, %v2432_v28  ;;  %v7099_v28 = vld [vmem:[#allocation140_spill] sm:$0xff]  ;;  %v7100_v52 = vld [vmem:[#allocation141_spill] sm:$0xff] }
 0x478   :  { %v2443_v17 = vmul.f32 %v4113_v33, %v2433_v37  ;;  %v7101_v37 = vld [vmem:[#allocation142_spill] sm:$0xff]  ;;  %v7102_v33 = vld [vmem:[#allocation143_spill] sm:$0xff] }
 0x479   :  { %v5707_v16 = vpack.c.bf16 %v2442_v15, %v2442_v15  ;;  %v7103_v15 = vld [vmem:[#allocation144_spill] sm:$0xff] }
 0x47a   :  { %v2453_v63 = vpack.c.bf16 %v2443_v17, %v2443_v17  ;;  %v7104_v17 = vld [vmem:[#allocation145_spill] sm:$0xff] }
 0x47c   :  { %2486 = vmatprep.mubr.bf16.mxu0 %v2453_v63  ;;  %2527 = vmatprep.mubr.bf16.mxu1 %v2453_v63 }
 0x47d   :  { %2487 = vmatmul.mubr.bf16.vlgmr.msra.gmra.mrb[56].mxu0 %v5707_v16  ;;  %2528 = vmatmul.mubr.bf16.vlgmr.msra.gmra.mrb[56].mxu1 %v5707_v16 }
 0x47e   :  { %2537 = vmatpush1.bf16.msra.mxu0 %v6883_v49  ;;  %2578 = vmatpush1.bf16.msra.mxu1 %v6884_v25 }
 0x47f   :  { %2568 = vmatprep.mubr.bf16.mxu0 %v2453_v63  ;;  %2609 = vmatprep.mubr.bf16.mxu1 %v2453_v63  ;;  %v7105_v63 = vld [vmem:[#allocation146_spill] sm:$0xff] }
 0x480   :  { %2538 = vmatprep.subr.bf16.mxu0 %v6885_v18  ;;  %2579 = vmatprep.subr.bf16.mxu1 %v6886_v42 }
 0x482   :  { %2539 = vmatpush1.bf16.msra.mxu0 %v6887_v11  ;;  %2580 = vmatpush1.bf16.msra.mxu1 %v6888_v51 }
 0x483   :  { %2540 = vmatprep.subr.bf16.mxu0 %v6889_v41  ;;  %2581 = vmatprep.subr.bf16.mxu1 %v6890_v34 }
 0x486   :  { %2541 = vmatpush1.bf16.msra.mxu0 %v6891_v2  ;;  %2582 = vmatpush1.bf16.msra.mxu1 %v6892_v45 }
 0x487   :  { %2542 = vmatprep.subr.bf16.mxu0 %v6893_v26  ;;  %2583 = vmatprep.subr.bf16.mxu1 %v6894_v27 }
 0x48a   :  { %2543 = vmatpush1.bf16.msra.mxu0 %v6895_v0  ;;  %2584 = vmatpush1.bf16.msra.mxu1 %v6896_v32 }
 0x48b   :  { %2544 = vmatprep.subr.bf16.mxu0 %v6897_v9  ;;  %2585 = vmatprep.subr.bf16.mxu1 %v6898_v10 }
 0x48e   :  { %2545 = vmatpush1.bf16.msra.mxu0 %v6899_v19  ;;  %2586 = vmatpush1.bf16.msra.mxu1 %v6900_v31 }
 0x48f   :  { %2546 = vmatprep.subr.bf16.mxu0 %v6987_v38  ;;  %2587 = vmatprep.subr.bf16.mxu1 %v6988_v5 }
 0x492   :  { %2547 = vmatpush1.bf16.msra.mxu0 %v6989_v4  ;;  %2588 = vmatpush1.bf16.msra.mxu1 %v6990_v62 }
 0x493   :  { %2548 = vmatprep.subr.bf16.mxu0 %v6991_v61  ;;  %2589 = vmatprep.subr.bf16.mxu1 %v6992_v59 }
 0x496   :  { %2549 = vmatpush1.bf16.msra.mxu0 %v6993_v14  ;;  %2590 = vmatpush1.bf16.msra.mxu1 %v6994_v21 }
 0x497   :  { %2550 = vmatprep.subr.bf16.mxu0 %v6995_v24  ;;  %2591 = vmatprep.subr.bf16.mxu1 %v6996_v22 }
 0x49a   :  { %2551 = vmatpush1.bf16.msra.mxu0 %v6997_v54  ;;  %2592 = vmatpush1.bf16.msra.mxu1 %v6998_v60 }
 0x49b   :  { %2552 = vmatprep.subr.bf16.mxu0 %v6999_v7  ;;  %2593 = vmatprep.subr.bf16.mxu1 %v7000_v53 }
 0x49e   :  { %2553 = vmatpush1.bf16.msra.mxu0 %v7001_v12  ;;  %2594 = vmatpush1.bf16.msra.mxu1 %v7002_v50 }
 0x49f   :  { %2554 = vmatprep.subr.bf16.mxu0 %v7003_v23  ;;  %2595 = vmatprep.subr.bf16.mxu1 %v7004_v58 }
 0x4a2   :  { %2555 = vmatpush1.bf16.msra.mxu0 %v7005_v1  ;;  %2596 = vmatpush1.bf16.msra.mxu1 %v6920_v57 }
 0x4a3   :  { %2556 = vmatprep.subr.bf16.mxu0 %v6921_v48  ;;  %2597 = vmatprep.subr.bf16.mxu1 %v7084_v36 }
 0x4a6   :  { %2557 = vmatpush1.bf16.msra.mxu0 %v7085_v46  ;;  %2598 = vmatpush1.bf16.msra.mxu1 %v7086_v55  ;;  %v7178_v55 = vld [vmem:[#allocation186_spill] sm:$0xff] }
 0x4a7   :  { %2558 = vmatprep.subr.bf16.mxu0 %v7087_v35  ;;  %2599 = vmatprep.subr.bf16.mxu1 %v7088_v29 }
 0x4aa   :  { %2559 = vmatpush1.bf16.msra.mxu0 %v7089_v56  ;;  %2600 = vmatpush1.bf16.msra.mxu1 %v7090_v13 }
 0x4ab   :  { %2560 = vmatprep.subr.bf16.mxu0 %v7091_v39  ;;  %2601 = vmatprep.subr.bf16.mxu1 %v7092_v6  ;;  %v7175_v6 = vld [vmem:[#allocation157_spill] sm:$0xff]  ;;  %v7176_v39 = vld [vmem:[#allocation159_spill] sm:$0xff] }
 0x4ae   :  { %2561 = vmatpush1.bf16.msra.mxu0 %v7093_v40  ;;  %2602 = vmatpush1.bf16.msra.mxu1 %v7094_v43  ;;  %v7174_v43 = vld [vmem:[#allocation158_spill] sm:$0xff] }
 0x4af   :  { %2562 = vmatprep.subr.bf16.mxu0 %v7095_v47  ;;  %2603 = vmatprep.subr.bf16.mxu1 %v7096_v20  ;;  %v7106_v47 = vld [vmem:[#allocation147_spill] sm:$0xff]  ;;  %v7107_v20 = vld [vmem:[#allocation20_spill] sm:$0xff] }
 0x4b2   :  { %2563 = vmatpush1.bf16.msra.mxu0 %v7097_v30  ;;  %2604 = vmatpush1.bf16.msra.mxu1 %v7098_v3  ;;  %v7108_v30 = vld [vmem:[#allocation21_spill] sm:$0xff]  ;;  %v7173_v3 = vld [vmem:[#allocation155_spill] sm:$0xff] }
 0x4b3   :  { %2564 = vmatprep.subr.bf16.mxu0 %v7099_v28  ;;  %2605 = vmatprep.subr.bf16.mxu1 %v7100_v52  ;;  %v7109_v52 = vld [vmem:[#allocation22_spill] sm:$0xff]  ;;  %v7118_v28 = vld [vmem:[#allocation31_spill] sm:$0xff] }
 0x4b6   :  { %2565 = vmatpush1.bf16.msra.mxu0 %v7101_v37  ;;  %2606 = vmatpush1.bf16.msra.mxu1 %v7102_v33  ;;  %v7110_v37 = vld [vmem:[#allocation23_spill] sm:$0xff]  ;;  %v7111_v33 = vld [vmem:[#allocation24_spill] sm:$0xff] }
 0x4b7   :  { %2566 = vmatprep.subr.bf16.mxu0 %v7103_v15  ;;  %2607 = vmatprep.subr.bf16.mxu1 %v7104_v17  ;;  %v7112_v15 = vld [vmem:[#allocation25_spill] sm:$0xff]  ;;  %v7113_v17 = vld [vmem:[#allocation26_spill] sm:$0xff] }
 0x4ba   :  { %2567 = vmatpush1.bf16.msra.mxu0 %v7105_v63  ;;  %2608 = vmatpush1.bf16.msra.mxu1 %v7106_v47  ;;  %v7114_v63 = vld [vmem:[#allocation27_spill] sm:$0xff]  ;;  %v7115_v47 = vld [vmem:[#allocation28_spill] sm:$0xff] }
 0x4bb   :  { %2672 = vmatprep.subr.bf16.mxu0 %v7107_v20  ;;  %2713 = vmatprep.subr.bf16.mxu1 %v7108_v30  ;;  %v7116_v20 = vld [vmem:[#allocation29_spill] sm:$0xff]  ;;  %v7117_v30 = vld [vmem:[#allocation30_spill] sm:$0xff] }
 0x4bd   :  { %2569 = vmatmul.mubr.bf16.vlgmr.msra.gmra.mrb[60].mxu0 %v5707_v16  ;;  %2610 = vmatmul.mubr.bf16.vlgmr.msra.gmra.mrb[60].mxu1 %v5707_v16  ;;  %v7119_v16 = vld [vmem:[#allocation32_spill] sm:$0xff] }
 0x4be   :  { %2673 = vmatpush1.bf16.msra.mxu0 %v7109_v52  ;;  %2714 = vmatpush1.bf16.msra.mxu1 %v7110_v37  ;;  %v7120_v52 = vld [vmem:[#allocation33_spill] sm:$0xff]  ;;  %v7121_v37 = vld [vmem:[#allocation34_spill] sm:$0xff] }
 0x4bf   :  { %2674 = vmatprep.subr.bf16.mxu0 %v7111_v33  ;;  %2715 = vmatprep.subr.bf16.mxu1 %v7112_v15  ;;  %v7122_v33 = vld [vmem:[#allocation35_spill] sm:$0xff]  ;;  %v7123_v15 = vld [vmem:[#allocation36_spill] sm:$0xff] }
 0x4c2   :  { %2675 = vmatpush1.bf16.msra.mxu0 %v7113_v17  ;;  %2716 = vmatpush1.bf16.msra.mxu1 %v7114_v63  ;;  %v7124_v17 = vld [vmem:[#allocation37_spill] sm:$0xff]  ;;  %v7125_v63 = vld [vmem:[#allocation38_spill] sm:$0xff] }
 0x4c3   :  { %2676 = vmatprep.subr.bf16.mxu0 %v7115_v47  ;;  %2717 = vmatprep.subr.bf16.mxu1 %v7116_v20  ;;  %v7126_v47 = vld [vmem:[#allocation39_spill] sm:$0xff]  ;;  %v7127_v20 = vld [vmem:[#allocation40_spill] sm:$0xff] }
 0x4c6   :  { %2677 = vmatpush1.bf16.msra.mxu0 %v7117_v30  ;;  %2718 = vmatpush1.bf16.msra.mxu1 %v7118_v28  ;;  %v7128_v30 = vld [vmem:[#allocation41_spill] sm:$0xff]  ;;  %v7129_v28 = vld [vmem:[#allocation42_spill] sm:$0xff] }
 0x4c7   :  { %2678 = vmatprep.subr.bf16.mxu0 %v7119_v16  ;;  %2719 = vmatprep.subr.bf16.mxu1 %v7120_v52  ;;  %v7130_v16 = vld [vmem:[#allocation43_spill] sm:$0xff]  ;;  %v7131_v52 = vld [vmem:[#allocation44_spill] sm:$0xff] }
 0x4ca   :  { %2679 = vmatpush1.bf16.msra.mxu0 %v7121_v37  ;;  %2720 = vmatpush1.bf16.msra.mxu1 %v7122_v33  ;;  %v7132_v37 = vld [vmem:[#allocation45_spill] sm:$0xff]  ;;  %v7133_v33 = vld [vmem:[#allocation46_spill] sm:$0xff] }
 0x4cb   :  { %2680 = vmatprep.subr.bf16.mxu0 %v7123_v15  ;;  %2721 = vmatprep.subr.bf16.mxu1 %v7124_v17  ;;  %v7134_v15 = vld [vmem:[#allocation47_spill] sm:$0xff]  ;;  %v7135_v17 = vld [vmem:[#allocation48_spill] sm:$0xff] }
 0x4ce   :  { %2681 = vmatpush1.bf16.msra.mxu0 %v7125_v63  ;;  %2722 = vmatpush1.bf16.msra.mxu1 %v7126_v47  ;;  %v7136_v63 = vld [vmem:[#allocation49_spill] sm:$0xff]  ;;  %v7137_v47 = vld [vmem:[#allocation50_spill] sm:$0xff] }
 0x4cf   :  { %2682 = vmatprep.subr.bf16.mxu0 %v7127_v20  ;;  %2723 = vmatprep.subr.bf16.mxu1 %v7128_v30  ;;  %v7138_v20 = vld [vmem:[#allocation51_spill] sm:$0xff]  ;;  %v7139_v30 = vld [vmem:[#allocation52_spill] sm:$0xff] }
 0x4d2   :  { %2683 = vmatpush1.bf16.msra.mxu0 %v7129_v28  ;;  %2724 = vmatpush1.bf16.msra.mxu1 %v7130_v16  ;;  %v7140_v28 = vld [vmem:[#allocation53_spill] sm:$0xff]  ;;  %v7141_v16 = vld [vmem:[#allocation54_spill] sm:$0xff] }
 0x4d3   :  { %2684 = vmatprep.subr.bf16.mxu0 %v7131_v52  ;;  %2725 = vmatprep.subr.bf16.mxu1 %v7132_v37  ;;  %v7142_v52 = vld [vmem:[#allocation55_spill] sm:$0xff]  ;;  %v7143_v37 = vld [vmem:[#allocation56_spill] sm:$0xff] }
 0x4d6   :  { %2685 = vmatpush1.bf16.msra.mxu0 %v7133_v33  ;;  %2726 = vmatpush1.bf16.msra.mxu1 %v7134_v15  ;;  %v7144_v33 = vld [vmem:[#allocation57_spill] sm:$0xff]  ;;  %v7145_v15 = vld [vmem:[#allocation58_spill] sm:$0xff] }
 0x4d7   :  { %2686 = vmatprep.subr.bf16.mxu0 %v7135_v17  ;;  %2727 = vmatprep.subr.bf16.mxu1 %v7136_v63  ;;  %v7146_v17 = vld [vmem:[#allocation59_spill] sm:$0xff]  ;;  %v7147_v63 = vld [vmem:[#allocation60_spill] sm:$0xff] }
 0x4da   :  { %2687 = vmatpush1.bf16.msra.mxu0 %v7137_v47  ;;  %2728 = vmatpush1.bf16.msra.mxu1 %v7138_v20  ;;  %v7148_v47 = vld [vmem:[#allocation61_spill] sm:$0xff]  ;;  %v7149_v20 = vld [vmem:[#allocation62_spill] sm:$0xff] }
 0x4db   :  { %2688 = vmatprep.subr.bf16.mxu0 %v7139_v30  ;;  %2729 = vmatprep.subr.bf16.mxu1 %v7140_v28  ;;  %v7150_v30 = vld [vmem:[#allocation63_spill] sm:$0xff]  ;;  %v7151_v28 = vld [vmem:[#allocation64_spill] sm:$0xff] }
 0x4de   :  { %2689 = vmatpush1.bf16.msra.mxu0 %v7141_v16  ;;  %2730 = vmatpush1.bf16.msra.mxu1 %v7142_v52  ;;  %v7152_v16 = vld [vmem:[#allocation65_spill] sm:$0xff]  ;;  %v7153_v52 = vld [vmem:[#allocation66_spill] sm:$0xff] }
 0x4df   :  { %2690 = vmatprep.subr.bf16.mxu0 %v7143_v37  ;;  %2731 = vmatprep.subr.bf16.mxu1 %v7144_v33  ;;  %v7154_v37 = vld [vmem:[#allocation67_spill] sm:$0xff]  ;;  %v7155_v33 = vld [vmem:[#allocation68_spill] sm:$0xff] }
 0x4e2   :  { %2691 = vmatpush1.bf16.msra.mxu0 %v7145_v15  ;;  %2732 = vmatpush1.bf16.msra.mxu1 %v7146_v17  ;;  %v7156_v15 = vld [vmem:[#allocation69_spill] sm:$0xff]  ;;  %v7157_v17 = vld [vmem:[#allocation70_spill] sm:$0xff] }
 0x4e3   :  { %2692 = vmatprep.subr.bf16.mxu0 %v7147_v63  ;;  %2733 = vmatprep.subr.bf16.mxu1 %v7148_v47  ;;  %v7158_v63 = vld [vmem:[#allocation71_spill] sm:$0xff]  ;;  %v7159_v47 = vld [vmem:[#allocation72_spill] sm:$0xff] }
 0x4e6   :  { %2693 = vmatpush1.bf16.msra.mxu0 %v7149_v20  ;;  %2734 = vmatpush1.bf16.msra.mxu1 %v7150_v30  ;;  %v7160_v20 = vld [vmem:[#allocation73_spill] sm:$0xff]  ;;  %v7161_v30 = vld [vmem:[#allocation74_spill] sm:$0xff] }
 0x4e7   :  { %2694 = vmatprep.subr.bf16.mxu0 %v7151_v28  ;;  %2735 = vmatprep.subr.bf16.mxu1 %v7152_v16  ;;  %v7162_v28 = vld [vmem:[#allocation75_spill] sm:$0xff]  ;;  %v7163_v16 = vld [vmem:[#allocation76_spill] sm:$0xff] }
 0x4ea   :  { %2695 = vmatpush1.bf16.msra.mxu0 %v7153_v52  ;;  %2736 = vmatpush1.bf16.msra.mxu1 %v7154_v37  ;;  %v7164_v52 = vld [vmem:[#allocation77_spill] sm:$0xff]  ;;  %v7165_v37 = vld [vmem:[#allocation78_spill] sm:$0xff] }
 0x4eb   :  { %2696 = vmatprep.subr.bf16.mxu0 %v7155_v33  ;;  %2737 = vmatprep.subr.bf16.mxu1 %v7156_v15  ;;  %v7166_v33 = vld [vmem:[#allocation79_spill] sm:$0xff]  ;;  %v7167_v15 = vld [vmem:[#allocation80_spill] sm:$0xff] }
 0x4ee   :  { %2697 = vmatpush1.bf16.msra.mxu0 %v7157_v17  ;;  %2738 = vmatpush1.bf16.msra.mxu1 %v7158_v63  ;;  %v7168_v17 = vld [vmem:[#allocation81_spill] sm:$0xff]  ;;  %v7169_v63 = vld [vmem:[#allocation82_spill] sm:$0xff] }
 0x4ef   :  { %2698 = vmatprep.subr.bf16.mxu0 %v7159_v47  ;;  %2739 = vmatprep.subr.bf16.mxu1 %v7160_v20  ;;  %v7170_v47 = vld [vmem:[#allocation83_spill] sm:$0xff]  ;;  %v7171_v20 = vld [vmem:[#allocation84_spill] sm:$0xff] }
 0x4f2   :  { %2699 = vmatpush1.bf16.msra.mxu0 %v7161_v30  ;;  %2740 = vmatpush1.bf16.msra.mxu1 %v7162_v28  ;;  %v7172_v30 = vld [vmem:[#allocation85_spill] sm:$0xff] }
 0x4f3   :  { %2700 = vmatprep.subr.bf16.mxu0 %v7163_v16  ;;  %2741 = vmatprep.subr.bf16.mxu1 %v7164_v52 }
 0x4f6   :  { %2701 = vmatpush1.bf16.msra.mxu0 %v7165_v37  ;;  %2742 = vmatpush1.bf16.msra.mxu1 %v7166_v33 }
 0x4f7   :  { %2702 = vmatprep.subr.bf16.mxu0 %v7167_v15  ;;  %2743 = vmatprep.subr.bf16.mxu1 %v7168_v17 }
 0x4fa   :  { %2703 = vmatpush1.bf16.msra.mxu0 %v7169_v63  ;;  %2744 = vmatpush1.bf16.msra.mxu1 %v7170_v47 }
 0x4fb   :  { %2754 = vmatprep.subr.bf16.mxu0 %v7171_v20  ;;  %2795 = vmatprep.subr.bf16.mxu1 %v7172_v30 }
 0x550   :  { %v2488_v28 = vpop.f32.mrb[56].mxu0  ;;  %v2529_v16 = vpop.f32.mrb[56].mxu1 }
 0x551   :  { %v2618_v52 = vadd.f32 %v2488_v28, %v7173_v3  ;;  %v2620_v37 = vadd.f32 %v2529_v16, %v7174_v43  ;;  %v2490_v40 = vpop.f32.mrb[57].mxu0  ;;  %v2531_v33 = vpop.f32.mrb[57].mxu1  ;;  %v7177_v28 = vld [vmem:[#allocation183_spill] sm:$0xff] }
 0x552   :  { %v2619_v15 = vadd.f32 %v2490_v40, %v7175_v6  ;;  %v2621_v17 = vadd.f32 %v2531_v33, %v7176_v39  ;;  %v2492_v13 = vpop.f32.mrb[58].mxu0  ;;  %v2533_v63 = vpop.f32.mrb[58].mxu1 }
 0x553   :  { %v2493_v56 = vpop.f32.mrb[59].mxu0  ;;  %v2534_v47 = vpop.f32.mrb[59].mxu1  ;;  %v2634_v29 = vmul.f32 0.5, %v2620_v37  ;;  %v2626_v35 = vmul.f32 0.5, %v2618_v52  ;;  %v7179_v13 = vld [vmem:[#allocation185_spill] sm:$0xff] }
 0x554   :  { %v2635_v20 = vmul.f32 0.5, %v2621_v17  ;;  %v2627_v30 = vmul.f32 0.5, %v2619_v15  ;;  %v7180_v56 = vld [vmem:[#allocation187_spill] sm:$0xff] }
 0x555   :  { %4114 = vtanh.f32 %v2634_v29 }
 0x556   :  { %4116 = vtanh.f32 %v2635_v20 }
 0x557   :  { %4118 = vtanh.f32 %v2626_v35 }
 0x558   :  { %4120 = vtanh.f32 %v2627_v30 }
 0x55f   :  { %v4115_v52 = vpop.eup %4114 }
 0x560   :  { %v4117_v35 = vpop.eup %4116  ;;  %v2638_v63 = vadd.f32 1.0, %v4115_v52 }
 0x561   :  { %v4119_v30 = vpop.eup %4118 }
 0x562   :  { %v4121_v15 = vpop.eup %4120  ;;  %v2640_v36 = vmul.f32 0.5, %v2638_v63 }
 0x563   :  { %v2631_v46 = vadd.f32 1.0, %v4121_v15 }
 0x590   :  { %v2570_v3 = vpop.f32.mrb[60].mxu0  ;;  %v2611_v43 = vpop.f32.mrb[60].mxu1 }
 0x591   :  { %v2622_v16 = vadd.f32 %v2570_v3, %v7177_v28  ;;  %v2624_v6 = vadd.f32 %v2611_v43, %v7178_v55  ;;  %v2572_v40 = vpop.f32.mrb[61].mxu0  ;;  %v2613_v39 = vpop.f32.mrb[61].mxu1  ;;  %v2639_v28 = vadd.f32 1.0, %v4117_v35  ;;  %v2630_v43 = vadd.f32 1.0, %v4119_v30 }
 0x592   :  { %v2623_v33 = vadd.f32 %v2572_v40, %v7179_v13  ;;  %v2625_v47 = vadd.f32 %v2613_v39, %v7180_v56  ;;  %v2574_v37 = vpop.f32.mrb[62].mxu0  ;;  %v2615_v17 = vpop.f32.mrb[62].mxu1  ;;  %v2633_v56 = vmul.f32 0.5, %v2631_v46 }
 0x593   :  { %4122 = vtanh.f32 %v2622_v16  ;;  %v2575_v29 = vpop.f32.mrb[63].mxu0  ;;  %v2616_v20 = vpop.f32.mrb[63].mxu1  ;;  %v2644_v3 = vmul.f32 0.5, %v2624_v6  ;;  %v2641_v40 = vmul.f32 0.5, %v2639_v28  ;;  %v2632_v39 = vmul.f32 0.5, %v2630_v43  ;;  %v7182_v43 = vld [vmem:[#allocation126_spill] sm:$0xff] }
 0x594   :  { %4124 = vtanh.f32 %v2623_v33  ;;  %v2645_v55 = vmul.f32 0.5, %v2625_v47  ;;  %v2652_v37 = vmul.f32 %v2640_v36, %v5701_v8 }
 0x595   :  { %4126 = vtanh.f32 %v2644_v3  ;;  %v2653_v33 = vmul.f32 %v2641_v40, %v5703_v44  ;;  %v7183_v40 = vld [vmem:[#allocation127_spill] sm:$0xff] }
 0x596   :  { %4128 = vtanh.f32 %v2645_v55  ;;  %v7181_v55 = vld [vmem:[#allocation125_spill] sm:$0xff] }
 0x59d   :  { %v4123_v13 = vpop.eup %4122 }
 0x59e   :  { %v4125_v16 = vpop.eup %4124  ;;  %v2654_v17 = vmul.f32 %v4123_v13, %v2632_v39  ;;  %v7184_v39 = vld [vmem:[#allocation128_spill] sm:$0xff]  ;;  %v7185_v13 = vld [vmem:[#allocation129_spill] sm:$0xff] }
 0x59f   :  { %v2655_v29 = vmul.f32 %v4125_v16, %v2633_v56  ;;  %v4127_v47 = vpop.eup %4126  ;;  %v7186_v56 = vld [vmem:[#allocation130_spill] sm:$0xff]  ;;  %v7187_v16 = vld [vmem:[#allocation131_spill] sm:$0xff] }
 0x5a0   :  { %v5851_v52 = vadd.f32 %v2654_v17, %v2652_v37  ;;  %v4129_v20 = vpop.eup %4128  ;;  %v2648_v35 = vadd.f32 1.0, %v4127_v47  ;;  %v7188_v37 = vld [vmem:[#allocation132_spill] sm:$0xff]  ;;  %v7189_v17 = vld [vmem:[#allocation133_spill] sm:$0xff] }
 0x5a1   :  { %v5853_v6 = vadd.f32 %v2655_v29, %v2653_v33  ;;  %v2649_v30 = vadd.f32 1.0, %v4129_v20  ;;  %v7190_v33 = vld [vmem:[#allocation134_spill] sm:$0xff]  ;;  %v7191_v29 = vld [vmem:[#allocation135_spill] sm:$0xff]  ;;  %v7192_v47 = vld [vmem:[#allocation136_spill] sm:$0xff] }
 0x5a2   :  { %4130 = vtanh.f32 %v5851_v52  ;;  %v2650_v46 = vmul.f32 0.5, %v2648_v35  ;;  %v7193_v20 = vld [vmem:[#allocation137_spill] sm:$0xff]  ;;  %v7194_v35 = vld [vmem:[#allocation138_spill] sm:$0xff] }
 0x5a3   :  { %4132 = vtanh.f32 %v5853_v6  ;;  %v2651_v63 = vmul.f32 0.5, %v2649_v30  ;;  %v7195_v30 = vld [vmem:[#allocation139_spill] sm:$0xff] }
 0x5ac   :  { %v4131_v15 = vpop.eup %4130 }
 0x5ad   :  { %v4133_v8 = vpop.eup %4132  ;;  %v2660_v36 = vmul.f32 %v4131_v15, %v2650_v46  ;;  %v7196_v46 = vld [vmem:[#allocation140_spill] sm:$0xff]  ;;  %v7197_v15 = vld [vmem:[#allocation141_spill] sm:$0xff] }
 0x5ae   :  { %v2661_v3 = vmul.f32 %v4133_v8, %v2651_v63  ;;  %v7198_v63 = vld [vmem:[#allocation142_spill] sm:$0xff]  ;;  %v7199_v8 = vld [vmem:[#allocation143_spill] sm:$0xff] }
 0x5af   :  { %v5857_v28 = vpack.c.bf16 %v2660_v36, %v2660_v36  ;;  %v7200_v36 = vld [vmem:[#allocation144_spill] sm:$0xff] }
 0x5b0   :  { %v2671_v44 = vpack.c.bf16 %v2661_v3, %v2661_v3  ;;  %v7201_v3 = vld [vmem:[#allocation145_spill] sm:$0xff] }
 0x5b2   :  { %2704 = vmatprep.mubr.bf16.mxu0 %v2671_v44  ;;  %2745 = vmatprep.mubr.bf16.mxu1 %v2671_v44 }
 0x5b3   :  { %2705 = vmatmul.mubr.bf16.vlgmr.msra.gmra.mrb[64].mxu0 %v5857_v28  ;;  %2746 = vmatmul.mubr.bf16.vlgmr.msra.gmra.mrb[64].mxu1 %v5857_v28 }
 0x5b4   :  { %2755 = vmatpush1.bf16.msra.mxu0 %v6883_v49  ;;  %2796 = vmatpush1.bf16.msra.mxu1 %v6884_v25 }
 0x5b5   :  { %2786 = vmatprep.mubr.bf16.mxu0 %v2671_v44  ;;  %2827 = vmatprep.mubr.bf16.mxu1 %v2671_v44  ;;  %v7202_v44 = vld [vmem:[#allocation146_spill] sm:$0xff] }
 0x5b6   :  { %2756 = vmatprep.subr.bf16.mxu0 %v6885_v18  ;;  %2797 = vmatprep.subr.bf16.mxu1 %v6886_v42 }
 0x5b8   :  { %2757 = vmatpush1.bf16.msra.mxu0 %v6887_v11  ;;  %2798 = vmatpush1.bf16.msra.mxu1 %v6888_v51 }
 0x5b9   :  { %2758 = vmatprep.subr.bf16.mxu0 %v6889_v41  ;;  %2799 = vmatprep.subr.bf16.mxu1 %v6890_v34 }
 0x5bc   :  { %2759 = vmatpush1.bf16.msra.mxu0 %v6891_v2  ;;  %2800 = vmatpush1.bf16.msra.mxu1 %v6892_v45 }
 0x5bd   :  { %2760 = vmatprep.subr.bf16.mxu0 %v6893_v26  ;;  %2801 = vmatprep.subr.bf16.mxu1 %v6894_v27 }
 0x5c0   :  { %2761 = vmatpush1.bf16.msra.mxu0 %v6895_v0  ;;  %2802 = vmatpush1.bf16.msra.mxu1 %v6896_v32 }
 0x5c1   :  { %2762 = vmatprep.subr.bf16.mxu0 %v6897_v9  ;;  %2803 = vmatprep.subr.bf16.mxu1 %v6898_v10 }
 0x5c4   :  { %2763 = vmatpush1.bf16.msra.mxu0 %v6899_v19  ;;  %2804 = vmatpush1.bf16.msra.mxu1 %v6900_v31 }
 0x5c5   :  { %2764 = vmatprep.subr.bf16.mxu0 %v6987_v38  ;;  %2805 = vmatprep.subr.bf16.mxu1 %v6988_v5 }
 0x5c8   :  { %2765 = vmatpush1.bf16.msra.mxu0 %v6989_v4  ;;  %2806 = vmatpush1.bf16.msra.mxu1 %v6990_v62 }
 0x5c9   :  { %2766 = vmatprep.subr.bf16.mxu0 %v6991_v61  ;;  %2807 = vmatprep.subr.bf16.mxu1 %v6992_v59 }
 0x5cc   :  { %2767 = vmatpush1.bf16.msra.mxu0 %v6993_v14  ;;  %2808 = vmatpush1.bf16.msra.mxu1 %v6994_v21 }
 0x5cd   :  { %2768 = vmatprep.subr.bf16.mxu0 %v6995_v24  ;;  %2809 = vmatprep.subr.bf16.mxu1 %v6996_v22 }
 0x5d0   :  { %2769 = vmatpush1.bf16.msra.mxu0 %v6997_v54  ;;  %2810 = vmatpush1.bf16.msra.mxu1 %v6998_v60 }
 0x5d1   :  { %2770 = vmatprep.subr.bf16.mxu0 %v6999_v7  ;;  %2811 = vmatprep.subr.bf16.mxu1 %v7000_v53 }
 0x5d4   :  { %2771 = vmatpush1.bf16.msra.mxu0 %v7001_v12  ;;  %2812 = vmatpush1.bf16.msra.mxu1 %v7002_v50 }
 0x5d5   :  { %2772 = vmatprep.subr.bf16.mxu0 %v7003_v23  ;;  %2813 = vmatprep.subr.bf16.mxu1 %v7004_v58 }
 0x5d8   :  { %2773 = vmatpush1.bf16.msra.mxu0 %v7005_v1  ;;  %2814 = vmatpush1.bf16.msra.mxu1 %v6920_v57 }
 0x5d9   :  { %2774 = vmatprep.subr.bf16.mxu0 %v6921_v48  ;;  %2815 = vmatprep.subr.bf16.mxu1 %v7181_v55 }
 0x5dc   :  { %2775 = vmatpush1.bf16.msra.mxu0 %v7182_v43  ;;  %2816 = vmatpush1.bf16.msra.mxu1 %v7183_v40  ;;  %v7275_v40 = vld [vmem:[#allocation190_spill] sm:$0xff] }
 0x5dd   :  { %2776 = vmatprep.subr.bf16.mxu0 %v7184_v39  ;;  %2817 = vmatprep.subr.bf16.mxu1 %v7185_v13 }
 0x5e0   :  { %2777 = vmatpush1.bf16.msra.mxu0 %v7186_v56  ;;  %2818 = vmatpush1.bf16.msra.mxu1 %v7187_v16 }
 0x5e1   :  { %2778 = vmatprep.subr.bf16.mxu0 %v7188_v37  ;;  %2819 = vmatprep.subr.bf16.mxu1 %v7189_v17  ;;  %v7272_v17 = vld [vmem:[#allocation161_spill] sm:$0xff]  ;;  %v7273_v37 = vld [vmem:[#allocation164_spill] sm:$0xff] }
 0x5e4   :  { %2779 = vmatpush1.bf16.msra.mxu0 %v7190_v33  ;;  %2820 = vmatpush1.bf16.msra.mxu1 %v7191_v29  ;;  %v7271_v29 = vld [vmem:[#allocation162_spill] sm:$0xff] }
 0x5e5   :  { %2780 = vmatprep.subr.bf16.mxu0 %v7192_v47  ;;  %2821 = vmatprep.subr.bf16.mxu1 %v7193_v20  ;;  %v7203_v47 = vld [vmem:[#allocation147_spill] sm:$0xff]  ;;  %v7204_v20 = vld [vmem:[#allocation20_spill] sm:$0xff] }
 0x5e8   :  { %2781 = vmatpush1.bf16.msra.mxu0 %v7194_v35  ;;  %2822 = vmatpush1.bf16.msra.mxu1 %v7195_v30  ;;  %v7205_v35 = vld [vmem:[#allocation21_spill] sm:$0xff]  ;;  %v7270_v30 = vld [vmem:[#allocation160_spill] sm:$0xff] }
 0x5e9   :  { %2782 = vmatprep.subr.bf16.mxu0 %v7196_v46  ;;  %2823 = vmatprep.subr.bf16.mxu1 %v7197_v15  ;;  %v7206_v15 = vld [vmem:[#allocation22_spill] sm:$0xff]  ;;  %v7215_v46 = vld [vmem:[#allocation31_spill] sm:$0xff] }
 0x5ec   :  { %2783 = vmatpush1.bf16.msra.mxu0 %v7198_v63  ;;  %2824 = vmatpush1.bf16.msra.mxu1 %v7199_v8  ;;  %v7207_v63 = vld [vmem:[#allocation23_spill] sm:$0xff]  ;;  %v7208_v8 = vld [vmem:[#allocation24_spill] sm:$0xff] }
 0x5ed   :  { %2784 = vmatprep.subr.bf16.mxu0 %v7200_v36  ;;  %2825 = vmatprep.subr.bf16.mxu1 %v7201_v3  ;;  %v7209_v36 = vld [vmem:[#allocation25_spill] sm:$0xff]  ;;  %v7210_v3 = vld [vmem:[#allocation26_spill] sm:$0xff] }
 0x5f0   :  { %2785 = vmatpush1.bf16.msra.mxu0 %v7202_v44  ;;  %2826 = vmatpush1.bf16.msra.mxu1 %v7203_v47  ;;  %v7211_v44 = vld [vmem:[#allocation27_spill] sm:$0xff]  ;;  %v7212_v47 = vld [vmem:[#allocation28_spill] sm:$0xff] }
 0x5f1   :  { %2890 = vmatprep.subr.bf16.mxu0 %v7204_v20  ;;  %2931 = vmatprep.subr.bf16.mxu1 %v7205_v35  ;;  %v7213_v20 = vld [vmem:[#allocation29_spill] sm:$0xff]  ;;  %v7214_v35 = vld [vmem:[#allocation30_spill] sm:$0xff] }
 0x5f3   :  { %2787 = vmatmul.mubr.bf16.vlgmr.msra.gmra.mrb[68].mxu0 %v5857_v28  ;;  %2828 = vmatmul.mubr.bf16.vlgmr.msra.gmra.mrb[68].mxu1 %v5857_v28  ;;  %v7216_v28 = vld [vmem:[#allocation32_spill] sm:$0xff] }
 0x5f4   :  { %2891 = vmatpush1.bf16.msra.mxu0 %v7206_v15  ;;  %2932 = vmatpush1.bf16.msra.mxu1 %v7207_v63  ;;  %v7217_v15 = vld [vmem:[#allocation33_spill] sm:$0xff]  ;;  %v7218_v63 = vld [vmem:[#allocation34_spill] sm:$0xff] }
 0x5f5   :  { %2892 = vmatprep.subr.bf16.mxu0 %v7208_v8  ;;  %2933 = vmatprep.subr.bf16.mxu1 %v7209_v36  ;;  %v7219_v8 = vld [vmem:[#allocation35_spill] sm:$0xff]  ;;  %v7220_v36 = vld [vmem:[#allocation36_spill] sm:$0xff] }
 0x5f8   :  { %2893 = vmatpush1.bf16.msra.mxu0 %v7210_v3  ;;  %2934 = vmatpush1.bf16.msra.mxu1 %v7211_v44  ;;  %v7221_v3 = vld [vmem:[#allocation37_spill] sm:$0xff]  ;;  %v7222_v44 = vld [vmem:[#allocation38_spill] sm:$0xff] }
 0x5f9   :  { %2894 = vmatprep.subr.bf16.mxu0 %v7212_v47  ;;  %2935 = vmatprep.subr.bf16.mxu1 %v7213_v20  ;;  %v7223_v47 = vld [vmem:[#allocation39_spill] sm:$0xff]  ;;  %v7224_v20 = vld [vmem:[#allocation40_spill] sm:$0xff] }
 0x5fc   :  { %2895 = vmatpush1.bf16.msra.mxu0 %v7214_v35  ;;  %2936 = vmatpush1.bf16.msra.mxu1 %v7215_v46  ;;  %v7225_v35 = vld [vmem:[#allocation41_spill] sm:$0xff]  ;;  %v7226_v46 = vld [vmem:[#allocation42_spill] sm:$0xff] }
 0x5fd   :  { %2896 = vmatprep.subr.bf16.mxu0 %v7216_v28  ;;  %2937 = vmatprep.subr.bf16.mxu1 %v7217_v15  ;;  %v7227_v28 = vld [vmem:[#allocation43_spill] sm:$0xff]  ;;  %v7228_v15 = vld [vmem:[#allocation44_spill] sm:$0xff] }
 0x600   :  { %2897 = vmatpush1.bf16.msra.mxu0 %v7218_v63  ;;  %2938 = vmatpush1.bf16.msra.mxu1 %v7219_v8  ;;  %v7229_v63 = vld [vmem:[#allocation45_spill] sm:$0xff]  ;;  %v7230_v8 = vld [vmem:[#allocation46_spill] sm:$0xff] }
 0x601   :  { %2898 = vmatprep.subr.bf16.mxu0 %v7220_v36  ;;  %2939 = vmatprep.subr.bf16.mxu1 %v7221_v3  ;;  %v7231_v36 = vld [vmem:[#allocation47_spill] sm:$0xff]  ;;  %v7232_v3 = vld [vmem:[#allocation48_spill] sm:$0xff] }
 0x604   :  { %2899 = vmatpush1.bf16.msra.mxu0 %v7222_v44  ;;  %2940 = vmatpush1.bf16.msra.mxu1 %v7223_v47  ;;  %v7233_v44 = vld [vmem:[#allocation49_spill] sm:$0xff]  ;;  %v7234_v47 = vld [vmem:[#allocation50_spill] sm:$0xff] }
 0x605   :  { %2900 = vmatprep.subr.bf16.mxu0 %v7224_v20  ;;  %2941 = vmatprep.subr.bf16.mxu1 %v7225_v35  ;;  %v7235_v20 = vld [vmem:[#allocation51_spill] sm:$0xff]  ;;  %v7236_v35 = vld [vmem:[#allocation52_spill] sm:$0xff] }
 0x608   :  { %2901 = vmatpush1.bf16.msra.mxu0 %v7226_v46  ;;  %2942 = vmatpush1.bf16.msra.mxu1 %v7227_v28  ;;  %v7237_v46 = vld [vmem:[#allocation53_spill] sm:$0xff]  ;;  %v7238_v28 = vld [vmem:[#allocation54_spill] sm:$0xff] }
 0x609   :  { %2902 = vmatprep.subr.bf16.mxu0 %v7228_v15  ;;  %2943 = vmatprep.subr.bf16.mxu1 %v7229_v63  ;;  %v7239_v15 = vld [vmem:[#allocation55_spill] sm:$0xff]  ;;  %v7240_v63 = vld [vmem:[#allocation56_spill] sm:$0xff] }
 0x60c   :  { %2903 = vmatpush1.bf16.msra.mxu0 %v7230_v8  ;;  %2944 = vmatpush1.bf16.msra.mxu1 %v7231_v36  ;;  %v7241_v8 = vld [vmem:[#allocation57_spill] sm:$0xff]  ;;  %v7242_v36 = vld [vmem:[#allocation58_spill] sm:$0xff] }
 0x60d   :  { %2904 = vmatprep.subr.bf16.mxu0 %v7232_v3  ;;  %2945 = vmatprep.subr.bf16.mxu1 %v7233_v44  ;;  %v7243_v3 = vld [vmem:[#allocation59_spill] sm:$0xff]  ;;  %v7244_v44 = vld [vmem:[#allocation60_spill] sm:$0xff] }
 0x610   :  { %2905 = vmatpush1.bf16.msra.mxu0 %v7234_v47  ;;  %2946 = vmatpush1.bf16.msra.mxu1 %v7235_v20  ;;  %v7245_v47 = vld [vmem:[#allocation61_spill] sm:$0xff]  ;;  %v7246_v20 = vld [vmem:[#allocation62_spill] sm:$0xff] }
 0x611   :  { %2906 = vmatprep.subr.bf16.mxu0 %v7236_v35  ;;  %2947 = vmatprep.subr.bf16.mxu1 %v7237_v46  ;;  %v7247_v35 = vld [vmem:[#allocation63_spill] sm:$0xff]  ;;  %v7248_v46 = vld [vmem:[#allocation64_spill] sm:$0xff] }
 0x614   :  { %2907 = vmatpush1.bf16.msra.mxu0 %v7238_v28  ;;  %2948 = vmatpush1.bf16.msra.mxu1 %v7239_v15  ;;  %v7249_v28 = vld [vmem:[#allocation65_spill] sm:$0xff]  ;;  %v7250_v15 = vld [vmem:[#allocation66_spill] sm:$0xff] }
 0x615   :  { %2908 = vmatprep.subr.bf16.mxu0 %v7240_v63  ;;  %2949 = vmatprep.subr.bf16.mxu1 %v7241_v8  ;;  %v7251_v63 = vld [vmem:[#allocation67_spill] sm:$0xff]  ;;  %v7252_v8 = vld [vmem:[#allocation68_spill] sm:$0xff] }
 0x618   :  { %2909 = vmatpush1.bf16.msra.mxu0 %v7242_v36  ;;  %2950 = vmatpush1.bf16.msra.mxu1 %v7243_v3  ;;  %v7253_v36 = vld [vmem:[#allocation69_spill] sm:$0xff]  ;;  %v7254_v3 = vld [vmem:[#allocation70_spill] sm:$0xff] }
 0x619   :  { %2910 = vmatprep.subr.bf16.mxu0 %v7244_v44  ;;  %2951 = vmatprep.subr.bf16.mxu1 %v7245_v47  ;;  %v7255_v44 = vld [vmem:[#allocation71_spill] sm:$0xff]  ;;  %v7256_v47 = vld [vmem:[#allocation72_spill] sm:$0xff] }
 0x61c   :  { %2911 = vmatpush1.bf16.msra.mxu0 %v7246_v20  ;;  %2952 = vmatpush1.bf16.msra.mxu1 %v7247_v35  ;;  %v7257_v20 = vld [vmem:[#allocation73_spill] sm:$0xff]  ;;  %v7258_v35 = vld [vmem:[#allocation74_spill] sm:$0xff] }
 0x61d   :  { %2912 = vmatprep.subr.bf16.mxu0 %v7248_v46  ;;  %2953 = vmatprep.subr.bf16.mxu1 %v7249_v28  ;;  %v7259_v46 = vld [vmem:[#allocation75_spill] sm:$0xff]  ;;  %v7260_v28 = vld [vmem:[#allocation76_spill] sm:$0xff] }
 0x620   :  { %2913 = vmatpush1.bf16.msra.mxu0 %v7250_v15  ;;  %2954 = vmatpush1.bf16.msra.mxu1 %v7251_v63  ;;  %v7261_v15 = vld [vmem:[#allocation77_spill] sm:$0xff]  ;;  %v7262_v63 = vld [vmem:[#allocation78_spill] sm:$0xff] }
 0x621   :  { %2914 = vmatprep.subr.bf16.mxu0 %v7252_v8  ;;  %2955 = vmatprep.subr.bf16.mxu1 %v7253_v36  ;;  %v7263_v8 = vld [vmem:[#allocation79_spill] sm:$0xff]  ;;  %v7264_v36 = vld [vmem:[#allocation80_spill] sm:$0xff] }
 0x624   :  { %2915 = vmatpush1.bf16.msra.mxu0 %v7254_v3  ;;  %2956 = vmatpush1.bf16.msra.mxu1 %v7255_v44  ;;  %v7265_v3 = vld [vmem:[#allocation81_spill] sm:$0xff]  ;;  %v7266_v44 = vld [vmem:[#allocation82_spill] sm:$0xff] }
 0x625   :  { %2916 = vmatprep.subr.bf16.mxu0 %v7256_v47  ;;  %2957 = vmatprep.subr.bf16.mxu1 %v7257_v20  ;;  %v7267_v47 = vld [vmem:[#allocation83_spill] sm:$0xff]  ;;  %v7268_v20 = vld [vmem:[#allocation84_spill] sm:$0xff] }
 0x628   :  { %2917 = vmatpush1.bf16.msra.mxu0 %v7258_v35  ;;  %2958 = vmatpush1.bf16.msra.mxu1 %v7259_v46  ;;  %v7269_v35 = vld [vmem:[#allocation85_spill] sm:$0xff] }
 0x629   :  { %2918 = vmatprep.subr.bf16.mxu0 %v7260_v28  ;;  %2959 = vmatprep.subr.bf16.mxu1 %v7261_v15 }
 0x62c   :  { %2919 = vmatpush1.bf16.msra.mxu0 %v7262_v63  ;;  %2960 = vmatpush1.bf16.msra.mxu1 %v7263_v8 }
 0x62d   :  { %2920 = vmatprep.subr.bf16.mxu0 %v7264_v36  ;;  %2961 = vmatprep.subr.bf16.mxu1 %v7265_v3 }
 0x630   :  { %2921 = vmatpush1.bf16.msra.mxu0 %v7266_v44  ;;  %2962 = vmatpush1.bf16.msra.mxu1 %v7267_v47 }
 0x631   :  { %2972 = vmatprep.subr.bf16.mxu0 %v7268_v20  ;;  %3013 = vmatprep.subr.bf16.mxu1 %v7269_v35 }
 0x686   :  { %v2706_v46 = vpop.f32.mrb[64].mxu0  ;;  %v2747_v28 = vpop.f32.mrb[64].mxu1 }
 0x687   :  { %v2836_v15 = vadd.f32 %v2706_v46, %v7270_v30  ;;  %v2838_v63 = vadd.f32 %v2747_v28, %v7271_v29  ;;  %v2708_v33 = vpop.f32.mrb[65].mxu0  ;;  %v2749_v8 = vpop.f32.mrb[65].mxu1  ;;  %v7274_v46 = vld [vmem:[#allocation188_spill] sm:$0xff] }
 0x688   :  { %v2837_v36 = vadd.f32 %v2708_v33, %v7272_v17  ;;  %v2839_v3 = vadd.f32 %v2749_v8, %v7273_v37  ;;  %v2710_v16 = vpop.f32.mrb[66].mxu0  ;;  %v2751_v44 = vpop.f32.mrb[66].mxu1 }
 0x689   :  { %v2711_v56 = vpop.f32.mrb[67].mxu0  ;;  %v2752_v47 = vpop.f32.mrb[67].mxu1  ;;  %v2852_v13 = vmul.f32 0.5, %v2838_v63  ;;  %v2844_v39 = vmul.f32 0.5, %v2836_v15  ;;  %v7276_v16 = vld [vmem:[#allocation189_spill] sm:$0xff] }
 0x68a   :  { %v2853_v20 = vmul.f32 0.5, %v2839_v3  ;;  %v2845_v35 = vmul.f32 0.5, %v2837_v36  ;;  %v7277_v56 = vld [vmem:[#allocation192_spill] sm:$0xff] }
 0x68b   :  { %4134 = vtanh.f32 %v2852_v13 }
 0x68c   :  { %4136 = vtanh.f32 %v2853_v20 }
 0x68d   :  { %4138 = vtanh.f32 %v2844_v39 }
 0x68e   :  { %4140 = vtanh.f32 %v2845_v35 }
 0x695   :  { %v4135_v15 = vpop.eup %4134 }
 0x696   :  { %v4137_v39 = vpop.eup %4136  ;;  %v2856_v44 = vadd.f32 1.0, %v4135_v15 }
 0x697   :  { %v4139_v35 = vpop.eup %4138 }
 0x698   :  { %v4141_v36 = vpop.eup %4140  ;;  %v2858_v55 = vmul.f32 0.5, %v2856_v44 }
 0x699   :  { %v2849_v43 = vadd.f32 1.0, %v4141_v36 }
 0x6c6   :  { %v2788_v30 = vpop.f32.mrb[68].mxu0  ;;  %v2829_v29 = vpop.f32.mrb[68].mxu1 }
 0x6c7   :  { %v2840_v28 = vadd.f32 %v2788_v30, %v7274_v46  ;;  %v2842_v17 = vadd.f32 %v2829_v29, %v7275_v40  ;;  %v2790_v33 = vpop.f32.mrb[69].mxu0  ;;  %v2831_v37 = vpop.f32.mrb[69].mxu1  ;;  %v2857_v46 = vadd.f32 1.0, %v4137_v39  ;;  %v2848_v29 = vadd.f32 1.0, %v4139_v35 }
 0x6c8   :  { %v2841_v8 = vadd.f32 %v2790_v33, %v7276_v16  ;;  %v2843_v47 = vadd.f32 %v2831_v37, %v7277_v56  ;;  %v2792_v63 = vpop.f32.mrb[70].mxu0  ;;  %v2833_v3 = vpop.f32.mrb[70].mxu1  ;;  %v2851_v56 = vmul.f32 0.5, %v2849_v43 }
 0x6c9   :  { %4142 = vtanh.f32 %v2840_v28  ;;  %v2793_v13 = vpop.f32.mrb[71].mxu0  ;;  %v2834_v20 = vpop.f32.mrb[71].mxu1  ;;  %v2862_v30 = vmul.f32 0.5, %v2842_v17  ;;  %v2859_v33 = vmul.f32 0.5, %v2857_v46  ;;  %v2850_v37 = vmul.f32 0.5, %v2848_v29  ;;  %v7279_v29 = vld [vmem:[#allocation126_spill] sm:$0xff] }
 0x6ca   :  { %4144 = vtanh.f32 %v2841_v8  ;;  %v2863_v40 = vmul.f32 0.5, %v2843_v47  ;;  %v2870_v63 = vmul.f32 %v2858_v55, %v5851_v52 }
 0x6cb   :  { %4146 = vtanh.f32 %v2862_v30  ;;  %v2871_v8 = vmul.f32 %v2859_v33, %v5853_v6  ;;  %v7280_v33 = vld [vmem:[#allocation127_spill] sm:$0xff] }
 0x6cc   :  { %4148 = vtanh.f32 %v2863_v40  ;;  %v7278_v40 = vld [vmem:[#allocation125_spill] sm:$0xff] }
 0x6d3   :  { %v4143_v16 = vpop.eup %4142 }
 0x6d4   :  { %v4145_v28 = vpop.eup %4144  ;;  %v2872_v3 = vmul.f32 %v4143_v16, %v2850_v37  ;;  %v7281_v37 = vld [vmem:[#allocation128_spill] sm:$0xff]  ;;  %v7282_v16 = vld [vmem:[#allocation129_spill] sm:$0xff] }
 0x6d5   :  { %v2873_v13 = vmul.f32 %v4145_v28, %v2851_v56  ;;  %v4147_v47 = vpop.eup %4146  ;;  %v7283_v56 = vld [vmem:[#allocation130_spill] sm:$0xff]  ;;  %v7284_v28 = vld [vmem:[#allocation131_spill] sm:$0xff] }
 0x6d6   :  { %v6001_v15 = vadd.f32 %v2872_v3, %v2870_v63  ;;  %v4149_v20 = vpop.eup %4148  ;;  %v2866_v39 = vadd.f32 1.0, %v4147_v47  ;;  %v7285_v63 = vld [vmem:[#allocation132_spill] sm:$0xff]  ;;  %v7286_v3 = vld [vmem:[#allocation133_spill] sm:$0xff] }
 0x6d7   :  { %v6003_v17 = vadd.f32 %v2873_v13, %v2871_v8  ;;  %v2867_v35 = vadd.f32 1.0, %v4149_v20  ;;  %v7287_v8 = vld [vmem:[#allocation134_spill] sm:$0xff]  ;;  %v7288_v13 = vld [vmem:[#allocation135_spill] sm:$0xff]  ;;  %v7289_v47 = vld [vmem:[#allocation136_spill] sm:$0xff] }
 0x6d8   :  { %4150 = vtanh.f32 %v6001_v15  ;;  %v2868_v43 = vmul.f32 0.5, %v2866_v39  ;;  %v7290_v20 = vld [vmem:[#allocation137_spill] sm:$0xff]  ;;  %v7291_v39 = vld [vmem:[#allocation138_spill] sm:$0xff] }
 0x6d9   :  { %4152 = vtanh.f32 %v6003_v17  ;;  %v2869_v44 = vmul.f32 0.5, %v2867_v35  ;;  %v7292_v35 = vld [vmem:[#allocation139_spill] sm:$0xff] }
 0x6e2   :  { %v4151_v36 = vpop.eup %4150 }
 0x6e3   :  { %v4153_v52 = vpop.eup %4152  ;;  %v2878_v55 = vmul.f32 %v4151_v36, %v2868_v43  ;;  %v7293_v43 = vld [vmem:[#allocation140_spill] sm:$0xff]  ;;  %v7294_v36 = vld [vmem:[#allocation141_spill] sm:$0xff] }
 0x6e4   :  { %v2879_v30 = vmul.f32 %v4153_v52, %v2869_v44  ;;  %v7295_v44 = vld [vmem:[#allocation142_spill] sm:$0xff]  ;;  %v7296_v52 = vld [vmem:[#allocation143_spill] sm:$0xff] }
 0x6e5   :  { %v6007_v46 = vpack.c.bf16 %v2878_v55, %v2878_v55  ;;  %v7297_v55 = vld [vmem:[#allocation144_spill] sm:$0xff] }
 0x6e6   :  { %v2889_v6 = vpack.c.bf16 %v2879_v30, %v2879_v30  ;;  %v7298_v30 = vld [vmem:[#allocation145_spill] sm:$0xff] }
 0x6e8   :  { %2922 = vmatprep.mubr.bf16.mxu0 %v2889_v6  ;;  %2963 = vmatprep.mubr.bf16.mxu1 %v2889_v6 }
 0x6e9   :  { %2923 = vmatmul.mubr.bf16.vlgmr.msra.gmra.mrb[72].mxu0 %v6007_v46  ;;  %2964 = vmatmul.mubr.bf16.vlgmr.msra.gmra.mrb[72].mxu1 %v6007_v46 }
 0x6ea   :  { %2973 = vmatpush1.bf16.msra.mxu0 %v6883_v49  ;;  %3014 = vmatpush1.bf16.msra.mxu1 %v6884_v25 }
 0x6eb   :  { %3004 = vmatprep.mubr.bf16.mxu0 %v2889_v6  ;;  %3045 = vmatprep.mubr.bf16.mxu1 %v2889_v6  ;;  %v7299_v6 = vld [vmem:[#allocation146_spill] sm:$0xff] }
 0x6ec   :  { %2974 = vmatprep.subr.bf16.mxu0 %v6885_v18  ;;  %3015 = vmatprep.subr.bf16.mxu1 %v6886_v42 }
 0x6ee   :  { %2975 = vmatpush1.bf16.msra.mxu0 %v6887_v11  ;;  %3016 = vmatpush1.bf16.msra.mxu1 %v6888_v51 }
 0x6ef   :  { %2976 = vmatprep.subr.bf16.mxu0 %v6889_v41  ;;  %3017 = vmatprep.subr.bf16.mxu1 %v6890_v34 }
 0x6f2   :  { %2977 = vmatpush1.bf16.msra.mxu0 %v6891_v2  ;;  %3018 = vmatpush1.bf16.msra.mxu1 %v6892_v45 }
 0x6f3   :  { %2978 = vmatprep.subr.bf16.mxu0 %v6893_v26  ;;  %3019 = vmatprep.subr.bf16.mxu1 %v6894_v27 }
 0x6f6   :  { %2979 = vmatpush1.bf16.msra.mxu0 %v6895_v0  ;;  %3020 = vmatpush1.bf16.msra.mxu1 %v6896_v32 }
 0x6f7   :  { %2980 = vmatprep.subr.bf16.mxu0 %v6897_v9  ;;  %3021 = vmatprep.subr.bf16.mxu1 %v6898_v10 }
 0x6fa   :  { %2981 = vmatpush1.bf16.msra.mxu0 %v6899_v19  ;;  %3022 = vmatpush1.bf16.msra.mxu1 %v6900_v31 }
 0x6fb   :  { %2982 = vmatprep.subr.bf16.mxu0 %v6987_v38  ;;  %3023 = vmatprep.subr.bf16.mxu1 %v6988_v5 }
 0x6fe   :  { %2983 = vmatpush1.bf16.msra.mxu0 %v6989_v4  ;;  %3024 = vmatpush1.bf16.msra.mxu1 %v6990_v62 }
 0x6ff   :  { %2984 = vmatprep.subr.bf16.mxu0 %v6991_v61  ;;  %3025 = vmatprep.subr.bf16.mxu1 %v6992_v59 }
 0x702   :  { %2985 = vmatpush1.bf16.msra.mxu0 %v6993_v14  ;;  %3026 = vmatpush1.bf16.msra.mxu1 %v6994_v21 }
 0x703   :  { %2986 = vmatprep.subr.bf16.mxu0 %v6995_v24  ;;  %3027 = vmatprep.subr.bf16.mxu1 %v6996_v22 }
 0x706   :  { %2987 = vmatpush1.bf16.msra.mxu0 %v6997_v54  ;;  %3028 = vmatpush1.bf16.msra.mxu1 %v6998_v60 }
 0x707   :  { %2988 = vmatprep.subr.bf16.mxu0 %v6999_v7  ;;  %3029 = vmatprep.subr.bf16.mxu1 %v7000_v53 }
 0x70a   :  { %2989 = vmatpush1.bf16.msra.mxu0 %v7001_v12  ;;  %3030 = vmatpush1.bf16.msra.mxu1 %v7002_v50 }
 0x70b   :  { %2990 = vmatprep.subr.bf16.mxu0 %v7003_v23  ;;  %3031 = vmatprep.subr.bf16.mxu1 %v7004_v58 }
 0x70e   :  { %2991 = vmatpush1.bf16.msra.mxu0 %v7005_v1  ;;  %3032 = vmatpush1.bf16.msra.mxu1 %v6920_v57 }
 0x70f   :  { %2992 = vmatprep.subr.bf16.mxu0 %v6921_v48  ;;  %3033 = vmatprep.subr.bf16.mxu1 %v7278_v40 }
 0x712   :  { %2993 = vmatpush1.bf16.msra.mxu0 %v7279_v29  ;;  %3034 = vmatpush1.bf16.msra.mxu1 %v7280_v33  ;;  %v7372_v33 = vld [vmem:[#allocation194_spill] sm:$0xff] }
 0x713   :  { %2994 = vmatprep.subr.bf16.mxu0 %v7281_v37  ;;  %3035 = vmatprep.subr.bf16.mxu1 %v7282_v16 }
 0x716   :  { %2995 = vmatpush1.bf16.msra.mxu0 %v7283_v56  ;;  %3036 = vmatpush1.bf16.msra.mxu1 %v7284_v28 }
 0x717   :  { %2996 = vmatprep.subr.bf16.mxu0 %v7285_v63  ;;  %3037 = vmatprep.subr.bf16.mxu1 %v7286_v3  ;;  %v7369_v3 = vld [vmem:[#allocation165_spill] sm:$0xff]  ;;  %v7370_v63 = vld [vmem:[#allocation167_spill] sm:$0xff] }
 0x71a   :  { %2997 = vmatpush1.bf16.msra.mxu0 %v7287_v8  ;;  %3038 = vmatpush1.bf16.msra.mxu1 %v7288_v13  ;;  %v7368_v13 = vld [vmem:[#allocation166_spill] sm:$0xff] }
 0x71b   :  { %2998 = vmatprep.subr.bf16.mxu0 %v7289_v47  ;;  %3039 = vmatprep.subr.bf16.mxu1 %v7290_v20  ;;  %v7300_v47 = vld [vmem:[#allocation147_spill] sm:$0xff]  ;;  %v7301_v20 = vld [vmem:[#allocation20_spill] sm:$0xff] }
 0x71e   :  { %2999 = vmatpush1.bf16.msra.mxu0 %v7291_v39  ;;  %3040 = vmatpush1.bf16.msra.mxu1 %v7292_v35  ;;  %v7302_v39 = vld [vmem:[#allocation21_spill] sm:$0xff]  ;;  %v7367_v35 = vld [vmem:[#allocation163_spill] sm:$0xff] }
 0x71f   :  { %3000 = vmatprep.subr.bf16.mxu0 %v7293_v43  ;;  %3041 = vmatprep.subr.bf16.mxu1 %v7294_v36  ;;  %v7303_v36 = vld [vmem:[#allocation22_spill] sm:$0xff]  ;;  %v7312_v43 = vld [vmem:[#allocation31_spill] sm:$0xff] }
 0x722   :  { %3001 = vmatpush1.bf16.msra.mxu0 %v7295_v44  ;;  %3042 = vmatpush1.bf16.msra.mxu1 %v7296_v52  ;;  %v7304_v44 = vld [vmem:[#allocation23_spill] sm:$0xff]  ;;  %v7305_v52 = vld [vmem:[#allocation24_spill] sm:$0xff] }
 0x723   :  { %3002 = vmatprep.subr.bf16.mxu0 %v7297_v55  ;;  %3043 = vmatprep.subr.bf16.mxu1 %v7298_v30  ;;  %v7306_v55 = vld [vmem:[#allocation25_spill] sm:$0xff]  ;;  %v7307_v30 = vld [vmem:[#allocation26_spill] sm:$0xff] }
 0x726   :  { %3003 = vmatpush1.bf16.msra.mxu0 %v7299_v6  ;;  %3044 = vmatpush1.bf16.msra.mxu1 %v7300_v47  ;;  %v7308_v6 = vld [vmem:[#allocation27_spill] sm:$0xff]  ;;  %v7309_v47 = vld [vmem:[#allocation28_spill] sm:$0xff] }
 0x727   :  { %3108 = vmatprep.subr.bf16.mxu0 %v7301_v20  ;;  %3149 = vmatprep.subr.bf16.mxu1 %v7302_v39  ;;  %v7310_v20 = vld [vmem:[#allocation29_spill] sm:$0xff]  ;;  %v7311_v39 = vld [vmem:[#allocation30_spill] sm:$0xff] }
 0x729   :  { %3005 = vmatmul.mubr.bf16.vlgmr.msra.gmra.mrb[76].mxu0 %v6007_v46  ;;  %3046 = vmatmul.mubr.bf16.vlgmr.msra.gmra.mrb[76].mxu1 %v6007_v46  ;;  %v7313_v46 = vld [vmem:[#allocation32_spill] sm:$0xff] }
 0x72a   :  { %3109 = vmatpush1.bf16.msra.mxu0 %v7303_v36  ;;  %3150 = vmatpush1.bf16.msra.mxu1 %v7304_v44  ;;  %v7314_v36 = vld [vmem:[#allocation33_spill] sm:$0xff]  ;;  %v7315_v44 = vld [vmem:[#allocation34_spill] sm:$0xff] }
 0x72b   :  { %3110 = vmatprep.subr.bf16.mxu0 %v7305_v52  ;;  %3151 = vmatprep.subr.bf16.mxu1 %v7306_v55  ;;  %v7316_v52 = vld [vmem:[#allocation35_spill] sm:$0xff]  ;;  %v7317_v55 = vld [vmem:[#allocation36_spill] sm:$0xff] }
 0x72e   :  { %3111 = vmatpush1.bf16.msra.mxu0 %v7307_v30  ;;  %3152 = vmatpush1.bf16.msra.mxu1 %v7308_v6  ;;  %v7318_v30 = vld [vmem:[#allocation37_spill] sm:$0xff]  ;;  %v7319_v6 = vld [vmem:[#allocation38_spill] sm:$0xff] }
 0x72f   :  { %3112 = vmatprep.subr.bf16.mxu0 %v7309_v47  ;;  %3153 = vmatprep.subr.bf16.mxu1 %v7310_v20  ;;  %v7320_v47 = vld [vmem:[#allocation39_spill] sm:$0xff]  ;;  %v7321_v20 = vld [vmem:[#allocation40_spill] sm:$0xff] }
 0x732   :  { %3113 = vmatpush1.bf16.msra.mxu0 %v7311_v39  ;;  %3154 = vmatpush1.bf16.msra.mxu1 %v7312_v43  ;;  %v7322_v39 = vld [vmem:[#allocation41_spill] sm:$0xff]  ;;  %v7323_v43 = vld [vmem:[#allocation42_spill] sm:$0xff] }
 0x733   :  { %3114 = vmatprep.subr.bf16.mxu0 %v7313_v46  ;;  %3155 = vmatprep.subr.bf16.mxu1 %v7314_v36  ;;  %v7324_v46 = vld [vmem:[#allocation43_spill] sm:$0xff]  ;;  %v7325_v36 = vld [vmem:[#allocation44_spill] sm:$0xff] }
 0x736   :  { %3115 = vmatpush1.bf16.msra.mxu0 %v7315_v44  ;;  %3156 = vmatpush1.bf16.msra.mxu1 %v7316_v52  ;;  %v7326_v44 = vld [vmem:[#allocation45_spill] sm:$0xff]  ;;  %v7327_v52 = vld [vmem:[#allocation46_spill] sm:$0xff] }
 0x737   :  { %3116 = vmatprep.subr.bf16.mxu0 %v7317_v55  ;;  %3157 = vmatprep.subr.bf16.mxu1 %v7318_v30  ;;  %v7328_v55 = vld [vmem:[#allocation47_spill] sm:$0xff]  ;;  %v7329_v30 = vld [vmem:[#allocation48_spill] sm:$0xff] }
 0x73a   :  { %3117 = vmatpush1.bf16.msra.mxu0 %v7319_v6  ;;  %3158 = vmatpush1.bf16.msra.mxu1 %v7320_v47  ;;  %v7330_v6 = vld [vmem:[#allocation49_spill] sm:$0xff]  ;;  %v7331_v47 = vld [vmem:[#allocation50_spill] sm:$0xff] }
 0x73b   :  { %3118 = vmatprep.subr.bf16.mxu0 %v7321_v20  ;;  %3159 = vmatprep.subr.bf16.mxu1 %v7322_v39  ;;  %v7332_v20 = vld [vmem:[#allocation51_spill] sm:$0xff]  ;;  %v7333_v39 = vld [vmem:[#allocation52_spill] sm:$0xff] }
 0x73e   :  { %3119 = vmatpush1.bf16.msra.mxu0 %v7323_v43  ;;  %3160 = vmatpush1.bf16.msra.mxu1 %v7324_v46  ;;  %v7334_v43 = vld [vmem:[#allocation53_spill] sm:$0xff]  ;;  %v7335_v46 = vld [vmem:[#allocation54_spill] sm:$0xff] }
 0x73f   :  { %3120 = vmatprep.subr.bf16.mxu0 %v7325_v36  ;;  %3161 = vmatprep.subr.bf16.mxu1 %v7326_v44  ;;  %v7336_v36 = vld [vmem:[#allocation55_spill] sm:$0xff]  ;;  %v7337_v44 = vld [vmem:[#allocation56_spill] sm:$0xff] }
 0x742   :  { %3121 = vmatpush1.bf16.msra.mxu0 %v7327_v52  ;;  %3162 = vmatpush1.bf16.msra.mxu1 %v7328_v55  ;;  %v7338_v52 = vld [vmem:[#allocation57_spill] sm:$0xff]  ;;  %v7339_v55 = vld [vmem:[#allocation58_spill] sm:$0xff] }
 0x743   :  { %3122 = vmatprep.subr.bf16.mxu0 %v7329_v30  ;;  %3163 = vmatprep.subr.bf16.mxu1 %v7330_v6  ;;  %v7340_v30 = vld [vmem:[#allocation59_spill] sm:$0xff]  ;;  %v7341_v6 = vld [vmem:[#allocation60_spill] sm:$0xff] }
 0x746   :  { %3123 = vmatpush1.bf16.msra.mxu0 %v7331_v47  ;;  %3164 = vmatpush1.bf16.msra.mxu1 %v7332_v20  ;;  %v7342_v47 = vld [vmem:[#allocation61_spill] sm:$0xff]  ;;  %v7343_v20 = vld [vmem:[#allocation62_spill] sm:$0xff] }
 0x747   :  { %3124 = vmatprep.subr.bf16.mxu0 %v7333_v39  ;;  %3165 = vmatprep.subr.bf16.mxu1 %v7334_v43  ;;  %v7344_v39 = vld [vmem:[#allocation63_spill] sm:$0xff]  ;;  %v7345_v43 = vld [vmem:[#allocation64_spill] sm:$0xff] }
 0x74a   :  { %3125 = vmatpush1.bf16.msra.mxu0 %v7335_v46  ;;  %3166 = vmatpush1.bf16.msra.mxu1 %v7336_v36  ;;  %v7346_v46 = vld [vmem:[#allocation65_spill] sm:$0xff]  ;;  %v7347_v36 = vld [vmem:[#allocation66_spill] sm:$0xff] }
 0x74b   :  { %3126 = vmatprep.subr.bf16.mxu0 %v7337_v44  ;;  %3167 = vmatprep.subr.bf16.mxu1 %v7338_v52  ;;  %v7348_v44 = vld [vmem:[#allocation67_spill] sm:$0xff]  ;;  %v7349_v52 = vld [vmem:[#allocation68_spill] sm:$0xff] }
 0x74e   :  { %3127 = vmatpush1.bf16.msra.mxu0 %v7339_v55  ;;  %3168 = vmatpush1.bf16.msra.mxu1 %v7340_v30  ;;  %v7350_v55 = vld [vmem:[#allocation69_spill] sm:$0xff]  ;;  %v7351_v30 = vld [vmem:[#allocation70_spill] sm:$0xff] }
 0x74f   :  { %3128 = vmatprep.subr.bf16.mxu0 %v7341_v6  ;;  %3169 = vmatprep.subr.bf16.mxu1 %v7342_v47  ;;  %v7352_v6 = vld [vmem:[#allocation71_spill] sm:$0xff]  ;;  %v7353_v47 = vld [vmem:[#allocation72_spill] sm:$0xff] }
 0x752   :  { %3129 = vmatpush1.bf16.msra.mxu0 %v7343_v20  ;;  %3170 = vmatpush1.bf16.msra.mxu1 %v7344_v39  ;;  %v7354_v20 = vld [vmem:[#allocation73_spill] sm:$0xff]  ;;  %v7355_v39 = vld [vmem:[#allocation74_spill] sm:$0xff] }
 0x753   :  { %3130 = vmatprep.subr.bf16.mxu0 %v7345_v43  ;;  %3171 = vmatprep.subr.bf16.mxu1 %v7346_v46  ;;  %v7356_v43 = vld [vmem:[#allocation75_spill] sm:$0xff]  ;;  %v7357_v46 = vld [vmem:[#allocation76_spill] sm:$0xff] }
 0x756   :  { %3131 = vmatpush1.bf16.msra.mxu0 %v7347_v36  ;;  %3172 = vmatpush1.bf16.msra.mxu1 %v7348_v44  ;;  %v7358_v36 = vld [vmem:[#allocation77_spill] sm:$0xff]  ;;  %v7359_v44 = vld [vmem:[#allocation78_spill] sm:$0xff] }
 0x757   :  { %3132 = vmatprep.subr.bf16.mxu0 %v7349_v52  ;;  %3173 = vmatprep.subr.bf16.mxu1 %v7350_v55  ;;  %v7360_v52 = vld [vmem:[#allocation79_spill] sm:$0xff]  ;;  %v7361_v55 = vld [vmem:[#allocation80_spill] sm:$0xff] }
 0x75a   :  { %3133 = vmatpush1.bf16.msra.mxu0 %v7351_v30  ;;  %3174 = vmatpush1.bf16.msra.mxu1 %v7352_v6  ;;  %v7362_v30 = vld [vmem:[#allocation81_spill] sm:$0xff]  ;;  %v7363_v6 = vld [vmem:[#allocation82_spill] sm:$0xff] }
 0x75b   :  { %3134 = vmatprep.subr.bf16.mxu0 %v7353_v47  ;;  %3175 = vmatprep.subr.bf16.mxu1 %v7354_v20  ;;  %v7364_v47 = vld [vmem:[#allocation83_spill] sm:$0xff]  ;;  %v7365_v20 = vld [vmem:[#allocation84_spill] sm:$0xff] }
 0x75e   :  { %3135 = vmatpush1.bf16.msra.mxu0 %v7355_v39  ;;  %3176 = vmatpush1.bf16.msra.mxu1 %v7356_v43  ;;  %v7366_v39 = vld [vmem:[#allocation85_spill] sm:$0xff] }
 0x75f   :  { %3136 = vmatprep.subr.bf16.mxu0 %v7357_v46  ;;  %3177 = vmatprep.subr.bf16.mxu1 %v7358_v36 }
 0x762   :  { %3137 = vmatpush1.bf16.msra.mxu0 %v7359_v44  ;;  %3178 = vmatpush1.bf16.msra.mxu1 %v7360_v52 }
 0x763   :  { %3138 = vmatprep.subr.bf16.mxu0 %v7361_v55  ;;  %3179 = vmatprep.subr.bf16.mxu1 %v7362_v30 }
 0x766   :  { %3139 = vmatpush1.bf16.msra.mxu0 %v7363_v6  ;;  %3180 = vmatpush1.bf16.msra.mxu1 %v7364_v47 }
 0x767   :  { %3190 = vmatprep.subr.bf16.mxu0 %v7365_v20  ;;  %3231 = vmatprep.subr.bf16.mxu1 %v7366_v39 }
 0x7bc   :  { %v2924_v43 = vpop.f32.mrb[72].mxu0  ;;  %v2965_v46 = vpop.f32.mrb[72].mxu1 }
 0x7bd   :  { %v3054_v36 = vadd.f32 %v2924_v43, %v7367_v35  ;;  %v3056_v44 = vadd.f32 %v2965_v46, %v7368_v13  ;;  %v2926_v8 = vpop.f32.mrb[73].mxu0  ;;  %v2967_v52 = vpop.f32.mrb[73].mxu1  ;;  %v7371_v43 = vld [vmem:[#allocation191_spill] sm:$0xff] }
 0x7be   :  { %v3055_v55 = vadd.f32 %v2926_v8, %v7369_v3  ;;  %v3057_v30 = vadd.f32 %v2967_v52, %v7370_v63  ;;  %v2928_v28 = vpop.f32.mrb[74].mxu0  ;;  %v2969_v6 = vpop.f32.mrb[74].mxu1 }
 0x7bf   :  { %v2929_v56 = vpop.f32.mrb[75].mxu0  ;;  %v2970_v47 = vpop.f32.mrb[75].mxu1  ;;  %v3070_v16 = vmul.f32 0.5, %v3056_v44  ;;  %v3062_v37 = vmul.f32 0.5, %v3054_v36  ;;  %v7373_v28 = vld [vmem:[#allocation193_spill] sm:$0xff] }
 0x7c0   :  { %v3071_v20 = vmul.f32 0.5, %v3057_v30  ;;  %v3063_v39 = vmul.f32 0.5, %v3055_v55  ;;  %v7374_v56 = vld [vmem:[#allocation195_spill] sm:$0xff] }
 0x7c1   :  { %4154 = vtanh.f32 %v3070_v16 }
 0x7c2   :  { %4156 = vtanh.f32 %v3071_v20 }
 0x7c3   :  { %4158 = vtanh.f32 %v3062_v37 }
 0x7c4   :  { %4160 = vtanh.f32 %v3063_v39 }
 0x7cb   :  { %v4155_v36 = vpop.eup %4154 }
 0x7cc   :  { %v4157_v37 = vpop.eup %4156  ;;  %v3074_v6 = vadd.f32 1.0, %v4155_v36 }
 0x7cd   :  { %v4159_v39 = vpop.eup %4158 }
 0x7ce   :  { %v4161_v55 = vpop.eup %4160  ;;  %v3076_v40 = vmul.f32 0.5, %v3074_v6 }
 0x7cf   :  { %v3067_v29 = vadd.f32 1.0, %v4161_v55 }
 0x7fc   :  { %v3006_v35 = vpop.f32.mrb[76].mxu0  ;;  %v3047_v13 = vpop.f32.mrb[76].mxu1 }
 0x7fd   :  { %v3058_v46 = vadd.f32 %v3006_v35, %v7371_v43  ;;  %v3060_v3 = vadd.f32 %v3047_v13, %v7372_v33  ;;  %v3008_v8 = vpop.f32.mrb[77].mxu0  ;;  %v3049_v63 = vpop.f32.mrb[77].mxu1  ;;  %v3075_v43 = vadd.f32 1.0, %v4157_v37  ;;  %v3066_v13 = vadd.f32 1.0, %v4159_v39 }
 0x7fe   :  { %v3059_v52 = vadd.f32 %v3008_v8, %v7373_v28  ;;  %v3061_v47 = vadd.f32 %v3049_v63, %v7374_v56  ;;  %v3010_v44 = vpop.f32.mrb[78].mxu0  ;;  %v3051_v30 = vpop.f32.mrb[78].mxu1  ;;  %v3069_v56 = vmul.f32 0.5, %v3067_v29 }
 0x7ff   :  { %4162 = vtanh.f32 %v3058_v46  ;;  %v3011_v16 = vpop.f32.mrb[79].mxu0  ;;  %v3052_v20 = vpop.f32.mrb[79].mxu1  ;;  %v3080_v35 = vmul.f32 0.5, %v3060_v3  ;;  %v3077_v8 = vmul.f32 0.5, %v3075_v43  ;;  %v3068_v63 = vmul.f32 0.5, %v3066_v13  ;;  %v7376_v13 = vld [vmem:[#allocation126_spill] sm:$0xff] }
 0x800   :  { %4164 = vtanh.f32 %v3059_v52  ;;  %v3081_v33 = vmul.f32 0.5, %v3061_v47  ;;  %v3088_v44 = vmul.f32 %v3076_v40, %v6001_v15 }
 0x801   :  { %4166 = vtanh.f32 %v3080_v35  ;;  %v3089_v52 = vmul.f32 %v3077_v8, %v6003_v17  ;;  %v7377_v8 = vld [vmem:[#allocation127_spill] sm:$0xff] }
 0x802   :  { %4168 = vtanh.f32 %v3081_v33  ;;  %v7375_v33 = vld [vmem:[#allocation125_spill] sm:$0xff] }
 0x809   :  { %v4163_v28 = vpop.eup %4162 }
 0x80a   :  { %v4165_v46 = vpop.eup %4164  ;;  %v3090_v30 = vmul.f32 %v4163_v28, %v3068_v63  ;;  %v7378_v63 = vld [vmem:[#allocation128_spill] sm:$0xff]  ;;  %v7379_v28 = vld [vmem:[#allocation129_spill] sm:$0xff] }
 0x80b   :  { %v3091_v16 = vmul.f32 %v4165_v46, %v3069_v56  ;;  %v4167_v47 = vpop.eup %4166  ;;  %v7380_v56 = vld [vmem:[#allocation130_spill] sm:$0xff]  ;;  %v7381_v46 = vld [vmem:[#allocation131_spill] sm:$0xff] }
 0x80c   :  { %v6151_v36 = vadd.f32 %v3090_v30, %v3088_v44  ;;  %v4169_v20 = vpop.eup %4168  ;;  %v3084_v37 = vadd.f32 1.0, %v4167_v47  ;;  %v7382_v44 = vld [vmem:[#allocation132_spill] sm:$0xff]  ;;  %v7383_v30 = vld [vmem:[#allocation133_spill] sm:$0xff] }
 0x80d   :  { %v6153_v3 = vadd.f32 %v3091_v16, %v3089_v52  ;;  %v3085_v39 = vadd.f32 1.0, %v4169_v20  ;;  %v7384_v52 = vld [vmem:[#allocation134_spill] sm:$0xff]  ;;  %v7385_v16 = vld [vmem:[#allocation135_spill] sm:$0xff]  ;;  %v7386_v47 = vld [vmem:[#allocation136_spill] sm:$0xff] }
 0x80e   :  { %4170 = vtanh.f32 %v6151_v36  ;;  %v3086_v29 = vmul.f32 0.5, %v3084_v37  ;;  %v7387_v20 = vld [vmem:[#allocation137_spill] sm:$0xff]  ;;  %v7388_v37 = vld [vmem:[#allocation138_spill] sm:$0xff] }
 0x80f   :  { %4172 = vtanh.f32 %v6153_v3  ;;  %v3087_v6 = vmul.f32 0.5, %v3085_v39  ;;  %v7389_v39 = vld [vmem:[#allocation139_spill] sm:$0xff] }
 0x818   :  { %v4171_v55 = vpop.eup %4170 }
 0x819   :  { %v4173_v15 = vpop.eup %4172  ;;  %v3096_v40 = vmul.f32 %v4171_v55, %v3086_v29  ;;  %v7390_v29 = vld [vmem:[#allocation140_spill] sm:$0xff]  ;;  %v7391_v55 = vld [vmem:[#allocation141_spill] sm:$0xff] }
 0x81a   :  { %v3097_v35 = vmul.f32 %v4173_v15, %v3087_v6  ;;  %v7392_v6 = vld [vmem:[#allocation142_spill] sm:$0xff]  ;;  %v7393_v15 = vld [vmem:[#allocation143_spill] sm:$0xff] }
 0x81b   :  { %v6157_v43 = vpack.c.bf16 %v3096_v40, %v3096_v40  ;;  %v7394_v40 = vld [vmem:[#allocation144_spill] sm:$0xff] }
 0x81c   :  { %v3107_v17 = vpack.c.bf16 %v3097_v35, %v3097_v35  ;;  %v7395_v35 = vld [vmem:[#allocation145_spill] sm:$0xff] }
 0x81e   :  { %3140 = vmatprep.mubr.bf16.mxu0 %v3107_v17  ;;  %3181 = vmatprep.mubr.bf16.mxu1 %v3107_v17 }
 0x81f   :  { %3141 = vmatmul.mubr.bf16.vlgmr.msra.gmra.mrb[80].mxu0 %v6157_v43  ;;  %3182 = vmatmul.mubr.bf16.vlgmr.msra.gmra.mrb[80].mxu1 %v6157_v43 }
 0x820   :  { %3191 = vmatpush1.bf16.msra.mxu0 %v6883_v49  ;;  %3232 = vmatpush1.bf16.msra.mxu1 %v6884_v25 }
 0x821   :  { %3222 = vmatprep.mubr.bf16.mxu0 %v3107_v17  ;;  %3263 = vmatprep.mubr.bf16.mxu1 %v3107_v17  ;;  %v7396_v17 = vld [vmem:[#allocation146_spill] sm:$0xff] }
 0x822   :  { %3192 = vmatprep.subr.bf16.mxu0 %v6885_v18  ;;  %3233 = vmatprep.subr.bf16.mxu1 %v6886_v42 }
 0x824   :  { %3193 = vmatpush1.bf16.msra.mxu0 %v6887_v11  ;;  %3234 = vmatpush1.bf16.msra.mxu1 %v6888_v51 }
 0x825   :  { %3194 = vmatprep.subr.bf16.mxu0 %v6889_v41  ;;  %3235 = vmatprep.subr.bf16.mxu1 %v6890_v34 }
 0x828   :  { %3195 = vmatpush1.bf16.msra.mxu0 %v6891_v2  ;;  %3236 = vmatpush1.bf16.msra.mxu1 %v6892_v45 }
 0x829   :  { %3196 = vmatprep.subr.bf16.mxu0 %v6893_v26  ;;  %3237 = vmatprep.subr.bf16.mxu1 %v6894_v27 }
 0x82c   :  { %3197 = vmatpush1.bf16.msra.mxu0 %v6895_v0  ;;  %3238 = vmatpush1.bf16.msra.mxu1 %v6896_v32 }
 0x82d   :  { %3198 = vmatprep.subr.bf16.mxu0 %v6897_v9  ;;  %3239 = vmatprep.subr.bf16.mxu1 %v6898_v10 }
 0x830   :  { %3199 = vmatpush1.bf16.msra.mxu0 %v6899_v19  ;;  %3240 = vmatpush1.bf16.msra.mxu1 %v6900_v31 }
 0x831   :  { %3200 = vmatprep.subr.bf16.mxu0 %v6987_v38  ;;  %3241 = vmatprep.subr.bf16.mxu1 %v6988_v5 }
 0x834   :  { %3201 = vmatpush1.bf16.msra.mxu0 %v6989_v4  ;;  %3242 = vmatpush1.bf16.msra.mxu1 %v6990_v62 }
 0x835   :  { %3202 = vmatprep.subr.bf16.mxu0 %v6991_v61  ;;  %3243 = vmatprep.subr.bf16.mxu1 %v6992_v59 }
 0x838   :  { %3203 = vmatpush1.bf16.msra.mxu0 %v6993_v14  ;;  %3244 = vmatpush1.bf16.msra.mxu1 %v6994_v21 }
 0x839   :  { %3204 = vmatprep.subr.bf16.mxu0 %v6995_v24  ;;  %3245 = vmatprep.subr.bf16.mxu1 %v6996_v22 }
 0x83c   :  { %3205 = vmatpush1.bf16.msra.mxu0 %v6997_v54  ;;  %3246 = vmatpush1.bf16.msra.mxu1 %v6998_v60 }
 0x83d   :  { %3206 = vmatprep.subr.bf16.mxu0 %v6999_v7  ;;  %3247 = vmatprep.subr.bf16.mxu1 %v7000_v53 }
 0x840   :  { %3207 = vmatpush1.bf16.msra.mxu0 %v7001_v12  ;;  %3248 = vmatpush1.bf16.msra.mxu1 %v7002_v50 }
 0x841   :  { %3208 = vmatprep.subr.bf16.mxu0 %v7003_v23  ;;  %3249 = vmatprep.subr.bf16.mxu1 %v7004_v58 }
 0x844   :  { %3209 = vmatpush1.bf16.msra.mxu0 %v7005_v1  ;;  %3250 = vmatpush1.bf16.msra.mxu1 %v6920_v57 }
 0x845   :  { %3210 = vmatprep.subr.bf16.mxu0 %v6921_v48  ;;  %3251 = vmatprep.subr.bf16.mxu1 %v7375_v33 }
 0x848   :  { %3211 = vmatpush1.bf16.msra.mxu0 %v7376_v13  ;;  %3252 = vmatpush1.bf16.msra.mxu1 %v7377_v8  ;;  %v7469_v8 = vld [vmem:[#allocation198_spill] sm:$0xff] }
 0x849   :  { %3212 = vmatprep.subr.bf16.mxu0 %v7378_v63  ;;  %3253 = vmatprep.subr.bf16.mxu1 %v7379_v28 }
 0x84c   :  { %3213 = vmatpush1.bf16.msra.mxu0 %v7380_v56  ;;  %3254 = vmatpush1.bf16.msra.mxu1 %v7381_v46 }
 0x84d   :  { %3214 = vmatprep.subr.bf16.mxu0 %v7382_v44  ;;  %3255 = vmatprep.subr.bf16.mxu1 %v7383_v30  ;;  %v7466_v30 = vld [vmem:[#allocation169_spill] sm:$0xff]  ;;  %v7467_v44 = vld [vmem:[#allocation172_spill] sm:$0xff] }
 0x850   :  { %3215 = vmatpush1.bf16.msra.mxu0 %v7384_v52  ;;  %3256 = vmatpush1.bf16.msra.mxu1 %v7385_v16  ;;  %v7465_v16 = vld [vmem:[#allocation170_spill] sm:$0xff] }
 0x851   :  { %3216 = vmatprep.subr.bf16.mxu0 %v7386_v47  ;;  %3257 = vmatprep.subr.bf16.mxu1 %v7387_v20  ;;  %v7397_v47 = vld [vmem:[#allocation147_spill] sm:$0xff]  ;;  %v7398_v20 = vld [vmem:[#allocation20_spill] sm:$0xff] }
 0x854   :  { %3217 = vmatpush1.bf16.msra.mxu0 %v7388_v37  ;;  %3258 = vmatpush1.bf16.msra.mxu1 %v7389_v39  ;;  %v7399_v37 = vld [vmem:[#allocation21_spill] sm:$0xff]  ;;  %v7464_v39 = vld [vmem:[#allocation168_spill] sm:$0xff] }
 0x855   :  { %3218 = vmatprep.subr.bf16.mxu0 %v7390_v29  ;;  %3259 = vmatprep.subr.bf16.mxu1 %v7391_v55  ;;  %v7400_v55 = vld [vmem:[#allocation22_spill] sm:$0xff]  ;;  %v7409_v29 = vld [vmem:[#allocation31_spill] sm:$0xff] }
 0x858   :  { %3219 = vmatpush1.bf16.msra.mxu0 %v7392_v6  ;;  %3260 = vmatpush1.bf16.msra.mxu1 %v7393_v15  ;;  %v7401_v6 = vld [vmem:[#allocation23_spill] sm:$0xff]  ;;  %v7402_v15 = vld [vmem:[#allocation24_spill] sm:$0xff] }
 0x859   :  { %3220 = vmatprep.subr.bf16.mxu0 %v7394_v40  ;;  %3261 = vmatprep.subr.bf16.mxu1 %v7395_v35  ;;  %v7403_v40 = vld [vmem:[#allocation25_spill] sm:$0xff]  ;;  %v7404_v35 = vld [vmem:[#allocation26_spill] sm:$0xff] }
 0x85c   :  { %3221 = vmatpush1.bf16.msra.mxu0 %v7396_v17  ;;  %3262 = vmatpush1.bf16.msra.mxu1 %v7397_v47  ;;  %v7405_v17 = vld [vmem:[#allocation27_spill] sm:$0xff]  ;;  %v7406_v47 = vld [vmem:[#allocation28_spill] sm:$0xff] }
 0x85d   :  { %3326 = vmatprep.subr.bf16.mxu0 %v7398_v20  ;;  %3367 = vmatprep.subr.bf16.mxu1 %v7399_v37  ;;  %v7407_v20 = vld [vmem:[#allocation29_spill] sm:$0xff]  ;;  %v7408_v37 = vld [vmem:[#allocation30_spill] sm:$0xff] }
 0x85f   :  { %3223 = vmatmul.mubr.bf16.vlgmr.msra.gmra.mrb[84].mxu0 %v6157_v43  ;;  %3264 = vmatmul.mubr.bf16.vlgmr.msra.gmra.mrb[84].mxu1 %v6157_v43  ;;  %v7410_v43 = vld [vmem:[#allocation32_spill] sm:$0xff] }
 0x860   :  { %3327 = vmatpush1.bf16.msra.mxu0 %v7400_v55  ;;  %3368 = vmatpush1.bf16.msra.mxu1 %v7401_v6  ;;  %v7411_v55 = vld [vmem:[#allocation33_spill] sm:$0xff]  ;;  %v7412_v6 = vld [vmem:[#allocation34_spill] sm:$0xff] }
 0x861   :  { %3328 = vmatprep.subr.bf16.mxu0 %v7402_v15  ;;  %3369 = vmatprep.subr.bf16.mxu1 %v7403_v40  ;;  %v7413_v15 = vld [vmem:[#allocation35_spill] sm:$0xff]  ;;  %v7414_v40 = vld [vmem:[#allocation36_spill] sm:$0xff] }
 0x864   :  { %3329 = vmatpush1.bf16.msra.mxu0 %v7404_v35  ;;  %3370 = vmatpush1.bf16.msra.mxu1 %v7405_v17  ;;  %v7415_v35 = vld [vmem:[#allocation37_spill] sm:$0xff]  ;;  %v7416_v17 = vld [vmem:[#allocation38_spill] sm:$0xff] }
 0x865   :  { %3330 = vmatprep.subr.bf16.mxu0 %v7406_v47  ;;  %3371 = vmatprep.subr.bf16.mxu1 %v7407_v20  ;;  %v7417_v47 = vld [vmem:[#allocation39_spill] sm:$0xff]  ;;  %v7418_v20 = vld [vmem:[#allocation40_spill] sm:$0xff] }
 0x868   :  { %3331 = vmatpush1.bf16.msra.mxu0 %v7408_v37  ;;  %3372 = vmatpush1.bf16.msra.mxu1 %v7409_v29  ;;  %v7419_v37 = vld [vmem:[#allocation41_spill] sm:$0xff]  ;;  %v7420_v29 = vld [vmem:[#allocation42_spill] sm:$0xff] }
 0x869   :  { %3332 = vmatprep.subr.bf16.mxu0 %v7410_v43  ;;  %3373 = vmatprep.subr.bf16.mxu1 %v7411_v55  ;;  %v7421_v43 = vld [vmem:[#allocation43_spill] sm:$0xff]  ;;  %v7422_v55 = vld [vmem:[#allocation44_spill] sm:$0xff] }
 0x86c   :  { %3333 = vmatpush1.bf16.msra.mxu0 %v7412_v6  ;;  %3374 = vmatpush1.bf16.msra.mxu1 %v7413_v15  ;;  %v7423_v6 = vld [vmem:[#allocation45_spill] sm:$0xff]  ;;  %v7424_v15 = vld [vmem:[#allocation46_spill] sm:$0xff] }
 0x86d   :  { %3334 = vmatprep.subr.bf16.mxu0 %v7414_v40  ;;  %3375 = vmatprep.subr.bf16.mxu1 %v7415_v35  ;;  %v7425_v40 = vld [vmem:[#allocation47_spill] sm:$0xff]  ;;  %v7426_v35 = vld [vmem:[#allocation48_spill] sm:$0xff] }
 0x870   :  { %3335 = vmatpush1.bf16.msra.mxu0 %v7416_v17  ;;  %3376 = vmatpush1.bf16.msra.mxu1 %v7417_v47  ;;  %v7427_v17 = vld [vmem:[#allocation49_spill] sm:$0xff]  ;;  %v7428_v47 = vld [vmem:[#allocation50_spill] sm:$0xff] }
 0x871   :  { %3336 = vmatprep.subr.bf16.mxu0 %v7418_v20  ;;  %3377 = vmatprep.subr.bf16.mxu1 %v7419_v37  ;;  %v7429_v20 = vld [vmem:[#allocation51_spill] sm:$0xff]  ;;  %v7430_v37 = vld [vmem:[#allocation52_spill] sm:$0xff] }
 0x874   :  { %3337 = vmatpush1.bf16.msra.mxu0 %v7420_v29  ;;  %3378 = vmatpush1.bf16.msra.mxu1 %v7421_v43  ;;  %v7431_v29 = vld [vmem:[#allocation53_spill] sm:$0xff]  ;;  %v7432_v43 = vld [vmem:[#allocation54_spill] sm:$0xff] }
 0x875   :  { %3338 = vmatprep.subr.bf16.mxu0 %v7422_v55  ;;  %3379 = vmatprep.subr.bf16.mxu1 %v7423_v6  ;;  %v7433_v55 = vld [vmem:[#allocation55_spill] sm:$0xff]  ;;  %v7434_v6 = vld [vmem:[#allocation56_spill] sm:$0xff] }
 0x878   :  { %3339 = vmatpush1.bf16.msra.mxu0 %v7424_v15  ;;  %3380 = vmatpush1.bf16.msra.mxu1 %v7425_v40  ;;  %v7435_v15 = vld [vmem:[#allocation57_spill] sm:$0xff]  ;;  %v7436_v40 = vld [vmem:[#allocation58_spill] sm:$0xff] }
 0x879   :  { %3340 = vmatprep.subr.bf16.mxu0 %v7426_v35  ;;  %3381 = vmatprep.subr.bf16.mxu1 %v7427_v17  ;;  %v7437_v35 = vld [vmem:[#allocation59_spill] sm:$0xff]  ;;  %v7438_v17 = vld [vmem:[#allocation60_spill] sm:$0xff] }
 0x87c   :  { %3341 = vmatpush1.bf16.msra.mxu0 %v7428_v47  ;;  %3382 = vmatpush1.bf16.msra.mxu1 %v7429_v20  ;;  %v7439_v47 = vld [vmem:[#allocation61_spill] sm:$0xff]  ;;  %v7440_v20 = vld [vmem:[#allocation62_spill] sm:$0xff] }
 0x87d   :  { %3342 = vmatprep.subr.bf16.mxu0 %v7430_v37  ;;  %3383 = vmatprep.subr.bf16.mxu1 %v7431_v29  ;;  %v7441_v37 = vld [vmem:[#allocation63_spill] sm:$0xff]  ;;  %v7442_v29 = vld [vmem:[#allocation64_spill] sm:$0xff] }
 0x880   :  { %3343 = vmatpush1.bf16.msra.mxu0 %v7432_v43  ;;  %3384 = vmatpush1.bf16.msra.mxu1 %v7433_v55  ;;  %v7443_v43 = vld [vmem:[#allocation65_spill] sm:$0xff]  ;;  %v7444_v55 = vld [vmem:[#allocation66_spill] sm:$0xff] }
 0x881   :  { %3344 = vmatprep.subr.bf16.mxu0 %v7434_v6  ;;  %3385 = vmatprep.subr.bf16.mxu1 %v7435_v15  ;;  %v7445_v6 = vld [vmem:[#allocation67_spill] sm:$0xff]  ;;  %v7446_v15 = vld [vmem:[#allocation68_spill] sm:$0xff] }
 0x884   :  { %3345 = vmatpush1.bf16.msra.mxu0 %v7436_v40  ;;  %3386 = vmatpush1.bf16.msra.mxu1 %v7437_v35  ;;  %v7447_v40 = vld [vmem:[#allocation69_spill] sm:$0xff]  ;;  %v7448_v35 = vld [vmem:[#allocation70_spill] sm:$0xff] }
 0x885   :  { %3346 = vmatprep.subr.bf16.mxu0 %v7438_v17  ;;  %3387 = vmatprep.subr.bf16.mxu1 %v7439_v47  ;;  %v7449_v17 = vld [vmem:[#allocation71_spill] sm:$0xff]  ;;  %v7450_v47 = vld [vmem:[#allocation72_spill] sm:$0xff] }
 0x888   :  { %3347 = vmatpush1.bf16.msra.mxu0 %v7440_v20  ;;  %3388 = vmatpush1.bf16.msra.mxu1 %v7441_v37  ;;  %v7451_v20 = vld [vmem:[#allocation73_spill] sm:$0xff]  ;;  %v7452_v37 = vld [vmem:[#allocation74_spill] sm:$0xff] }
 0x889   :  { %3348 = vmatprep.subr.bf16.mxu0 %v7442_v29  ;;  %3389 = vmatprep.subr.bf16.mxu1 %v7443_v43  ;;  %v7453_v29 = vld [vmem:[#allocation75_spill] sm:$0xff]  ;;  %v7454_v43 = vld [vmem:[#allocation76_spill] sm:$0xff] }
 0x88c   :  { %3349 = vmatpush1.bf16.msra.mxu0 %v7444_v55  ;;  %3390 = vmatpush1.bf16.msra.mxu1 %v7445_v6  ;;  %v7455_v55 = vld [vmem:[#allocation77_spill] sm:$0xff]  ;;  %v7456_v6 = vld [vmem:[#allocation78_spill] sm:$0xff] }
 0x88d   :  { %3350 = vmatprep.subr.bf16.mxu0 %v7446_v15  ;;  %3391 = vmatprep.subr.bf16.mxu1 %v7447_v40  ;;  %v7457_v15 = vld [vmem:[#allocation79_spill] sm:$0xff]  ;;  %v7458_v40 = vld [vmem:[#allocation80_spill] sm:$0xff] }
 0x890   :  { %3351 = vmatpush1.bf16.msra.mxu0 %v7448_v35  ;;  %3392 = vmatpush1.bf16.msra.mxu1 %v7449_v17  ;;  %v7459_v35 = vld [vmem:[#allocation81_spill] sm:$0xff]  ;;  %v7460_v17 = vld [vmem:[#allocation82_spill] sm:$0xff] }
 0x891   :  { %3352 = vmatprep.subr.bf16.mxu0 %v7450_v47  ;;  %3393 = vmatprep.subr.bf16.mxu1 %v7451_v20  ;;  %v7461_v47 = vld [vmem:[#allocation83_spill] sm:$0xff]  ;;  %v7462_v20 = vld [vmem:[#allocation84_spill] sm:$0xff] }
 0x894   :  { %3353 = vmatpush1.bf16.msra.mxu0 %v7452_v37  ;;  %3394 = vmatpush1.bf16.msra.mxu1 %v7453_v29  ;;  %v7463_v37 = vld [vmem:[#allocation85_spill] sm:$0xff] }
 0x895   :  { %3354 = vmatprep.subr.bf16.mxu0 %v7454_v43  ;;  %3395 = vmatprep.subr.bf16.mxu1 %v7455_v55 }
 0x898   :  { %3355 = vmatpush1.bf16.msra.mxu0 %v7456_v6  ;;  %3396 = vmatpush1.bf16.msra.mxu1 %v7457_v15 }
 0x899   :  { %3356 = vmatprep.subr.bf16.mxu0 %v7458_v40  ;;  %3397 = vmatprep.subr.bf16.mxu1 %v7459_v35 }
 0x89c   :  { %3357 = vmatpush1.bf16.msra.mxu0 %v7460_v17  ;;  %3398 = vmatpush1.bf16.msra.mxu1 %v7461_v47 }
 0x89d   :  { %3408 = vmatprep.subr.bf16.mxu0 %v7462_v20  ;;  %3449 = vmatprep.subr.bf16.mxu1 %v7463_v37 }
 0x8f2   :  { %v3142_v29 = vpop.f32.mrb[80].mxu0  ;;  %v3183_v43 = vpop.f32.mrb[80].mxu1 }
 0x8f3   :  { %v3272_v55 = vadd.f32 %v3142_v29, %v7464_v39  ;;  %v3274_v6 = vadd.f32 %v3183_v43, %v7465_v16  ;;  %v3144_v52 = vpop.f32.mrb[81].mxu0  ;;  %v3185_v15 = vpop.f32.mrb[81].mxu1  ;;  %v7468_v29 = vld [vmem:[#allocation196_spill] sm:$0xff] }
 0x8f4   :  { %v3273_v40 = vadd.f32 %v3144_v52, %v7466_v30  ;;  %v3275_v35 = vadd.f32 %v3185_v15, %v7467_v44  ;;  %v3146_v46 = vpop.f32.mrb[82].mxu0  ;;  %v3187_v17 = vpop.f32.mrb[82].mxu1 }
 0x8f5   :  { %v3147_v56 = vpop.f32.mrb[83].mxu0  ;;  %v3188_v47 = vpop.f32.mrb[83].mxu1  ;;  %v3288_v28 = vmul.f32 0.5, %v3274_v6  ;;  %v3280_v63 = vmul.f32 0.5, %v3272_v55  ;;  %v7470_v46 = vld [vmem:[#allocation197_spill] sm:$0xff] }
 0x8f6   :  { %v3289_v20 = vmul.f32 0.5, %v3275_v35  ;;  %v3281_v37 = vmul.f32 0.5, %v3273_v40  ;;  %v7471_v56 = vld [vmem:[#allocation200_spill] sm:$0xff] }
 0x8f7   :  { %4174 = vtanh.f32 %v3288_v28 }
 0x8f8   :  { %4176 = vtanh.f32 %v3289_v20 }
 0x8f9   :  { %4178 = vtanh.f32 %v3280_v63 }
 0x8fa   :  { %4180 = vtanh.f32 %v3281_v37 }
 0x901   :  { %v4175_v55 = vpop.eup %4174 }
 0x902   :  { %v4177_v63 = vpop.eup %4176  ;;  %v3292_v37 = vadd.f32 1.0, %v4175_v55 }
 0x903   :  { %v4179_v47 = vpop.eup %4178 }
 0x904   :  { %v4181_v20 = vpop.eup %4180  ;;  %v3294_v33 = vmul.f32 0.5, %v3292_v37 }
 0x905   :  { %v3285_v13 = vadd.f32 1.0, %v4181_v20 }
 0x932   :  { %v3224_v39 = vpop.f32.mrb[84].mxu0  ;;  %v3265_v16 = vpop.f32.mrb[84].mxu1 }
 0x933   :  { %v3276_v43 = vadd.f32 %v3224_v39, %v7468_v29  ;;  %v3278_v30 = vadd.f32 %v3265_v16, %v7469_v8  ;;  %v3226_v52 = vpop.f32.mrb[85].mxu0  ;;  %v3267_v44 = vpop.f32.mrb[85].mxu1  ;;  %v3293_v29 = vadd.f32 1.0, %v4177_v63  ;;  %v3284_v16 = vadd.f32 1.0, %v4179_v47 }
 0x934   :  { %v3277_v15 = vadd.f32 %v3226_v52, %v7470_v46  ;;  %v3279_v17 = vadd.f32 %v3267_v44, %v7471_v56  ;;  %v3228_v6 = vpop.f32.mrb[86].mxu0  ;;  %v3269_v35 = vpop.f32.mrb[86].mxu1  ;;  %v3287_v56 = vmul.f32 0.5, %v3285_v13 }
 0x935   :  { %4182 = vtanh.f32 %v3276_v43  ;;  %v3229_v28 = vpop.f32.mrb[87].mxu0  ;;  %v3270_v40 = vpop.f32.mrb[87].mxu1  ;;  %v3298_v39 = vmul.f32 0.5, %v3278_v30  ;;  %v3295_v52 = vmul.f32 0.5, %v3293_v29  ;;  %v3286_v44 = vmul.f32 0.5, %v3284_v16 }
 0x936   :  { %4184 = vtanh.f32 %v3277_v15  ;;  %v3299_v8 = vmul.f32 0.5, %v3279_v17  ;;  %v3306_v6 = vmul.f32 %v3294_v33, %v6151_v36 }
 0x937   :  { %4186 = vtanh.f32 %v3298_v39  ;;  %v3307_v15 = vmul.f32 %v3295_v52, %v6153_v3  ;;  %v7495_v52 = vld [vmem:[#allocation171_spill] sm:$0xff] }
 0x938   :  { %4188 = vtanh.f32 %v3299_v8 }
 0x93f   :  { %v4183_v46 = vpop.eup %4182 }
 0x940   :  { %v4185_v43 = vpop.eup %4184  ;;  %v3308_v35 = vmul.f32 %v4183_v46, %v3286_v44  ;;  %v7496_v46 = vld [vmem:[#allocation174_spill] sm:$0xff] }
 0x941   :  { %v3309_v28 = vmul.f32 %v4185_v43, %v3287_v56  ;;  %v4187_v17 = vpop.eup %4186 }
 0x942   :  { %v6301_v55 = vadd.f32 %v3308_v35, %v3306_v6  ;;  %v4189_v40 = vpop.eup %4188  ;;  %v3302_v63 = vadd.f32 1.0, %v4187_v17  ;;  %v7497_v35 = vld [vmem:[#allocation173_spill] sm:$0xff] }
 0x943   :  { %v6303_v30 = vadd.f32 %v3309_v28, %v3307_v15  ;;  %v3303_v47 = vadd.f32 1.0, %v4189_v40  ;;  %v7498_v28 = vld [vmem:[#allocation175_spill] sm:$0xff] }
 0x944   :  { %4190 = vtanh.f32 %v6301_v55  ;;  %v3304_v13 = vmul.f32 0.5, %v3302_v63 }
 0x945   :  { %4192 = vtanh.f32 %v6303_v30  ;;  %v3305_v37 = vmul.f32 0.5, %v3303_v47 }
 0x94e   :  { %v4191_v20 = vpop.eup %4190 }
 0x94f   :  { %v4193_v36 = vpop.eup %4192  ;;  %v3314_v33 = vmul.f32 %v4191_v20, %v3304_v13 }
 0x950   :  { %v3315_v39 = vmul.f32 %v4193_v36, %v3305_v37 }
 0x951   :  { %v6307_v29 = vpack.c.bf16 %v3314_v33, %v3314_v33 }
 0x952   :  { %v3325_v3 = vpack.c.bf16 %v3315_v39, %v3315_v39 }
 0x954   :  { %3358 = vmatprep.mubr.bf16.mxu0 %v3325_v3  ;;  %3399 = vmatprep.mubr.bf16.mxu1 %v3325_v3 }
 0x955   :  { %3359 = vmatmul.mubr.bf16.vlgmr.msra.gmra.mrb[88].mxu0 %v6307_v29  ;;  %3400 = vmatmul.mubr.bf16.vlgmr.msra.gmra.mrb[88].mxu1 %v6307_v29 }
 0x956   :  { %3409 = vmatpush1.bf16.msra.mxu0 %v6883_v49  ;;  %3450 = vmatpush1.bf16.msra.mxu1 %v6884_v25  ;;  %v7472_v49 = vld [vmem:[#allocation125_spill] sm:$0xff]  ;;  %v7473_v25 = vld [vmem:[#allocation126_spill] sm:$0xff] }
 0x957   :  { %3440 = vmatprep.mubr.bf16.mxu0 %v3325_v3  ;;  %3481 = vmatprep.mubr.bf16.mxu1 %v3325_v3 }
 0x958   :  { %3410 = vmatprep.subr.bf16.mxu0 %v6885_v18  ;;  %3451 = vmatprep.subr.bf16.mxu1 %v6886_v42  ;;  %v7474_v18 = vld [vmem:[#allocation127_spill] sm:$0xff]  ;;  %v7475_v42 = vld [vmem:[#allocation128_spill] sm:$0xff] }
 0x95a   :  { %3411 = vmatpush1.bf16.msra.mxu0 %v6887_v11  ;;  %3452 = vmatpush1.bf16.msra.mxu1 %v6888_v51  ;;  %v7476_v11 = vld [vmem:[#allocation129_spill] sm:$0xff]  ;;  %v7477_v51 = vld [vmem:[#allocation130_spill] sm:$0xff] }
 0x95b   :  { %3412 = vmatprep.subr.bf16.mxu0 %v6889_v41  ;;  %3453 = vmatprep.subr.bf16.mxu1 %v6890_v34  ;;  %v7478_v41 = vld [vmem:[#allocation131_spill] sm:$0xff]  ;;  %v7479_v34 = vld [vmem:[#allocation132_spill] sm:$0xff] }
 0x95e   :  { %3413 = vmatpush1.bf16.msra.mxu0 %v6891_v2  ;;  %3454 = vmatpush1.bf16.msra.mxu1 %v6892_v45  ;;  %v7480_v2 = vld [vmem:[#allocation133_spill] sm:$0xff]  ;;  %v7481_v45 = vld [vmem:[#allocation134_spill] sm:$0xff] }
 0x95f   :  { %3414 = vmatprep.subr.bf16.mxu0 %v6893_v26  ;;  %3455 = vmatprep.subr.bf16.mxu1 %v6894_v27  ;;  %v7482_v26 = vld [vmem:[#allocation135_spill] sm:$0xff]  ;;  %v7483_v27 = vld [vmem:[#allocation136_spill] sm:$0xff] }
 0x962   :  { %3415 = vmatpush1.bf16.msra.mxu0 %v6895_v0  ;;  %3456 = vmatpush1.bf16.msra.mxu1 %v6896_v32  ;;  %v7484_v0 = vld [vmem:[#allocation137_spill] sm:$0xff]  ;;  %v7485_v32 = vld [vmem:[#allocation138_spill] sm:$0xff] }
 0x963   :  { %3416 = vmatprep.subr.bf16.mxu0 %v6897_v9  ;;  %3457 = vmatprep.subr.bf16.mxu1 %v6898_v10  ;;  %v7486_v9 = vld [vmem:[#allocation139_spill] sm:$0xff]  ;;  %v7487_v10 = vld [vmem:[#allocation140_spill] sm:$0xff] }
 0x966   :  { %3417 = vmatpush1.bf16.msra.mxu0 %v6899_v19  ;;  %3458 = vmatpush1.bf16.msra.mxu1 %v6900_v31  ;;  %v7488_v19 = vld [vmem:[#allocation141_spill] sm:$0xff]  ;;  %v7489_v31 = vld [vmem:[#allocation142_spill] sm:$0xff] }
 0x967   :  { %3418 = vmatprep.subr.bf16.mxu0 %v6987_v38  ;;  %3459 = vmatprep.subr.bf16.mxu1 %v6988_v5  ;;  %v7492_v38 = vld [vmem:[#allocation145_spill] sm:$0xff]  ;;  %v7493_v5 = vld [vmem:[#allocation146_spill] sm:$0xff] }
 0x96a   :  { %3419 = vmatpush1.bf16.msra.mxu0 %v6989_v4  ;;  %3460 = vmatpush1.bf16.msra.mxu1 %v6990_v62  ;;  %v7494_v4 = vld [vmem:[#allocation147_spill] sm:$0xff] }
 0x96b   :  { %3420 = vmatprep.subr.bf16.mxu0 %v6991_v61  ;;  %3461 = vmatprep.subr.bf16.mxu1 %v6992_v59  ;;  %v4038_v62 = vld [vmem:[#allocation12 + $0x40] sm:$0xff]   ;;  %v4040_v59 = vld [vmem:[#allocation12 + $0x48] sm:$0xff]  }
 0x96c   :  { %v4039_v61 = vld [vmem:[#allocation12] sm:$0xff]  }
 0x96e   :  { %3421 = vmatpush1.bf16.msra.mxu0 %v6993_v14  ;;  %3462 = vmatpush1.bf16.msra.mxu1 %v6994_v21  ;;  %v4041_v14 = vld [vmem:[#allocation12 + $0x8] sm:$0xff]   ;;  %v4042_v21 = vld [vmem:[#allocation12 + $0x50] sm:$0xff]  }
 0x96f   :  { %3422 = vmatprep.subr.bf16.mxu0 %v6995_v24  ;;  %3463 = vmatprep.subr.bf16.mxu1 %v6996_v22  ;;  %v4043_v24 = vld [vmem:[#allocation12 + $0x10] sm:$0xff]   ;;  %v4044_v22 = vld [vmem:[#allocation12 + $0x58] sm:$0xff]  }
 0x972   :  { %3423 = vmatpush1.bf16.msra.mxu0 %v6997_v54  ;;  %3464 = vmatpush1.bf16.msra.mxu1 %v6998_v60  ;;  %v4045_v54 = vld [vmem:[#allocation12 + $0x18] sm:$0xff]   ;;  %v4046_v60 = vld [vmem:[#allocation12 + $0x60] sm:$0xff]  }
 0x973   :  { %3424 = vmatprep.subr.bf16.mxu0 %v6999_v7  ;;  %3465 = vmatprep.subr.bf16.mxu1 %v7000_v53  ;;  %v4047_v7 = vld [vmem:[#allocation12 + $0x20] sm:$0xff]   ;;  %v4048_v53 = vld [vmem:[#allocation12 + $0x68] sm:$0xff]  }
 0x976   :  { %3425 = vmatpush1.bf16.msra.mxu0 %v7001_v12  ;;  %3466 = vmatpush1.bf16.msra.mxu1 %v7002_v50  ;;  %v4049_v12 = vld [vmem:[#allocation12 + $0x28] sm:$0xff]   ;;  %v4050_v50 = vld [vmem:[#allocation12 + $0x70] sm:$0xff]  }
 0x977   :  { %3426 = vmatprep.subr.bf16.mxu0 %v7003_v23  ;;  %3467 = vmatprep.subr.bf16.mxu1 %v7004_v58  ;;  %v4051_v23 = vld [vmem:[#allocation12 + $0x30] sm:$0xff]   ;;  %v4052_v58 = vld [vmem:[#allocation12 + $0x78] sm:$0xff]  }
 0x97a   :  { %3427 = vmatpush1.bf16.msra.mxu0 %v7005_v1  ;;  %3468 = vmatpush1.bf16.msra.mxu1 %v6920_v57  ;;  %v7490_v57 = vld [vmem:[#allocation143_spill] sm:$0xff]  ;;  %v4053_v1 = vld [vmem:[#allocation12 + $0x38] sm:$0xff]  }
 0x97b   :  { %3428 = vmatprep.subr.bf16.mxu0 %v6921_v48  ;;  %3469 = vmatprep.subr.bf16.mxu1 %v7472_v49  ;;  %v7491_v48 = vld [vmem:[#allocation144_spill] sm:$0xff] }
 0x97e   :  { %3429 = vmatpush1.bf16.msra.mxu0 %v7473_v25  ;;  %3470 = vmatpush1.bf16.msra.mxu1 %v7474_v18  ;;  %v7500_v25 = vld [vmem:[#allocation202_spill] sm:$0xff] }
 0x97f   :  { %3430 = vmatprep.subr.bf16.mxu0 %v7475_v42  ;;  %3471 = vmatprep.subr.bf16.mxu1 %v7476_v11 }
 0x982   :  { %3431 = vmatpush1.bf16.msra.mxu0 %v7477_v51  ;;  %3472 = vmatpush1.bf16.msra.mxu1 %v7478_v41  ;;  %v7501_v51 = vld [vmem:[#allocation201_spill] sm:$0xff] }
 0x983   :  { %3432 = vmatprep.subr.bf16.mxu0 %v7479_v34  ;;  %3473 = vmatprep.subr.bf16.mxu1 %v7480_v2  ;;  %v7502_v34 = vld [vmem:[#allocation203_spill] sm:$0xff] }
 0x986   :  { %3433 = vmatpush1.bf16.msra.mxu0 %v7481_v45  ;;  %3474 = vmatpush1.bf16.msra.mxu1 %v7482_v26 }
 0x987   :  { %3434 = vmatprep.subr.bf16.mxu0 %v7483_v27  ;;  %3475 = vmatprep.subr.bf16.mxu1 %v7484_v0 }
 0x98a   :  { %3435 = vmatpush1.bf16.msra.mxu0 %v7485_v32  ;;  %3476 = vmatpush1.bf16.msra.mxu1 %v7486_v9 }
 0x98b   :  { %3436 = vmatprep.subr.bf16.mxu0 %v7487_v10  ;;  %3477 = vmatprep.subr.bf16.mxu1 %v7488_v19 }
 0x98e   :  { %3437 = vmatpush1.bf16.msra.mxu0 %v7489_v31  ;;  %3478 = vmatpush1.bf16.msra.mxu1 %v7490_v57 }
 0x98f   :  { %3438 = vmatprep.subr.bf16.mxu0 %v7491_v48  ;;  %3479 = vmatprep.subr.bf16.mxu1 %v7492_v38 }
 0x992   :  { %3439 = vmatpush1.bf16.msra.mxu0 %v7493_v5  ;;  %3480 = vmatpush1.bf16.msra.mxu1 %v7494_v4 }
 0x993   :  { %4002 = vmatprep.subr.bf16.mxu0 %v4038_v62 }
 0x995   :  { %3441 = vmatmul.mubr.bf16.vlgmr.msra.gmra.mrb[92].mxu0 %v6307_v29  ;;  %3482 = vmatmul.mubr.bf16.vlgmr.msra.gmra.mrb[92].mxu1 %v6307_v29  ;;  %v7499_v29 = vld [vmem:[#allocation199_spill] sm:$0xff] }
 0x996   :  { %4003 = vmatpush3.bf16.msra.mxu0 %v4039_v61 }
 0x997   :  { %4004 = vmatprep.subr.bf16.mxu0 %v4040_v59 }
 0x99a   :  { %4005 = vmatpush3.bf16.msra.mxu0 %v4041_v14 }
 0x99b   :  { %4006 = vmatprep.subr.bf16.mxu0 %v4042_v21 }
 0x99e   :  { %4007 = vmatpush3.bf16.msra.mxu0 %v4043_v24 }
 0x99f   :  { %4008 = vmatprep.subr.bf16.mxu0 %v4044_v22 }
 0x9a2   :  { %4009 = vmatpush3.bf16.msra.mxu0 %v4045_v54 }
 0x9a3   :  { %4010 = vmatprep.subr.bf16.mxu0 %v4046_v60 }
 0x9a6   :  { %4011 = vmatpush3.bf16.msra.mxu0 %v4047_v7 }
 0x9a7   :  { %4012 = vmatprep.subr.bf16.mxu0 %v4048_v53 }
 0x9aa   :  { %4013 = vmatpush3.bf16.msra.mxu0 %v4049_v12 }
 0x9ab   :  { %4014 = vmatprep.subr.bf16.mxu0 %v4050_v50 }
 0x9ae   :  { %4015 = vmatpush3.bf16.msra.mxu0 %v4051_v23 }
 0x9af   :  { %4016 = vmatprep.subr.bf16.mxu0 %v4052_v58 }
 0x9b2   :  { %4017 = vmatpush3.bf16.msra.mxu0 %v4053_v1 }
 0xa28   :  { %v3360_v8 = vpop.f32.mrb[88].mxu0  ;;  %v3401_v16 = vpop.f32.mrb[88].mxu1 }
 0xa29   :  { %v3490_v44 = vadd.f32 %v3360_v8, %v7495_v52  ;;  %v3492_v56 = vadd.f32 %v3401_v16, %v7496_v46  ;;  %v3362_v43 = vpop.f32.mrb[89].mxu0  ;;  %v3403_v6 = vpop.f32.mrb[89].mxu1 }
 0xa2a   :  { %v3491_v15 = vadd.f32 %v3362_v43, %v7497_v35  ;;  %v3493_v17 = vadd.f32 %v3403_v6, %v7498_v28  ;;  %v3364_v40 = vpop.f32.mrb[90].mxu0  ;;  %v3405_v63 = vpop.f32.mrb[90].mxu1  ;;  %v3985_v35 = vld [vmem:[%s6406_s6] ss:$0 sm:$0xff] }
 0xa2b   :  { %v3365_v47 = vpop.f32.mrb[91].mxu0  ;;  %v3406_v13 = vpop.f32.mrb[91].mxu1  ;;  %v3506_v20 = vmul.f32 0.5, %v3492_v56  ;;  %v3498_v36 = vmul.f32 0.5, %v3490_v44 }
 0xa2c   :  { %v3507_v37 = vmul.f32 0.5, %v3493_v17  ;;  %v3499_v33 = vmul.f32 0.5, %v3491_v15 }
 0xa2d   :  { %4194 = vtanh.f32 %v3506_v20 }
 0xa2e   :  { %4196 = vtanh.f32 %v3507_v37 }
 0xa2f   :  { %4198 = vtanh.f32 %v3498_v36 }
 0xa30   :  { %4200 = vtanh.f32 %v3499_v33 }
 0xa37   :  { %v4195_v27 = vpop.eup %4194 }
 0xa38   :  { %v4197_v9 = vpop.eup %4196  ;;  %v3510_v31 = vadd.f32 1.0, %v4195_v27 }
 0xa39   :  { %v4199_v10 = vpop.eup %4198  ;;  %v3511_v48 = vadd.f32 1.0, %v4197_v9 }
 0xa3a   :  { %v4201_v19 = vpop.eup %4200  ;;  %v3502_v5 = vadd.f32 1.0, %v4199_v10  ;;  %v3512_v62 = vmul.f32 0.5, %v3510_v31 }
 0xa3b   :  { %v3503_v4 = vadd.f32 1.0, %v4201_v19  ;;  %v3513_v61 = vmul.f32 0.5, %v3511_v48 }
 0xa3c   :  { %v3504_v59 = vmul.f32 0.5, %v3502_v5  ;;  %v3524_v22 = vmul.f32 %v3512_v62, %v6301_v55 }
 0xa3d   :  { %v3505_v21 = vmul.f32 0.5, %v3503_v4  ;;  %v3525_v60 = vmul.f32 %v3513_v61, %v6303_v30 }
 0xa68   :  { %v3442_v39 = vpop.f32.mrb[92].mxu0  ;;  %v3483_v3 = vpop.f32.mrb[92].mxu1 }
 0xa69   :  { %v3494_v49 = vadd.f32 %v3442_v39, %v7499_v29  ;;  %v3496_v18 = vadd.f32 %v3483_v3, %v7500_v25  ;;  %v3444_v42 = vpop.f32.mrb[93].mxu0  ;;  %v3485_v11 = vpop.f32.mrb[93].mxu1 }
 0xa6a   :  { %v3495_v41 = vadd.f32 %v3444_v42, %v7501_v51  ;;  %v3497_v2 = vadd.f32 %v3485_v11, %v7502_v34  ;;  %v3446_v45 = vpop.f32.mrb[94].mxu0  ;;  %v3487_v26 = vpop.f32.mrb[94].mxu1 }
 0xa6b   :  { %4202 = vtanh.f32 %v3494_v49  ;;  %v3447_v0 = vpop.f32.mrb[95].mxu0  ;;  %v3488_v32 = vpop.f32.mrb[95].mxu1  ;;  %v3516_v57 = vmul.f32 0.5, %v3496_v18 }
 0xa6c   :  { %4204 = vtanh.f32 %v3495_v41  ;;  %v3517_v38 = vmul.f32 0.5, %v3497_v2 }
 0xa6d   :  { %4206 = vtanh.f32 %v3516_v57 }
 0xa6e   :  { %4208 = vtanh.f32 %v3517_v38 }
 0xa75   :  { %v4203_v14 = vpop.eup %4202 }
 0xa76   :  { %v4205_v24 = vpop.eup %4204  ;;  %v3526_v54 = vmul.f32 %v4203_v14, %v3504_v59 }
 0xa77   :  { %v3527_v7 = vmul.f32 %v4205_v24, %v3505_v21  ;;  %v4207_v50 = vpop.eup %4206 }
 0xa78   :  { %v3528_v53 = vadd.f32 %v3526_v54, %v3524_v22  ;;  %v4209_v23 = vpop.eup %4208  ;;  %v3520_v58 = vadd.f32 1.0, %v4207_v50 }
 0xa79   :  { %v3529_v12 = vadd.f32 %v3527_v7, %v3525_v60  ;;  %v3521_v1 = vadd.f32 1.0, %v4209_v23 }
 0xa7a   :  { %4210 = vtanh.f32 %v3528_v53  ;;  %v3522_v8 = vmul.f32 0.5, %v3520_v58 }
 0xa7b   :  { %4212 = vtanh.f32 %v3529_v12  ;;  %v3523_v52 = vmul.f32 0.5, %v3521_v1 }
 0xa84   :  { %v4211_v16 = vpop.eup %4210 }
 0xa85   :  { %v4213_v44 = vpop.eup %4212  ;;  %v3532_v46 = vmul.f32 %v4211_v16, %v3522_v8 }
 0xa86   :  { %v3533_v56 = vmul.f32 %v4213_v44, %v3523_v52 }
 0xa87   :  { %v3534_v55 = vpack.c.bf16 %v3532_v46, %v3532_v46 }
 0xa88   :  { %v3535_v43 = vpack.c.bf16 %v3533_v56, %v3533_v56 }
 0xa8a   :  { %3703 = vmatprep.mubr.bf16.mxu0 %v3535_v43 }
 0xa8b   :  { %3704 = vmatmul.mubr.bf16.vlgmr.msra.gmra.mrb[96].mxu0 %v3534_v55 }
 0xb5e   :  { %v4018_v30 = vpop.f32.mrb[96].mxu0 }
 0xb5f   :  { %v4019_v6 = vpop.f32.mrb[97].mxu0 }
 0xb60   :  { %v4020_v15 = vadd.f32 %v4019_v6, %v4018_v30  ;;  %v4021_v28 = vpop.f32.mrb[98].mxu0 }
 0xb61   :  { %v4022_v17 = vpop.f32.mrb[99].mxu0 }
 0xb62   :  { %v3706_v40 = vadd.f32 %v4020_v15, %v3985_v35 }
 0xb64   :  { %3711 = vst [vmem:[#allocation14] sm:$0xff] %v3706_v40 }
 0xb65   :  { %4323 = shalt.err (!%p4320_p11)
}
 0xb66   :  { %s4324_s28 = scalar_lea.hbm %s6407_s7, 128 }
 0xb67   :  { %p4325_p12 = scmp.ne.s32.totalorder %s6407_s7, %s4324_s28  ;;  %p4328_p13 = scmp.lt.u32.totalorder %s4324_s28, %s6407_s7 }
 0xb69   :  { %p4330_p0 = pnand %p4328_p13, %p4325_p12 }
 0xb6b   :  { %4333 = shalt.err (!%p4330_p0)
}
 0xb6c   :  { %3721 = dma.vmem_to_hbm [thread:$0]  %s3719_s26, 128, %s6407_s7, [#allocation6]  }
 0xb6d   :  { %4342 = dma.done.wait [#allocation6], 128  }
 0xb6e   :  { %4343 = vsyncadd [#allocation6], 4294967168 }
 0xb6f   :  { %3725 = vsyncpa [#allocation5], 1 }
 0xb70   :  { %3726 = vsyncpa [#allocation10], 1 }
 0xb71   :  { %3727 = vsyncpa [#allocation13], 1 }
 0xb72   :  { %3728 = vsyncpa [#allocation6], 1 }
 0xb73   :  { %3729 = vsyncpa [#allocation7], 1 }

</bundles_post_ra>
